<compile_context>
chip_gen: v7x
topology: tpu7x:2x2x1
jax: 0.10.0
libtpu: 0.0.40
codegen_flags: <defaults>
</compile_context>

<pallas_src>
import functools

import jax
import jax.numpy as jnp
from jax import lax
from jax.experimental import pallas as pl
from jax.experimental.pallas import tpu as pltpu

NFILT = 400  # fixed by the module (400 Gaussian filters)


def _filter_kernel(sigma_ref, x_ref, mus_ref, out_ref, acc_ref, *,
                   winlen, ragged_w, inv_winlen, x_step):
    # sigma_ref : SMEM (1,)             f32
    # x_ref     : VMEM (tb, NFILT, tw)  input dtype (f32 or bf16)
    # mus_ref   : VMEM (NFILT, 1)       f32   -- resident across the grid
    # out_ref   : VMEM (tb, 128)        f32   -- lane-dense output block
    # acc_ref   : VMEM (tb, 128)        f32   -- partial sums across the W axis
    k = pl.program_id(1)
    tb, _, tw = x_ref.shape

    @pl.when(k == 0)
    def _init():
        acc_ref[...] = jnp.zeros_like(acc_ref)

    sigma = sigma_ref[0]
    inv_two_sig2 = 1.0 / (2.0 * sigma * sigma)

    # x_values tile built in-kernel:
    #   torch.linspace(0, winlen, winlen)[j] = j * winlen / (winlen - 1)
    col = lax.broadcasted_iota(jnp.int32, (1, tw), 1) + k * tw       # global column index
    xv = col.astype(jnp.float32) * x_step                            # (1, tw)
    diff = xv - mus_ref[...]                                         # (NFILT, tw)
    filt = jnp.exp(-(diff * diff) * inv_two_sig2)                    # (NFILT, tw), EUP exp

    def chunk_term(lo, hi):
        xc = x_ref[:, :, lo:hi].astype(jnp.float32)                  # (tb, NFILT, hi-lo)
        if ragged_w:
            # The last W tile may extend past winlen; those lanes of the X
            # buffer are unspecified (possibly NaN) -> select to 0 before use.
            xc = jnp.where((col[:, lo:hi] < winlen)[None, :, :], xc, 0.0)
        return xc * filt[None, :, lo:hi]

    # Lane-resident accumulation: unrolled 128-lane chunks (pure VPU FMAs, no
    # full-tile product temp), then one cheap sublane collapse per step.
    partial = None
    start = 0
    while start + 128 <= tw:
        term = chunk_term(start, start + 128)                        # (tb, NFILT, 128)
        partial = term if partial is None else partial + term
        start += 128
    if partial is not None:
        acc_ref[...] += jnp.sum(partial, axis=1)                     # (tb, 128)
    if start < tw:
        # Narrow tail chunk (only when tw is not a 128-multiple, i.e. small
        # full-width W blocks): fold it into the leading lanes of the acc.
        wc = tw - start
        acc_ref[:, 0:wc] += jnp.sum(chunk_term(start, tw), axis=1)   # (tb, wc)

    @pl.when(k == pl.num_programs(1) - 1)
    def _finalize():
        total = jnp.sum(acc_ref[...], axis=-1, keepdims=True)        # (tb, 1) one-time XLU
        out_ref[...] = jnp.broadcast_to(total * inv_winlen, out_ref.shape)


def filter_forward(x, mus, sigma, winlen, *, tb=None, tw=None):
    """x: (B, 400, winlen) f32/bf16; mus: (400,); sigma: (1,)  ->  (B,) f32.

    Wrap in jax.jit with winlen/tb/tw static for production use.
    """
    B, nf, w = x.shape
    assert nf == NFILT and w == winlen

    mus_2d = jnp.asarray(mus).reshape(NFILT, 1).astype(jnp.float32)
    sigma = jnp.asarray(sigma).reshape(1).astype(jnp.float32)

    # ---- tile selection ----------------------------------------------------
    # tw: full width for small windows, else a 512-lane 128-aligned tile
    #     (2 KiB HBM rows per DMA).  A ragged last tile is masked in-kernel,
    #     so no divisibility requirement and no padding of X.
    # tb: batch tile; <= 8 keeps the (tb, 128) output block legal and the
    #     double-buffered X footprint v7x-safe.  A ragged last batch block is
    #     handled by Pallas edge blocks (its extra rows are discarded).
    if tw is None:
        tw = w if w <= 512 else 512
    if tb is None:
        tb = B if B <= 8 else 8

    grid_b = pl.cdiv(B, tb)
    grid_w = pl.cdiv(w, tw)
    ragged_w = (w % tw) != 0
    x_step = float(winlen) / float(winlen - 1) if winlen > 1 else 0.0

    kernel = functools.partial(
        _filter_kernel,
        winlen=winlen,
        ragged_w=ragged_w,
        inv_winlen=1.0 / float(winlen),
        x_step=x_step,
    )

    out = pl.pallas_call(
        kernel,
        out_shape=jax.ShapeDtypeStruct((B, 128), jnp.float32),
        grid=(grid_b, grid_w),
        in_specs=[
            pl.BlockSpec(memory_space=pltpu.SMEM),                    # sigma scalar
            pl.BlockSpec((tb, NFILT, tw), lambda i, k: (i, 0, k)),    # X tile (only HBM stream)
            pl.BlockSpec((NFILT, 1), lambda i, k: (0, 0)),            # mus (resident)
        ],
        out_specs=pl.BlockSpec((tb, 128), lambda i, k: (i, 0)),
        scratch_shapes=[pltpu.VMEM((tb, 128), jnp.float32)],          # W-axis accumulator
        compiler_params=pltpu.CompilerParams(
            dimension_semantics=("parallel", "arbitrary"),
            vmem_limit_bytes=48 * 1024 * 1024,
        ),
        cost_estimate=pl.CostEstimate(
            flops=2 * B * NFILT * w,
            transcendentals=NFILT * w * grid_b,    # filt rebuilt per (b-block, w-tile)
            bytes_accessed=x.size * x.dtype.itemsize + NFILT * 4 + 4 + B * 128 * 4,
        ),
    )(sigma, x, mus_2d)

    return out[:, 0]


def filter_forward_ref(x, mus, sigma, winlen):
    """Pure-JAX reference mirroring the PyTorch module (f32 math)."""
    x_values = jnp.linspace(0.0, float(winlen), winlen, dtype=jnp.float32)
    filt = jnp.exp(-jnp.square(x_values[None, :] - mus[:, None]) / (2.0 * sigma[0] ** 2))
    return jnp.einsum("bij,ij->b", x.astype(jnp.float32), filt) / winlen


if __name__ == "__main__":
    key = jax.random.PRNGKey(0)
    k_x, k_mu, k_x2, k_mu2, k_x3 = jax.random.split(key, 5)

    # ---- Case 1: module-like small shapes (B=2, winlen=384), f32 -----------
    winlen = 384
    B = 2
    mus = jax.random.randint(k_mu, (NFILT,), 0, winlen).astype(jnp.float32)
    sigma = jnp.array([16.0], dtype=jnp.float32)
    x = jax.random.normal(k_x, (B, NFILT, winlen), dtype=jnp.float32)

    ref = jax.block_until_ready(filter_forward_ref(x, mus, sigma, winlen))
    out = jax.block_until_ready(filter_forward(x, mus, sigma, winlen))
    assert out.shape == (B,)
    assert jnp.allclose(out, ref, rtol=1e-5, atol=1e-4), (out, ref)

    # ---- Case 2: multi-step W grid (accumulator path), tw=128 --------------
    out_t128 = jax.block_until_ready(filter_forward(x, mus, sigma, winlen, tw=128))
    assert jnp.allclose(out_t128, ref, rtol=1e-5, atol=1e-4), (out_t128, ref)

    # ---- Case 3: ragged last W tile (384 = 256 + 128 valid of 256) ---------
    out_t256 = jax.block_until_ready(filter_forward(x, mus, sigma, winlen, tw=256))
    assert jnp.allclose(out_t256, ref, rtol=1e-5, atol=1e-4), (out_t256, ref)

    # ---- Case 4: ragged batch (B=10 > tb=8), no wrapper-side padding -------
    B2 = 10
    x2 = jax.random.normal(k_x2, (B2, NFILT, winlen), dtype=jnp.float32)
    ref2 = jax.block_until_ready(filter_forward_ref(x2, mus, sigma, winlen))
    out2 = jax.block_until_ready(filter_forward(x2, mus, sigma, winlen, tw=128))
    assert out2.shape == (B2,)
    assert jnp.allclose(out2, ref2, rtol=1e-5, atol=1e-4), (out2, ref2)

    # ---- Case 5: bf16 X in HBM (halved DMA bytes), f32 math in-kernel ------
    x_bf16 = x.astype(jnp.bfloat16)
    ref_bf16 = jax.block_until_ready(filter_forward_ref(x_bf16, mus, sigma, winlen))
    out_bf16 = jax.block_until_ready(filter_forward(x_bf16, mus, sigma, winlen))
    assert jnp.allclose(out_bf16, ref_bf16, rtol=1e-5, atol=1e-3), (out_bf16, ref_bf16)

    # ---- Case 6: non-128-multiple winlen (masked lanes + tail chunk) -------
    winlen2 = 200
    mus2 = jax.random.randint(k_mu2, (NFILT,), 0, winlen2).astype(jnp.float32)
    x3 = jax.random.normal(k_x3, (3, NFILT, winlen2), dtype=jnp.float32)
    ref3 = jax.block_until_ready(filter_forward_ref(x3, mus2, sigma, winlen2))
    out3 = jax.block_until_ready(filter_forward(x3, mus2, sigma, winlen2))
    assert jnp.allclose(out3, ref3, rtol=1e-5, atol=1e-4), (out3, ref3)

    print("KERNEL_OK")
</pallas_src>

<mosaic_0001>
module attributes {stable_mosaic.version = 11 : i64} {
  func.func @_filter_kernel(%arg0: i32, %arg1: i32, %arg2: memref<1xf32, #tpu.memory_space<smem>>, %arg3: memref<2x400x384xf32, #tpu.memory_space<vmem>>, %arg4: memref<400x1xf32, #tpu.memory_space<vmem>>, %arg5: memref<2x128xf32, #tpu.memory_space<vmem>>, %arg6: memref<2x128xf32, #tpu.memory_space<vmem>>) attributes {dimension_semantics = [#tpu.dimension_semantics<parallel>, #tpu.dimension_semantics<arbitrary>], iteration_bounds = array<i64: 1, 1>, scalar_prefetch = 0 : i64, scratch_operands = 1 : i64, tpu.core_type = #tpu.core_type<tc>, window_params = [{transform_indices = @transform_0, window_bounds = array<i64: 1>}, {transform_indices = @transform_1, window_bounds = array<i64: 2, 400, 384>}, {pipeline_mode = #tpu.pipeline_mode<synchronous>, transform_indices = @transform_2, window_bounds = array<i64: 400, 1>}, {transform_indices = @transform_3, window_bounds = array<i64: 2, 128>}]} {
    %c0_i32 = arith.constant 0 : i32
    %0 = arith.cmpi eq, %arg1, %c0_i32 : i32
    %1 = arith.extui %0 : i1 to i32
    %c0_i32_0 = arith.constant 0 : i32
    %2 = arith.cmpi ne, %1, %c0_i32_0 : i32
    scf.if %2 {
      %cst_20 = arith.constant 0.000000e+00 : f32
      %48 = vector.broadcast %cst_20 : f32 to vector<2x128xf32>
      %c0_21 = arith.constant 0 : index
      %c0_22 = arith.constant 0 : index
      %49 = vector.load %arg6[%c0_21, %c0_22] : memref<2x128xf32, #tpu.memory_space<vmem>>, vector<2x128xf32>
      tpu.vector_store %arg6[%c0_21, %c0_22], %48 {strides = array<i32>} : memref<2x128xf32, #tpu.memory_space<vmem>>, vector<2x128xf32>,
    } else {
    }
    %c0 = arith.constant 0 : index
    %3 = memref.load %arg2[%c0] : memref<1xf32, #tpu.memory_space<smem>>
    %cst = arith.constant 2.000000e+00 : f32
    %4 = arith.mulf %cst, %3 : f32
    %5 = arith.mulf %4, %3 : f32
    %cst_1 = arith.constant 1.000000e+00 : f32
    %6 = arith.divf %cst_1, %5 : f32
    %7 = tpu.iota {dimensions = array<i32: 1>} : vector<1x384xi32>
    %c384_i32 = arith.constant 384 : i32
    %8 = arith.muli %arg1, %c384_i32 : i32
    %9 = vector.broadcast %8 : i32 to vector<1x384xi32>
    %10 = arith.addi %7, %9 : vector<1x384xi32>
    %11 = arith.sitofp %10 : vector<1x384xi32> to vector<1x384xf32>
    %cst_2 = arith.constant 1.00261092 : f32
    %12 = vector.broadcast %cst_2 : f32 to vector<1x384xf32>
    %13 = arith.mulf %11, %12 : vector<1x384xf32>
    %c0_3 = arith.constant 0 : index
    %c0_4 = arith.constant 0 : index
    %14 = vector.load %arg4[%c0_3, %c0_4] : memref<400x1xf32, #tpu.memory_space<vmem>>, vector<400x1xf32>
    %15 = vector.broadcast %13 : vector<1x384xf32> to vector<400x384xf32>
    %16 = vector.broadcast %14 : vector<400x1xf32> to vector<400x384xf32>
    %17 = arith.subf %15, %16 : vector<400x384xf32>
    %18 = arith.mulf %17, %17 : vector<400x384xf32>
    %cst_5 = arith.constant 0.000000e+00 : f32
    %19 = vector.broadcast %cst_5 : f32 to vector<400x384xf32>
    %20 = arith.subf %19, %18 : vector<400x384xf32>
    %21 = vector.broadcast %6 : f32 to vector<400x384xf32>
    %22 = arith.mulf %20, %21 : vector<400x384xf32>
    %23 = math.exp %22 : vector<400x384xf32>
    %c0_6 = arith.constant 0 : index
    %c0_7 = arith.constant 0 : index
    %c0_8 = arith.constant 0 : index
    %24 = vector.load %arg3[%c0_6, %c0_7, %c0_8] : memref<2x400x384xf32, #tpu.memory_space<vmem>>, vector<2x400x128xf32>
    %25 = vector.extract_strided_slice %23 {offsets = [0, 0], sizes = [400, 128], strides = [1, 1]} : vector<400x384xf32> to vector<400x128xf32>
    %26 = vector.shape_cast %25 : vector<400x128xf32> to vector<1x400x128xf32>
    %27 = vector.broadcast %26 : vector<1x400x128xf32> to vector<2x400x128xf32>
    %28 = arith.mulf %24, %27 : vector<2x400x128xf32>
    %c0_9 = arith.constant 0 : index
    %c0_10 = arith.constant 0 : index
    %c128 = arith.constant 128 : index
    %29 = vector.load %arg3[%c0_9, %c0_10, %c128] : memref<2x400x384xf32, #tpu.memory_space<vmem>>, vector<2x400x128xf32>
    %30 = vector.extract_strided_slice %23 {offsets = [0, 128], sizes = [400, 128], strides = [1, 1]} : vector<400x384xf32> to vector<400x128xf32>
    %31 = vector.shape_cast %30 : vector<400x128xf32> to vector<1x400x128xf32>
    %32 = vector.broadcast %31 : vector<1x400x128xf32> to vector<2x400x128xf32>
    %33 = arith.mulf %29, %32 : vector<2x400x128xf32>
    %34 = arith.addf %28, %33 : vector<2x400x128xf32>
    %c0_11 = arith.constant 0 : index
    %c0_12 = arith.constant 0 : index
    %c256 = arith.constant 256 : index
    %35 = vector.load %arg3[%c0_11, %c0_12, %c256] : memref<2x400x384xf32, #tpu.memory_space<vmem>>, vector<2x400x128xf32>
    %36 = vector.extract_strided_slice %23 {offsets = [0, 256], sizes = [400, 128], strides = [1, 1]} : vector<400x384xf32> to vector<400x128xf32>
    %37 = vector.shape_cast %36 : vector<400x128xf32> to vector<1x400x128xf32>
    %38 = vector.broadcast %37 : vector<1x400x128xf32> to vector<2x400x128xf32>
    %39 = arith.mulf %35, %38 : vector<2x400x128xf32>
    %40 = arith.addf %34, %39 : vector<2x400x128xf32>
    %c0_13 = arith.constant 0 : index
    %c0_14 = arith.constant 0 : index
    %41 = vector.load %arg6[%c0_13, %c0_14] : memref<2x128xf32, #tpu.memory_space<vmem>>, vector<2x128xf32>
    %cst_15 = arith.constant dense<0.000000e+00> : vector<2x128xf32>
    %42 = vector.multi_reduction <add>, %40, %cst_15 [1] : vector<2x400x128xf32> to vector<2x128xf32>
    %43 = arith.addf %41, %42 : vector<2x128xf32>
    %c0_16 = arith.constant 0 : index
    %c0_17 = arith.constant 0 : index
    %44 = vector.load %arg6[%c0_16, %c0_17] : memref<2x128xf32, #tpu.memory_space<vmem>>, vector<2x128xf32>
    tpu.vector_store %arg6[%c0_16, %c0_17], %43 {strides = array<i32>} : memref<2x128xf32, #tpu.memory_space<vmem>>, vector<2x128xf32>,
    %c0_i32_18 = arith.constant 0 : i32
    %45 = arith.cmpi eq, %arg1, %c0_i32_18 : i32
    %46 = arith.extui %45 : i1 to i32
    %c0_i32_19 = arith.constant 0 : i32
    %47 = arith.cmpi ne, %46, %c0_i32_19 : i32
    scf.if %47 {
      %c0_20 = arith.constant 0 : index
      %c0_21 = arith.constant 0 : index
      %48 = vector.load %arg6[%c0_20, %c0_21] : memref<2x128xf32, #tpu.memory_space<vmem>>, vector<2x128xf32>
      %cst_22 = arith.constant dense<0.000000e+00> : vector<2xf32>
      %49 = vector.multi_reduction <add>, %48, %cst_22 [1] : vector<2x128xf32> to vector<2xf32>
      %50 = vector.shape_cast %49 : vector<2xf32> to vector<2x1xf32>
      %cst_23 = arith.constant 0.00260416674 : f32
      %51 = vector.broadcast %cst_23 : f32 to vector<2x1xf32>
      %52 = arith.mulf %50, %51 : vector<2x1xf32>
      %53 = vector.shape_cast %52 : vector<2x1xf32> to vector<2x1xf32>
      %54 = vector.broadcast %53 : vector<2x1xf32> to vector<2x128xf32>
      %c0_24 = arith.constant 0 : index
      %c0_25 = arith.constant 0 : index
      %55 = vector.load %arg5[%c0_24, %c0_25] : memref<2x128xf32, #tpu.memory_space<vmem>>, vector<2x128xf32>
      tpu.vector_store %arg5[%c0_24, %c0_25], %54 {strides = array<i32>} : memref<2x128xf32, #tpu.memory_space<vmem>>, vector<2x128xf32>,
    } else {
    }
    return
  }
  func.func @transform_0(%arg0: i32, %arg1: i32) -> i32 {
    %c0_i32 = arith.constant 0 : i32
    %c0_i32_0 = arith.constant 0 : i32
    return %c0_i32 : i32
  }
  func.func @transform_1(%arg0: i32, %arg1: i32) -> (i32, i32, i32) {
    %c0_i32 = arith.constant 0 : i32
    %c0_i32_0 = arith.constant 0 : i32
    return %arg0, %c0_i32, %arg1 : i32, i32, i32
  }
  func.func @transform_2(%arg0: i32, %arg1: i32) -> (i32, i32) {
    %c0_i32 = arith.constant 0 : i32
    %c0_i32_0 = arith.constant 0 : i32
    %c0_i32_1 = arith.constant 0 : i32
    return %c0_i32, %c0_i32_0 : i32, i32
  }
  func.func @transform_3(%arg0: i32, %arg1: i32) -> (i32, i32) {
    %c0_i32 = arith.constant 0 : i32
    %c0_i32_0 = arith.constant 0 : i32
    return %arg0, %c0_i32 : i32, i32
  }
}

</mosaic_0001>

<bundles_post_ra>
// kernel: tpu_custom_call.1
= control target key start
LH: loop header
LB: loop body
LE: loop exit
PB: predicated region body
PF: predicated region fallthrough
CT: control target
= control target key end

     0   :  { %9 = vsyncpa [#allocation5], 0  ;;  %s3200_s0 = inlined_call_operand.<no memory space> [shape: f32[1], index: 0, kind: input, shape index: {}]   ;;  %s3201_s1 = inlined_call_operand.hbm [shape: f32[2,400,384], index: 1, kind: input, shape index: {}]   ;;  %s3202_s2 = inlined_call_operand.vmem [shape: f32[400,1], index: 2, kind: input, shape index: {}]   ;;  %s3203_s3 = inlined_call_operand.hbm [shape: f32[2,128], index: 3, kind: output, shape index: {}]  }
   0x1   :  { %10 = vsyncpa [#allocation6], 0  ;;  %s2560_s12 = smov [#allocation4]   ;;  %s2512_s16 = scalar_lea.hbm %s3201_s1, 38400 }
   0x2   :  { %s18_s13 = sshll.u32 %s2560_s12, 4  ;;  %p2513_p0 = scmp.ne.s32.totalorder %s3201_s1, %s2512_s16  ;;  %s19_s13 = int_to_ptr.vmem [resolvable:$true] %s18_s13 }
   0x3   :  { %p2516_p1 = scmp.lt.u32.totalorder %s2512_s16, %s3201_s1 }
   0x5   :  { %p2518_p2 = pnand %p2516_p1, %p2513_p0 }
   0x7   :  { %2521 = shalt.err (!%p2518_p2)
}
   0x8   :  { %s2522_s21 = scalar_lea.vmem %s19_s13, 38400  ;;  %p2527_p4 = scmp.lt.s32.totalorder %s19_s13, %s19_s13 }
   0x9   :  { %p2523_p3 = scmp.ne.s32.totalorder %s19_s13, %s2522_s21  ;;  %p2528_p5 = scmp.lt.s32.totalorder %s2522_s21, %s2522_s21 }
   0xb   :  { %p2529_p6 = por %p2528_p5, %p2527_p4 }
   0xd   :  { %p2530_p7 = pnand %p2529_p6, %p2523_p3 }
   0xf   :  { %2533 = shalt.err (!%p2530_p7)
}
  0x10   :  { %s2561_s22 = smov 384   ;;  %s2562_s23 = smov 24  }
  0x11   :  { %24 = dma.hbm_to_vmem [thread:$0]  %s3201_s1, 38400, %s19_s13, [#allocation5], %s2561_s22, %s2561_s22, %s2562_s23  }
  0x12   :  { %2556 = dma.done.wait [#allocation5], 38400  }
  0x13   :  { %2557 = vsyncadd [#allocation5], 4294928896  ;;  %s36_s28 = smul.f32 2.0, %s3200_s0  ;;  %v2563_v0 = vmov 0   ;;  %v58_v2 = vld [vmem:[%s3202_s2 + $0x10] sm:$0xff]  ;;  %v56_v3 = vld [vmem:[%s3202_s2] sm:$0xff]  ;;  %v41_v53 = vlaneseq }
  0x14   :  { %2209 = vset.pattern.permute.xlu1 %v2563_v0  ;;  %2208 = vset.pattern.permute.xlu0 %v2563_v0  ;;  %v59_v4 = vld [vmem:[%s3202_s2 + $0x18] sm:$0xff]  ;;  %v57_v5 = vld [vmem:[%s3202_s2 + $0x8] sm:$0xff]  ;;  %v60_v7 = vld [vmem:[%s3202_s2 + $0x20] sm:$0xff]  ;;  %vm2170_vm0 = vcmask 1041409   ;;  %vm2179_vm1 = vcmask 1041408   ;;  %s2565_s16 = smov [#allocation7]  }
  0x15   :  { %s37_s4 = smul.f32 %s36_s28, %s3200_s0  ;;  %118 = vperm.xlu1 %2209, %v58_v2   ;;  %108 = vperm.xlu0 %2208, %v56_v3   ;;  %v61_v6 = vld [vmem:[%s3202_s2 + $0x28] sm:$0xff]  ;;  %v63_v9 = vld [vmem:[%s3202_s2 + $0x38] sm:$0xff]  ;;  %v62_v10 = vld [vmem:[%s3202_s2 + $0x30] sm:$0xff]  ;;  %v42_v54 = vand.u32 127, %v41_v53  ;;  %s2191_s17 = sshll.u32 %s2565_s16, 4  ;;  %s2192_s17 = int_to_ptr.vmem [resolvable:$true] %s2191_s17 }
  0x16   :  { %v65_v11 = vld [vmem:[%s3202_s2 + $0x48] sm:$0xff]  ;;  %v64_v12 = vld [vmem:[%s3202_s2 + $0x40] sm:$0xff]  ;;  %v67_v13 = vld [vmem:[%s3202_s2 + $0x58] sm:$0xff]  ;;  %s2534_s18 = scalar_lea.vmem %s2192_s17, 32  ;;  %p2539_p9 = scmp.lt.s32.totalorder %s2192_s17, %s2192_s17 }
  0x17   :  { %v38_v1 = vstv %s37_s4  ;;  %v66_v14 = vld [vmem:[%s3202_s2 + $0x50] sm:$0xff]  ;;  %v69_v15 = vld [vmem:[%s3202_s2 + $0x68] sm:$0xff]  ;;  %v68_v16 = vld [vmem:[%s3202_s2 + $0x60] sm:$0xff]  ;;  %v43_v55 = vadd.s32 128, %v42_v54  ;;  %v44_v56 = vadd.s32 256, %v42_v54  ;;  %v50_v57 = vcvt.s32.f32 %v42_v54  ;;  %p2535_p8 = scmp.ne.s32.totalorder %s2192_s17, %s2534_s18  ;;  %p2540_p10 = scmp.lt.s32.totalorder %s2534_s18, %s2534_s18 }
  0x18   :  { %2210 = vrcp.f32 %v38_v1  ;;  %v71_v17 = vld [vmem:[%s3202_s2 + $0x78] sm:$0xff]  ;;  %v70_v18 = vld [vmem:[%s3202_s2 + $0x70] sm:$0xff]  ;;  %v73_v19 = vld [vmem:[%s3202_s2 + $0x88] sm:$0xff] }
  0x19   :  { %123 = vperm.xlu1 %2209, %v59_v4   ;;  %113 = vperm.xlu0 %2208, %v57_v5   ;;  %v72_v20 = vld [vmem:[%s3202_s2 + $0x80] sm:$0xff]  ;;  %v75_v21 = vld [vmem:[%s3202_s2 + $0x98] sm:$0xff]  ;;  %v74_v22 = vld [vmem:[%s3202_s2 + $0x90] sm:$0xff]  ;;  %v51_v58 = vcvt.s32.f32 %v43_v55  ;;  %v52_v59 = vcvt.s32.f32 %v44_v56  ;;  %v2754_v60 = vmul.f32 1.0026109, %v50_v57  ;;  %p2541_p11 = por %p2540_p10, %p2539_p9 }
  0x1a   :  { %v77_v23 = vld [vmem:[%s3202_s2 + $0xa8] sm:$0xff]  ;;  %v76_v24 = vld [vmem:[%s3202_s2 + $0xa0] sm:$0xff]  ;;  %v79_v25 = vld [vmem:[%s3202_s2 + $0xb8] sm:$0xff] }
  0x1b   :  { %v78_v26 = vld [vmem:[%s3202_s2 + $0xb0] sm:$0xff]  ;;  %v81_v27 = vld [vmem:[%s3202_s2 + $0xc8] sm:$0xff]  ;;  %v80_v28 = vld [vmem:[%s3202_s2 + $0xc0] sm:$0xff]  ;;  %v2756_v61 = vmul.f32 1.0026109, %v51_v58  ;;  %p2542_p12 = pnand %p2541_p11, %p2535_p8 }
  0x1c   :  { %v83_v29 = vld [vmem:[%s3202_s2 + $0xd8] sm:$0xff]  ;;  %v82_v30 = vld [vmem:[%s3202_s2 + $0xd0] sm:$0xff]  ;;  %v85_v31 = vld [vmem:[%s3202_s2 + $0xe8] sm:$0xff]  ;;  %v2758_v62 = vmul.f32 1.0026109, %v52_v59 }
  0x1d   :  { %133 = vperm.xlu1 %2209, %v61_v6   ;;  %128 = vperm.xlu0 %2208, %v60_v7   ;;  %v84_v32 = vld [vmem:[%s3202_s2 + $0xe0] sm:$0xff]  ;;  %v87_v33 = vld [vmem:[%s3202_s2 + $0xf8] sm:$0xff]  ;;  %v86_v34 = vld [vmem:[%s3202_s2 + $0xf0] sm:$0xff] }
  0x1e   :  { %v89_v35 = vld [vmem:[%s3202_s2 + $0x108] sm:$0xff]  ;;  %v88_v36 = vld [vmem:[%s3202_s2 + $0x100] sm:$0xff]  ;;  %v91_v37 = vld [vmem:[%s3202_s2 + $0x118] sm:$0xff] }
  0x1f   :  { %v90_v38 = vld [vmem:[%s3202_s2 + $0x110] sm:$0xff]  ;;  %v93_v39 = vld [vmem:[%s3202_s2 + $0x128] sm:$0xff]  ;;  %v92_v40 = vld [vmem:[%s3202_s2 + $0x120] sm:$0xff] }
  0x20   :  { %v95_v41 = vld [vmem:[%s3202_s2 + $0x138] sm:$0xff]  ;;  %v94_v42 = vld [vmem:[%s3202_s2 + $0x130] sm:$0xff]  ;;  %v97_v43 = vld [vmem:[%s3202_s2 + $0x148] sm:$0xff] }
  0x21   :  { %143 = vperm.xlu1 %2209, %v63_v9   ;;  %138 = vperm.xlu0 %2208, %v62_v10   ;;  %v96_v44 = vld [vmem:[%s3202_s2 + $0x140] sm:$0xff]  ;;  %v99_v45 = vld [vmem:[%s3202_s2 + $0x158] sm:$0xff]  ;;  %v98_v46 = vld [vmem:[%s3202_s2 + $0x150] sm:$0xff] }
  0x22   :  { %v2211_v8 = vpop.eup %2210  ;;  %v101_v47 = vld [vmem:[%s3202_s2 + $0x168] sm:$0xff]  ;;  %v100_v48 = vld [vmem:[%s3202_s2 + $0x160] sm:$0xff]  ;;  %v103_v49 = vld [vmem:[%s3202_s2 + $0x178] sm:$0xff] }
  0x23   :  { %2200 = vpush %v2211_v8  ;;  %v102_v50 = vld [vmem:[%s3202_s2 + $0x170] sm:$0xff]  ;;  %v105_v51 = vld [vmem:[%s3202_s2 + $0x188] sm:$0xff]  ;;  %v104_v52 = vld [vmem:[%s3202_s2 + $0x180] sm:$0xff] }
  0x25   :  { %153 = vperm.xlu1 %2209, %v65_v11   ;;  %148 = vperm.xlu0 %2208, %v64_v12  }
  0x29   :  { %163 = vperm.xlu1 %2209, %v67_v13   ;;  %158 = vperm.xlu0 %2208, %v66_v14  }
  0x2d   :  { %173 = vperm.xlu1 %2209, %v69_v15   ;;  %168 = vperm.xlu0 %2208, %v68_v16  }
  0x31   :  { %183 = vperm.xlu1 %2209, %v71_v17   ;;  %178 = vperm.xlu0 %2208, %v70_v18  }
  0x35   :  { %193 = vperm.xlu1 %2209, %v73_v19   ;;  %188 = vperm.xlu0 %2208, %v72_v20  }
  0x39   :  { %203 = vperm.xlu1 %2209, %v75_v21   ;;  %198 = vperm.xlu0 %2208, %v74_v22  }
  0x3d   :  { %213 = vperm.xlu1 %2209, %v77_v23   ;;  %208 = vperm.xlu0 %2208, %v76_v24  }
  0x41   :  { %223 = vperm.xlu1 %2209, %v79_v25   ;;  %218 = vperm.xlu0 %2208, %v78_v26  }
  0x45   :  { %233 = vperm.xlu1 %2209, %v81_v27   ;;  %228 = vperm.xlu0 %2208, %v80_v28  }
  0x49   :  { %243 = vperm.xlu1 %2209, %v83_v29   ;;  %238 = vperm.xlu0 %2208, %v82_v30  }
  0x4d   :  { %253 = vperm.xlu1 %2209, %v85_v31   ;;  %248 = vperm.xlu0 %2208, %v84_v32  }
  0x51   :  { %263 = vperm.xlu1 %2209, %v87_v33   ;;  %258 = vperm.xlu0 %2208, %v86_v34  }
  0x54   :  { %s2201_s2 = spop %2200 }
  0x55   :  { %273 = vperm.xlu1 %2209, %v89_v35   ;;  %268 = vperm.xlu0 %2208, %v88_v36   ;;  %v2766_v11 = vstv %s2201_s2 }
  0x59   :  { %283 = vperm.xlu1 %2209, %v91_v37   ;;  %278 = vperm.xlu0 %2208, %v90_v38  }
  0x5d   :  { %293 = vperm.xlu1 %2209, %v93_v39   ;;  %288 = vperm.xlu0 %2208, %v92_v40  }
  0x61   :  { %303 = vperm.xlu1 %2209, %v95_v41   ;;  %298 = vperm.xlu0 %2208, %v94_v42  }
  0x65   :  { %313 = vperm.xlu1 %2209, %v97_v43   ;;  %308 = vperm.xlu0 %2208, %v96_v44  }
  0x69   :  { %323 = vperm.xlu1 %2209, %v99_v45   ;;  %318 = vperm.xlu0 %2208, %v98_v46  }
  0x6d   :  { %333 = vperm.xlu1 %2209, %v101_v47   ;;  %328 = vperm.xlu0 %2208, %v100_v48  }
  0x71   :  { %343 = vperm.xlu1 %2209, %v103_v49   ;;  %338 = vperm.xlu0 %2208, %v102_v50  }
  0x75   :  { %353 = vperm.xlu1 %2209, %v105_v51   ;;  %348 = vperm.xlu0 %2208, %v104_v52  }
  0x94   :  { %v119_v63 = vpop.permute.xlu1 %118  ;;  %v109_v0 = vpop.permute.xlu0 %108 }
  0x95   :  { %v356_v1 = vsub.f32 %v2754_v60, %v109_v0  ;;  %v362_v2 = vsub.f32 %v2754_v60, %v119_v63  ;;  %v357_v3 = vsub.f32 %v2756_v61, %v109_v0  ;;  %v358_v4 = vsub.f32 %v2758_v62, %v109_v0 }
  0x96   :  { %v363_v6 = vsub.f32 %v2756_v61, %v119_v63  ;;  %v364_v7 = vsub.f32 %v2758_v62, %v119_v63 }
  0x97   :  { %v506_v5 = vmul.f32 %v356_v1, %v356_v1  ;;  %v507_v8 = vmul.f32 %v357_v3, %v357_v3  ;;  %v512_v12 = vmul.f32 %v362_v2, %v362_v2  ;;  %v508_v13 = vmul.f32 %v358_v4, %v358_v4 }
  0x98   :  { %v124_v9 = vpop.permute.xlu1 %123  ;;  %v114_v10 = vpop.permute.xlu0 %113  ;;  %v513_v20 = vmul.f32 %v363_v6, %v363_v6  ;;  %v514_v21 = vmul.f32 %v364_v7, %v364_v7 }
  0x99   :  { %v365_v14 = vsub.f32 %v2754_v60, %v124_v9  ;;  %v366_v15 = vsub.f32 %v2756_v61, %v124_v9  ;;  %v656_v16 = vsub.f32 0.0, %v506_v5  ;;  %v359_v17 = vsub.f32 %v2754_v60, %v114_v10 }
  0x9a   :  { %v360_v18 = vsub.f32 %v2756_v61, %v114_v10  ;;  %v361_v19 = vsub.f32 %v2758_v62, %v114_v10  ;;  %v657_v22 = vsub.f32 0.0, %v507_v8  ;;  %v367_v23 = vsub.f32 %v2758_v62, %v124_v9 }
  0x9b   :  { %v515_v24 = vmul.f32 %v365_v14, %v365_v14  ;;  %v509_v25 = vmul.f32 %v359_v17, %v359_v17  ;;  %v658_v28 = vsub.f32 0.0, %v508_v13  ;;  %v516_v29 = vmul.f32 %v366_v15, %v366_v15 }
  0x9c   :  { %v510_v26 = vmul.f32 %v360_v18, %v360_v18  ;;  %v511_v27 = vmul.f32 %v361_v19, %v361_v19  ;;  %v807_v33 = vmul.f32 %v2766_v11, %v656_v16  ;;  %v134_v34 = vpop.permute.xlu1 %133  ;;  %v662_v35 = vsub.f32 0.0, %v512_v12  ;;  %v129_v46 = vpop.permute.xlu0 %128 }
  0x9d   :  { %v659_v30 = vsub.f32 0.0, %v509_v25  ;;  %v663_v36 = vsub.f32 0.0, %v513_v20  ;;  %v808_v37 = vmul.f32 %v2766_v11, %v657_v22  ;;  %v664_v38 = vsub.f32 0.0, %v514_v21 }
  0x9e   :  { %v660_v31 = vsub.f32 0.0, %v510_v26  ;;  %v661_v32 = vsub.f32 0.0, %v511_v27  ;;  %v517_v39 = vmul.f32 %v367_v23, %v367_v23  ;;  %v665_v40 = vsub.f32 0.0, %v515_v24 }
  0x9f   :  { %v810_v41 = vmul.f32 %v2766_v11, %v659_v30  ;;  %v371_v43 = vsub.f32 %v2754_v60, %v134_v34  ;;  %v372_v44 = vsub.f32 %v2756_v61, %v134_v34  ;;  %v373_v45 = vsub.f32 %v2758_v62, %v134_v34 }
  0xa0   :  { %v811_v42 = vmul.f32 %v2766_v11, %v660_v31  ;;  %v666_v47 = vsub.f32 0.0, %v516_v29  ;;  %v809_v48 = vmul.f32 %v2766_v11, %v658_v28  ;;  %v812_v49 = vmul.f32 %v2766_v11, %v661_v32  ;;  %v144_v23 = vpop.permute.xlu1 %143 }
  0xa1   :  { %v957_v50 = vmul.f32 1.442695, %v807_v33  ;;  %v521_v51 = vmul.f32 %v371_v43, %v371_v43  ;;  %v522_v52 = vmul.f32 %v372_v44, %v372_v44  ;;  %v523_v53 = vmul.f32 %v373_v45, %v373_v45  ;;  %v1308_v44 = vld [vmem:[#allocation4 + $0x4c8] sm:$0xff]  ;;  %v1458_v45 = vld [vmem:[#allocation4 + $0x20] sm:$0xff] }
  0xa2   :  { %v959_v54 = vmul.f32 1.442695, %v808_v37  ;;  %v667_v55 = vsub.f32 0.0, %v517_v39  ;;  %v813_v56 = vmul.f32 %v2766_v11, %v662_v35  ;;  %v963_v57 = vmul.f32 1.442695, %v810_v41  ;;  %v1307_v37 = vld [vmem:[#allocation4 + $0x4b0] sm:$0xff] }
  0xa3   :  { %v368_v58 = vsub.f32 %v2754_v60, %v129_v46  ;;  %v671_v59 = vsub.f32 0.0, %v521_v51  ;;  %v672_v63 = vsub.f32 0.0, %v522_v52  ;;  %v673_v0 = vsub.f32 0.0, %v523_v53  ;;  %v1507_v41 = vld [vmem:[#allocation4 + $0x4b8] sm:$0xff] }
  0xa4   :  { %v965_v1 = vmul.f32 1.442695, %v811_v42  ;;  %v814_v2 = vmul.f32 %v2766_v11, %v663_v36  ;;  %v961_v3 = vmul.f32 1.442695, %v809_v48  ;;  %v967_v4 = vmul.f32 1.442695, %v812_v49 }
  0xa5   :  { %2212 = vpow2.f32 %v957_v50  ;;  %v822_v5 = vmul.f32 %v2766_v11, %v671_v59  ;;  %v823_v6 = vmul.f32 %v2766_v11, %v672_v63  ;;  %v824_v7 = vmul.f32 %v2766_v11, %v673_v0  ;;  %v1257_v36 = vld [vmem:[#allocation4] sm:$0xff]  ;;  %v1258_v42 = vld [vmem:[#allocation4 + $0x18] sm:$0xff]  ;;  %v1259_v63 = vld [vmem:[#allocation4 + $0x30] sm:$0xff] }
  0xa6   :  { %2214 = vpow2.f32 %v959_v54  ;;  %v369_v8 = vsub.f32 %v2756_v61, %v129_v46  ;;  %v370_v9 = vsub.f32 %v2758_v62, %v129_v46  ;;  %v518_v10 = vmul.f32 %v368_v58, %v368_v58  ;;  %v1508_v46 = vld [vmem:[#allocation4 + $0x4d0] sm:$0xff] }
  0xa7   :  { %2216 = vpow2.f32 %v963_v57  ;;  %v815_v12 = vmul.f32 %v2766_v11, %v664_v38  ;;  %v987_v13 = vmul.f32 1.442695, %v822_v5  ;;  %v989_v14 = vmul.f32 1.442695, %v823_v6  ;;  %v1757_v0 = vld [vmem:[#allocation4 + $0x10] sm:$0xff]  ;;  %v1309_v6 = vld [vmem:[#allocation4 + $0x4e0] sm:$0xff] }
  0xa8   :  { %2218 = vpow2.f32 %v965_v1  ;;  %v816_v15 = vmul.f32 %v2766_v11, %v665_v40  ;;  %v817_v16 = vmul.f32 %v2766_v11, %v666_v47  ;;  %v969_v17 = vmul.f32 1.442695, %v813_v56  ;;  %v1457_v40 = vld [vmem:[#allocation4 + $0x8] sm:$0xff] }
  0xa9   :  { %2220 = vpow2.f32 %v961_v3  ;;  %v971_v18 = vmul.f32 1.442695, %v814_v2  ;;  %v519_v19 = vmul.f32 %v369_v8, %v369_v8  ;;  %v991_v20 = vmul.f32 1.442695, %v824_v7  ;;  %v1262_v7 = vld [vmem:[#allocation4 + $0x78] sm:$0xff]  ;;  %v1462_v8 = vld [vmem:[#allocation4 + $0x80] sm:$0xff] }
  0xaa   :  { %2222 = vpow2.f32 %v967_v4  ;;  %v520_v21 = vmul.f32 %v370_v9, %v370_v9  ;;  %v668_v22 = vsub.f32 0.0, %v518_v10  ;;  %v818_v24 = vmul.f32 %v2766_v11, %v667_v55 }
  0xab   :  { %2224 = vpow2.f32 %v987_v13  ;;  %v973_v25 = vmul.f32 1.442695, %v815_v12  ;;  %v975_v26 = vmul.f32 1.442695, %v816_v15  ;;  %v977_v27 = vmul.f32 1.442695, %v817_v16 }
  0xac   :  { %2226 = vpow2.f32 %v989_v14  ;;  %v669_v28 = vsub.f32 0.0, %v519_v19  ;;  %v377_v29 = vsub.f32 %v2754_v60, %v144_v23  ;;  %v378_v30 = vsub.f32 %v2756_v61, %v144_v23  ;;  %v1459_v12 = vld [vmem:[#allocation4 + $0x38] sm:$0xff]  ;;  %v1807_v13 = vld [vmem:[#allocation4 + $0x4c0] sm:$0xff]  ;;  %v1758_v19 = vld [vmem:[#allocation4 + $0x28] sm:$0xff] }
  0xad   :  { %2228 = vpow2.f32 %v969_v17  ;;  %v670_v32 = vsub.f32 0.0, %v520_v21  ;;  %v819_v33 = vmul.f32 %v2766_v11, %v668_v22  ;;  %v379_v34 = vsub.f32 %v2758_v62, %v144_v23 }
  0xae   :  { %2230 = vpow2.f32 %v971_v18  ;;  %v979_v38 = vmul.f32 1.442695, %v818_v24  ;;  %v820_v47 = vmul.f32 %v2766_v11, %v669_v28  ;;  %v2800_v48 = vmul.f32 %v377_v29, %v377_v29  ;;  %v1509_v18 = vld [vmem:[#allocation4 + $0x4e8] sm:$0xff] }
  0xaf   :  { %v2213_v31 = vpop.eup %2212  ;;  %2232 = vpow2.f32 %v991_v20  ;;  %v2802_v49 = vmul.f32 %v378_v30, %v378_v30  ;;  %v821_v52 = vmul.f32 %v2766_v11, %v670_v32  ;;  %v981_v53 = vmul.f32 1.442695, %v819_v33  ;;  %v1808_v20 = vld [vmem:[#allocation4 + $0x4d8] sm:$0xff]  ;;  %v1762_v33 = vld [vmem:[#allocation4 + $0x88] sm:$0xff] }
  0xb0   :  { %v2215_v35 = vpop.eup %2214  ;;  %2234 = vpow2.f32 %v973_v25  ;;  %v1357_v51 = vmul.f32 %v2213_v31, %v1257_v36  ;;  %v2805_v54 = vmul.f32 %v379_v34, %v379_v34  ;;  %v1407_v56 = vmul.f32 %v2213_v31, %v1307_v37 }
  0xb1   :  { %v2217_v39 = vpop.eup %2216  ;;  %2236 = vpow2.f32 %v975_v26  ;;  %v1557_v57 = vmul.f32 %v2215_v35, %v1457_v40  ;;  %v1607_v58 = vmul.f32 %v2215_v35, %v1507_v41  ;;  %v983_v9 = vmul.f32 1.442695, %v820_v47  ;;  %v1312_v26 = vld [vmem:[#allocation4 + $0x528] sm:$0xff]  ;;  %v1460_v47 = vld [vmem:[#allocation4 + $0x50] sm:$0xff] }
  0xb2   :  { %v2219_v43 = vpop.eup %2218  ;;  %2238 = vpow2.f32 %v977_v27  ;;  %v1358_v1 = vmul.f32 %v2217_v39, %v1258_v42  ;;  %v1408_v2 = vmul.f32 %v2217_v39, %v1308_v44  ;;  %v985_v14 = vmul.f32 1.442695, %v821_v52  ;;  %v1512_v27 = vld [vmem:[#allocation4 + $0x530] sm:$0xff]  ;;  %v1260_v40 = vld [vmem:[#allocation4 + $0x48] sm:$0xff] }
  0xb3   :  { %v2221_v50 = vpop.eup %2220  ;;  %2240 = vpow2.f32 %v979_v38  ;;  %v1558_v3 = vmul.f32 %v2219_v43, %v1458_v45  ;;  %v1608_v4 = vmul.f32 %v2219_v43, %v1508_v46  ;;  %v677_v15 = vsub.f32 0.0, %v2800_v48  ;;  %v1759_v38 = vld [vmem:[#allocation4 + $0x40] sm:$0xff]  ;;  %v1809_v39 = vld [vmem:[#allocation4 + $0x4f0] sm:$0xff]  ;;  %v1310_v46 = vld [vmem:[#allocation4 + $0x4f8] sm:$0xff] }
  0xb4   :  { %v2223_v55 = vpop.eup %2222  ;;  %2242 = vpow2.f32 %v981_v53  ;;  %v678_v16 = vsub.f32 0.0, %v2802_v49  ;;  %v1657_v21 = vadd.f32 %v1557_v57, %v1357_v51  ;;  %v1707_v22 = vadd.f32 %v1607_v58, %v1407_v56  ;;  %v1510_v48 = vld [vmem:[#allocation4 + $0x500] sm:$0xff]  ;;  %v1812_v56 = vld [vmem:[#allocation4 + $0x538] sm:$0xff] }
  0xb5   :  { %v2225_v59 = vpop.eup %2224  ;;  %v1857_v23 = vmul.f32 %v2221_v50, %v1757_v0  ;;  %v679_v24 = vsub.f32 0.0, %v2805_v54  ;;  %v1658_v30 = vadd.f32 %v1558_v3, %v1358_v1  ;;  %v1708_v31 = vadd.f32 %v1608_v4, %v1408_v2 }
  0xb6   :  { %v2227_v5 = vpop.eup %2226  ;;  %v1362_v28 = vmul.f32 %v2225_v59, %v1262_v7  ;;  %v1907_v36 = vmul.f32 %v2221_v50, %v1807_v13  ;;  %2244 = vpow2.f32 %v983_v9  ;;  %v1858_v43 = vmul.f32 %v2223_v55, %v1758_v19  ;;  %v139_v13 = vpop.permute.xlu0 %138  ;;  %v1261_v19 = vld [vmem:[#allocation4 + $0x60] sm:$0xff] }
  0xb7   :  { %v2229_v10 = vpop.eup %2228  ;;  %v1562_v29 = vmul.f32 %v2227_v5, %v1462_v8  ;;  %v1908_v44 = vmul.f32 %v2223_v55, %v1808_v20  ;;  %v1412_v51 = vmul.f32 %v2225_v59, %v1312_v26  ;;  %v1612_v52 = vmul.f32 %v2227_v5, %v1512_v27  ;;  %v1810_v55 = vld [vmem:[#allocation4 + $0x508] sm:$0xff]  ;;  %v1311_v26 = vld [vmem:[#allocation4 + $0x510] sm:$0xff] }
  0xb8   :  { %v2231_v17 = vpop.eup %2230  ;;  %v1359_v34 = vmul.f32 %v2229_v10, %v1259_v63  ;;  %v1409_v41 = vmul.f32 %v2229_v10, %v1309_v6  ;;  %v1957_v53 = vadd.f32 %v1857_v23, %v1657_v21  ;;  %v2007_v54 = vadd.f32 %v1907_v36, %v1707_v22  ;;  %v1760_v6 = vld [vmem:[#allocation4 + $0x58] sm:$0xff]  ;;  %v154_v23 = vpop.permute.xlu1 %153 }
  0xb9   :  { %v2233_v25 = vpop.eup %2232  ;;  %v1559_v35 = vmul.f32 %v2231_v17, %v1459_v12  ;;  %v1609_v42 = vmul.f32 %v2231_v17, %v1509_v18  ;;  %v1662_v57 = vadd.f32 %v1562_v29, %v1362_v28  ;;  %v1958_v58 = vadd.f32 %v1858_v43, %v1658_v30  ;;  %v1511_v36 = vld [vmem:[#allocation4 + $0x518] sm:$0xff] }
  0xba   :  { %v2235_v32 = vpop.eup %2234  ;;  %v1862_v50 = vmul.f32 %v2233_v25, %v1762_v33  ;;  %v2008_v63 = vadd.f32 %v1908_v44, %v1708_v31  ;;  %v2810_v59 = vadd.f32 %v1612_v52, %v1412_v51  ;;  %v2812_v5 = vmul.f32 %v2233_v25, %v1812_v56  ;;  %v1461_v33 = vld [vmem:[#allocation4 + $0x68] sm:$0xff]  ;;  %v149_v44 = vpop.permute.xlu0 %148 }
  0xbb   :  { %v2237_v37 = vpop.eup %2236  ;;  %v1659_v2 = vadd.f32 %v1559_v35, %v1359_v34  ;;  %v1859_v3 = vmul.f32 %v2235_v32, %v1759_v38  ;;  %v1909_v4 = vmul.f32 %v2235_v32, %v1809_v39  ;;  %v1709_v10 = vadd.f32 %v1609_v42, %v1409_v41 }
  0xbc   :  { %v2239_v45 = vpop.eup %2238  ;;  %v1360_v1 = vmul.f32 %v2237_v37, %v1260_v40  ;;  %v1410_v7 = vmul.f32 %v2237_v37, %v1310_v46  ;;  %2246 = vpow2.f32 %v985_v14  ;;  %v828_v12 = vmul.f32 %v2766_v11, %v677_v15 }
  0xbd   :  { %v2241_v0 = vpop.eup %2240  ;;  %v1560_v8 = vmul.f32 %v2239_v45, %v1460_v47  ;;  %v1610_v9 = vmul.f32 %v2239_v45, %v1510_v48  ;;  %v2815_v18 = vadd.f32 %v1862_v50, %v1662_v57  ;;  %v2058_v20 = vadd.f32 %v1958_v58, %v1957_v53 }
  0xbe   :  { %v2243_v17 = vpop.eup %2242  ;;  %v2113_v21 = vadd.f32 %v2008_v63, %v2007_v54  ;;  %v829_v22 = vmul.f32 %v2766_v11, %v678_v16  ;;  %v1860_v27 = vmul.f32 %v2241_v0, %v1760_v6  ;;  %v1910_v28 = vmul.f32 %v2241_v0, %v1810_v55 }
  0xbf   :  { %v1959_v25 = vadd.f32 %v1859_v3, %v1659_v2  ;;  %v830_v14 = vmul.f32 %v2766_v11, %v679_v24  ;;  %v1660_v29 = vadd.f32 %v1560_v8, %v1360_v1  ;;  %v1710_v15 = vadd.f32 %v1610_v9, %v1410_v7  ;;  %v1761_v7 = vld [vmem:[#allocation4 + $0x70] sm:$0xff]  ;;  %v1811_v8 = vld [vmem:[#allocation4 + $0x520] sm:$0xff] }
  0xc0   :  { %v2009_v30 = vadd.f32 %v1909_v4, %v1709_v10  ;;  %v374_v31 = vsub.f32 %v2754_v60, %v139_v13  ;;  %v2245_v32 = vpop.eup %2244  ;;  %v1361_v34 = vmul.f32 %v2243_v17, %v1261_v19  ;;  %v375_v35 = vsub.f32 %v2756_v61, %v139_v13 }
  0xc1   :  { %v376_v49 = vsub.f32 %v2758_v62, %v139_v13  ;;  %v383_v16 = vsub.f32 %v2754_v60, %v154_v23  ;;  %v2059_v37 = vadd.f32 %v2058_v20, %v1959_v25  ;;  %v1411_v38 = vmul.f32 %v2243_v17, %v1311_v26 }
  0xc2   :  { %v524_v39 = vmul.f32 %v374_v31, %v374_v31  ;;  %v384_v24 = vsub.f32 %v2756_v61, %v154_v23  ;;  %v525_v40 = vmul.f32 %v375_v35, %v375_v35  ;;  %v385_v42 = vsub.f32 %v2758_v62, %v154_v23  ;;  %v164_v23 = vpop.permute.xlu1 %163 }
  0xc3   :  { %v526_v41 = vmul.f32 %v376_v49, %v376_v49  ;;  %v533_v43 = vmul.f32 %v383_v16, %v383_v16  ;;  %v2114_v45 = vadd.f32 %v2113_v21, %v2009_v30  ;;  %v1561_v46 = vmul.f32 %v2245_v32, %v1461_v33 }
  0xc4   :  { %v999_v47 = vmul.f32 1.442695, %v828_v12  ;;  %v674_v48 = vsub.f32 0.0, %v524_v39  ;;  %v1611_v51 = vmul.f32 %v2245_v32, %v1511_v36  ;;  %v1001_v52 = vmul.f32 1.442695, %v829_v22 }
  0xc5   :  { %v675_v53 = vsub.f32 0.0, %v525_v40  ;;  %v676_v54 = vsub.f32 0.0, %v526_v41  ;;  %v1960_v56 = vadd.f32 %v1860_v27, %v1660_v29  ;;  %v534_v50 = vmul.f32 %v384_v24, %v384_v24  ;;  %v1264_v40 = vld [vmem:[#allocation4 + $0xa8] sm:$0xff] }
  0xc6   :  { %v825_v57 = vmul.f32 %v2766_v11, %v674_v48  ;;  %v380_v58 = vsub.f32 %v2754_v60, %v149_v44  ;;  %v2247_v63 = vpop.eup %2246  ;;  %v2010_v0 = vadd.f32 %v1910_v28, %v1710_v15  ;;  %v535_v2 = vmul.f32 %v385_v42, %v385_v42 }
  0xc7   :  { %v826_v1 = vmul.f32 %v2766_v11, %v675_v53  ;;  %v683_v3 = vsub.f32 0.0, %v533_v43  ;;  %2248 = vpow2.f32 %v999_v47  ;;  %v1003_v4 = vmul.f32 1.442695, %v830_v14  ;;  %v159_v43 = vpop.permute.xlu0 %158  ;;  %v1464_v53 = vld [vmem:[#allocation4 + $0xb0] sm:$0xff] }
  0xc8   :  { %v993_v6 = vmul.f32 1.442695, %v825_v57  ;;  %v381_v55 = vsub.f32 %v2756_v61, %v149_v44  ;;  %2250 = vpow2.f32 %v1001_v52  ;;  %v827_v9 = vmul.f32 %v2766_v11, %v676_v54  ;;  %v1314_v52 = vld [vmem:[#allocation4 + $0x558] sm:$0xff]  ;;  %v1514_v54 = vld [vmem:[#allocation4 + $0x560] sm:$0xff] }
  0xc9   :  { %v995_v10 = vmul.f32 1.442695, %v826_v1  ;;  %v382_v12 = vsub.f32 %v2758_v62, %v149_v44  ;;  %v1661_v13 = vadd.f32 %v1561_v46, %v1361_v34  ;;  %v684_v17 = vsub.f32 0.0, %v534_v50 }
  0xca   :  { %2252 = vpow2.f32 %v993_v6  ;;  %v530_v19 = vmul.f32 %v380_v58, %v380_v58  ;;  %v1711_v20 = vadd.f32 %v1611_v51, %v1411_v38  ;;  %v685_v21 = vsub.f32 0.0, %v535_v2  ;;  %v1463_v6 = vld [vmem:[#allocation4 + $0x98] sm:$0xff] }
  0xcb   :  { %2254 = vpow2.f32 %v995_v10  ;;  %v834_v22 = vmul.f32 %v2766_v11, %v683_v3  ;;  %v2060_v26 = vadd.f32 %v2059_v37, %v1960_v56  ;;  %v1861_v27 = vmul.f32 %v2247_v63, %v1761_v7 }
  0xcc   :  { %v1911_v28 = vmul.f32 %v2247_v63, %v1811_v8  ;;  %v531_v25 = vmul.f32 %v381_v55, %v381_v55  ;;  %v2115_v14 = vadd.f32 %v2114_v45, %v2010_v0  ;;  %2256 = vpow2.f32 %v1003_v4  ;;  %v1263_v4 = vld [vmem:[#allocation4 + $0x90] sm:$0xff] }
  0xcd   :  { %v997_v29 = vmul.f32 1.442695, %v827_v9  ;;  %v532_v15 = vmul.f32 %v382_v12, %v382_v12  ;;  %v835_v30 = vmul.f32 %v2766_v11, %v684_v17  ;;  %v680_v31 = vsub.f32 0.0, %v530_v19  ;;  %v1313_v12 = vld [vmem:[#allocation4 + $0x540] sm:$0xff] }
  0xce   :  { %v681_v32 = vsub.f32 0.0, %v531_v25  ;;  %v389_v33 = vsub.f32 %v2754_v60, %v164_v23  ;;  %v1961_v34 = vadd.f32 %v1861_v27, %v1661_v13  ;;  %v836_v35 = vmul.f32 %v2766_v11, %v685_v21  ;;  %v1513_v13 = vld [vmem:[#allocation4 + $0x548] sm:$0xff] }
  0xcf   :  { %v1011_v49 = vmul.f32 1.442695, %v834_v22  ;;  %v682_v16 = vsub.f32 0.0, %v532_v15  ;;  %v2011_v36 = vadd.f32 %v1911_v28, %v1711_v20  ;;  %v831_v37 = vmul.f32 %v2766_v11, %v680_v31  ;;  %v1764_v22 = vld [vmem:[#allocation4 + $0xb8] sm:$0xff] }
  0xd0   :  { %v832_v38 = vmul.f32 %v2766_v11, %v681_v32  ;;  %v390_v39 = vsub.f32 %v2756_v61, %v164_v23  ;;  %v2061_v24 = vadd.f32 %v2060_v26, %v1961_v34  ;;  %2258 = vpow2.f32 %v997_v29 }
  0xd1   :  { %v391_v41 = vsub.f32 %v2758_v62, %v164_v23  ;;  %v539_v42 = vmul.f32 %v389_v33, %v389_v33  ;;  %v2249_v44 = vpop.eup %2248  ;;  %v1013_v45 = vmul.f32 1.442695, %v835_v30  ;;  %v1005_v46 = vmul.f32 1.442695, %v831_v37  ;;  %v1814_v23 = vld [vmem:[#allocation4 + $0x568] sm:$0xff] }
  0xd2   :  { %v1007_v47 = vmul.f32 1.442695, %v832_v38  ;;  %v540_v48 = vmul.f32 %v390_v39, %v390_v39  ;;  %v2251_v51 = vpop.eup %2250  ;;  %2260 = vpow2.f32 %v1011_v49  ;;  %v1015_v56 = vmul.f32 1.442695, %v836_v35  ;;  %v1813_v38 = vld [vmem:[#allocation4 + $0x550] sm:$0xff] }
  0xd3   :  { %v833_v57 = vmul.f32 %v2766_v11, %v682_v16  ;;  %v689_v50 = vsub.f32 0.0, %v539_v42  ;;  %v2116_v63 = vadd.f32 %v2115_v14, %v2011_v36  ;;  %2262 = vpow2.f32 %v1005_v46  ;;  %v1763_v36 = vld [vmem:[#allocation4 + $0xa0] sm:$0xff] }
  0xd4   :  { %v2253_v58 = vpop.eup %2252  ;;  %v690_v0 = vsub.f32 0.0, %v540_v48  ;;  %v386_v1 = vsub.f32 %v2754_v60, %v159_v43  ;;  %v1364_v3 = vmul.f32 %v2249_v44, %v1264_v40  ;;  %2264 = vpow2.f32 %v1007_v47 }
  0xd5   :  { %v2255_v2 = vpop.eup %2254  ;;  %v541_v55 = vmul.f32 %v391_v41, %v391_v41  ;;  %v387_v7 = vsub.f32 %v2756_v61, %v159_v43  ;;  %v1414_v8 = vmul.f32 %v2249_v44, %v1314_v52  ;;  %v1564_v9 = vmul.f32 %v2251_v51, %v1464_v53  ;;  %v1265_v52 = vld [vmem:[#allocation4 + $0xc0] sm:$0xff] }
  0xd6   :  { %v1614_v10 = vmul.f32 %v2251_v51, %v1514_v54  ;;  %2266 = vpow2.f32 %v1013_v45  ;;  %v2257_v17 = vpop.eup %2256  ;;  %v1009_v19 = vmul.f32 1.442695, %v833_v57  ;;  %v840_v20 = vmul.f32 %v2766_v11, %v689_v50  ;;  %v1315_v57 = vld [vmem:[#allocation4 + $0x570] sm:$0xff]  ;;  %v1465_v50 = vld [vmem:[#allocation4 + $0xc8] sm:$0xff] }
  0xd7   :  { %2268 = vpow2.f32 %v1015_v56  ;;  %v388_v21 = vsub.f32 %v2758_v62, %v159_v43  ;;  %v1363_v26 = vmul.f32 %v2253_v58, %v1263_v4  ;;  %v1563_v27 = vmul.f32 %v2255_v2, %v1463_v6  ;;  %v174_v43 = vpop.permute.xlu1 %173 }
  0xd8   :  { %v841_v28 = vmul.f32 %v2766_v11, %v690_v0  ;;  %v536_v25 = vmul.f32 %v386_v1, %v386_v1  ;;  %v1413_v14 = vmul.f32 %v2253_v58, %v1313_v12  ;;  %v1613_v29 = vmul.f32 %v2255_v2, %v1513_v13  ;;  %v1515_v58 = vld [vmem:[#allocation4 + $0x578] sm:$0xff] }
  0xd9   :  { %v691_v15 = vsub.f32 0.0, %v541_v55  ;;  %v537_v30 = vmul.f32 %v387_v7, %v387_v7  ;;  %v2012_v31 = vadd.f32 %v2812_v5, %v2810_v59  ;;  %v1664_v32 = vadd.f32 %v1564_v9, %v1364_v3  ;;  %v1266_v59 = vld [vmem:[#allocation4 + $0xd8] sm:$0xff]  ;;  %v1316_v7 = vld [vmem:[#allocation4 + $0x588] sm:$0xff]  ;;  %v1516_v9 = vld [vmem:[#allocation4 + $0x590] sm:$0xff] }
  0xda   :  { %v1714_v33 = vadd.f32 %v1614_v10, %v1414_v8  ;;  %v2062_v34 = vadd.f32 %v2061_v24, %v2815_v18  ;;  %v2259_v35 = vpop.eup %2258  ;;  %v1864_v49 = vmul.f32 %v2257_v17, %v1764_v22  ;;  %v1914_v16 = vmul.f32 %v2257_v17, %v1814_v23  ;;  %v1466_v8 = vld [vmem:[#allocation4 + $0xe0] sm:$0xff]  ;;  %v1766_v17 = vld [vmem:[#allocation4 + $0xe8] sm:$0xff] }
  0xdb   :  { %2270 = vpow2.f32 %v1009_v19  ;;  %v1023_v37 = vmul.f32 1.442695, %v840_v20  ;;  %v1663_v39 = vadd.f32 %v1563_v27, %v1363_v26  ;;  %v1025_v40 = vmul.f32 1.442695, %v841_v28 }
  0xdc   :  { %v538_v41 = vmul.f32 %v388_v21, %v388_v21  ;;  %v686_v42 = vsub.f32 0.0, %v536_v25  ;;  %v2261_v44 = vpop.eup %2260  ;;  %v2117_v45 = vadd.f32 %v2116_v63, %v2012_v31  ;;  %v1713_v46 = vadd.f32 %v1613_v29, %v1413_v14 }
  0xdd   :  { %v842_v5 = vmul.f32 %v2766_v11, %v691_v15  ;;  %v687_v47 = vsub.f32 0.0, %v537_v30  ;;  %v2263_v18 = vpop.eup %2262  ;;  %v2851_v24 = vadd.f32 %v1864_v49, %v1664_v32  ;;  %v2853_v48 = vadd.f32 %v1914_v16, %v1714_v33  ;;  %v169_v30 = vpop.permute.xlu0 %168  ;;  %v1765_v16 = vld [vmem:[#allocation4 + $0xd0] sm:$0xff] }
  0xde   :  { %v1863_v51 = vmul.f32 %v2259_v35, %v1763_v36  ;;  %v837_v53 = vmul.f32 %v2766_v11, %v686_v42  ;;  %v2265_v54 = vpop.eup %2264  ;;  %v1913_v56 = vmul.f32 %v2259_v35, %v1813_v38  ;;  %2272 = vpow2.f32 %v1023_v37  ;;  %v1816_v35 = vld [vmem:[#allocation4 + $0x598] sm:$0xff]  ;;  %v1815_v36 = vld [vmem:[#allocation4 + $0x580] sm:$0xff] }
  0xdf   :  { %v838_v63 = vmul.f32 %v2766_v11, %v687_v47  ;;  %v395_v0 = vsub.f32 %v2754_v60, %v174_v43  ;;  %v1366_v3 = vmul.f32 %v2261_v44, %v1266_v59  ;;  %2274 = vpow2.f32 %v1025_v40 }
  0xe0   :  { %v2267_v1 = vpop.eup %2266  ;;  %v1963_v2 = vadd.f32 %v1863_v51, %v1663_v39  ;;  %v688_v4 = vsub.f32 0.0, %v538_v41  ;;  %v2013_v55 = vadd.f32 %v1913_v56, %v1713_v46  ;;  %v1365_v10 = vmul.f32 %v2263_v18, %v1265_v52  ;;  %v1268_v51 = vld [vmem:[#allocation4 + $0x108] sm:$0xff]  ;;  %v184_v52 = vpop.permute.xlu1 %183 }
  0xe1   :  { %v2269_v6 = vpop.eup %2268  ;;  %v1027_v12 = vmul.f32 1.442695, %v842_v5  ;;  %v396_v13 = vsub.f32 %v2756_v61, %v174_v43  ;;  %v1415_v19 = vmul.f32 %v2263_v18, %v1315_v57  ;;  %v1565_v20 = vmul.f32 %v2265_v54, %v1465_v50  ;;  %v1318_v57 = vld [vmem:[#allocation4 + $0x5b8] sm:$0xff]  ;;  %v1468_v50 = vld [vmem:[#allocation4 + $0x110] sm:$0xff] }
  0xe2   :  { %v1615_v21 = vmul.f32 %v2265_v54, %v1515_v58  ;;  %v1017_v22 = vmul.f32 1.442695, %v837_v53  ;;  %v1019_v23 = vmul.f32 1.442695, %v838_v63  ;;  %v397_v26 = vsub.f32 %v2758_v62, %v174_v43 }
  0xe3   :  { %v545_v27 = vmul.f32 %v395_v0, %v395_v0  ;;  %v546_v28 = vmul.f32 %v396_v13, %v396_v13  ;;  %v1416_v25 = vmul.f32 %v2261_v44, %v1316_v7  ;;  %v1566_v14 = vmul.f32 %v2267_v1, %v1466_v8  ;;  %v1518_v0 = vld [vmem:[#allocation4 + $0x5c0] sm:$0xff] }
  0xe4   :  { %v1616_v29 = vmul.f32 %v2267_v1, %v1516_v9  ;;  %v839_v15 = vmul.f32 %v2766_v11, %v688_v4  ;;  %v2063_v32 = vadd.f32 %v2062_v34, %v1963_v2  ;;  %v2118_v33 = vadd.f32 %v2117_v45, %v2013_v55 }
  0xe5   :  { %v2271_v31 = vpop.eup %2270  ;;  %v1866_v49 = vmul.f32 %v2269_v6, %v1766_v17  ;;  %2276 = vpow2.f32 %v1027_v12  ;;  %v1665_v37 = vadd.f32 %v1565_v20, %v1365_v10  ;;  %v1715_v38 = vadd.f32 %v1615_v21, %v1415_v19 }
  0xe6   :  { %2278 = vpow2.f32 %v1017_v22  ;;  %v695_v39 = vsub.f32 0.0, %v545_v27  ;;  %v547_v40 = vmul.f32 %v397_v26, %v397_v26  ;;  %v696_v41 = vsub.f32 0.0, %v546_v28 }
  0xe7   :  { %2280 = vpow2.f32 %v1019_v23  ;;  %v392_v42 = vsub.f32 %v2754_v60, %v169_v30  ;;  %v1916_v43 = vmul.f32 %v2269_v6, %v1816_v35  ;;  %v1865_v44 = vmul.f32 %v2271_v31, %v1765_v16 }
  0xe8   :  { %v1915_v46 = vmul.f32 %v2271_v31, %v1815_v36  ;;  %v1021_v59 = vmul.f32 1.442695, %v839_v15  ;;  %v2273_v34 = vpop.eup %2272  ;;  %v1666_v45 = vadd.f32 %v1566_v14, %v1366_v3  ;;  %v1716_v5 = vadd.f32 %v1616_v29, %v1416_v25  ;;  %v1768_v14 = vld [vmem:[#allocation4 + $0x118] sm:$0xff]  ;;  %v1818_v31 = vld [vmem:[#allocation4 + $0x5c8] sm:$0xff] }
  0xe9   :  { %v2064_v47 = vadd.f32 %v2063_v32, %v2851_v24  ;;  %v2119_v18 = vadd.f32 %v2118_v33, %v2853_v48  ;;  %v2275_v53 = vpop.eup %2274  ;;  %v1965_v54 = vadd.f32 %v1865_v44, %v1665_v37  ;;  %v846_v58 = vmul.f32 %v2766_v11, %v695_v39  ;;  %v1267_v32 = vld [vmem:[#allocation4 + $0xf0] sm:$0xff]  ;;  %v1467_v33 = vld [vmem:[#allocation4 + $0xf8] sm:$0xff]  ;;  %v1317_v44 = vld [vmem:[#allocation4 + $0x5a0] sm:$0xff] }
  0xea   :  { %v2015_v56 = vadd.f32 %v1915_v46, %v1715_v38  ;;  %v393_v63 = vsub.f32 %v2756_v61, %v169_v30  ;;  %v697_v1 = vsub.f32 0.0, %v547_v40  ;;  %v847_v2 = vmul.f32 %v2766_v11, %v696_v41  ;;  %v1517_v46 = vld [vmem:[#allocation4 + $0x5a8] sm:$0xff] }
  0xeb   :  { %v394_v3 = vsub.f32 %v2758_v62, %v169_v30  ;;  %v542_v24 = vmul.f32 %v392_v42, %v392_v42  ;;  %v1368_v4 = vmul.f32 %v2273_v34, %v1268_v51  ;;  %2282 = vpow2.f32 %v1021_v59  ;;  %v179_v42 = vpop.permute.xlu0 %178 }
  0xec   :  { %v543_v48 = vmul.f32 %v393_v63, %v393_v63  ;;  %v401_v6 = vsub.f32 %v2754_v60, %v184_v52  ;;  %v1418_v55 = vmul.f32 %v2273_v34, %v1318_v57  ;;  %v1568_v7 = vmul.f32 %v2275_v53, %v1468_v50 }
  0xed   :  { %v544_v8 = vmul.f32 %v394_v3, %v394_v3  ;;  %v402_v9 = vsub.f32 %v2756_v61, %v184_v52  ;;  %v1618_v10 = vmul.f32 %v2275_v53, %v1518_v0  ;;  %v1035_v12 = vmul.f32 1.442695, %v846_v58  ;;  %v1767_v53 = vld [vmem:[#allocation4 + $0x100] sm:$0xff] }
  0xee   :  { %v692_v13 = vsub.f32 0.0, %v542_v24  ;;  %v693_v17 = vsub.f32 0.0, %v543_v48  ;;  %v848_v20 = vmul.f32 %v2766_v11, %v697_v1  ;;  %v1037_v21 = vmul.f32 1.442695, %v847_v2  ;;  %v1817_v2 = vld [vmem:[#allocation4 + $0x5b0] sm:$0xff]  ;;  %v194_v48 = vpop.permute.xlu1 %193 }
  0xef   :  { %v2277_v19 = vpop.eup %2276  ;;  %v403_v22 = vsub.f32 %v2758_v62, %v184_v52  ;;  %v551_v23 = vmul.f32 %v401_v6, %v401_v6  ;;  %v1966_v27 = vadd.f32 %v1866_v49, %v1666_v45  ;;  %v2016_v28 = vadd.f32 %v1916_v43, %v1716_v5 }
  0xf0   :  { %v2279_v26 = vpop.eup %2278  ;;  %v2065_v25 = vadd.f32 %v2064_v47, %v1965_v54  ;;  %v694_v29 = vsub.f32 0.0, %v544_v8  ;;  %v2120_v30 = vadd.f32 %v2119_v18, %v2015_v56  ;;  %v843_v35 = vmul.f32 %v2766_v11, %v692_v13 }
  0xf1   :  { %v2281_v15 = vpop.eup %2280  ;;  %v552_v16 = vmul.f32 %v402_v9, %v402_v9  ;;  %v553_v36 = vmul.f32 %v403_v22, %v403_v22  ;;  %v1668_v37 = vadd.f32 %v1568_v7, %v1368_v4  ;;  %v2873_v38 = vadd.f32 %v1618_v10, %v1418_v55  ;;  %v1270_v22 = vld [vmem:[#allocation4 + $0x138] sm:$0xff] }
  0xf2   :  { %2284 = vpow2.f32 %v1035_v12  ;;  %v844_v39 = vmul.f32 %v2766_v11, %v693_v17  ;;  %v1868_v49 = vmul.f32 %v2277_v19, %v1768_v14  ;;  %v1039_v40 = vmul.f32 1.442695, %v848_v20  ;;  %v1520_v14 = vld [vmem:[#allocation4 + $0x5f0] sm:$0xff] }
  0xf3   :  { %2286 = vpow2.f32 %v1037_v21  ;;  %v701_v41 = vsub.f32 0.0, %v551_v23  ;;  %v2876_v43 = vmul.f32 %v2277_v19, %v1818_v31  ;;  %v1367_v59 = vmul.f32 %v2279_v26, %v1267_v32  ;;  %v1320_v23 = vld [vmem:[#allocation4 + $0x5e8] sm:$0xff] }
  0xf4   :  { %v1567_v34 = vmul.f32 %v2281_v15, %v1467_v33  ;;  %v845_v45 = vmul.f32 %v2766_v11, %v694_v29  ;;  %v2879_v5 = vadd.f32 %v2065_v25, %v1966_v27  ;;  %v1029_v47 = vmul.f32 1.442695, %v843_v35  ;;  %v1470_v25 = vld [vmem:[#allocation4 + $0x140] sm:$0xff] }
  0xf5   :  { %v702_v18 = vsub.f32 0.0, %v552_v16  ;;  %v703_v51 = vsub.f32 0.0, %v553_v36  ;;  %v2283_v52 = vpop.eup %2282  ;;  %v1031_v54 = vmul.f32 1.442695, %v844_v39  ;;  %v398_v56 = vsub.f32 %v2754_v60, %v179_v42  ;;  %v189_v36 = vpop.permute.xlu0 %188 }
  0xf6   :  { %v399_v57 = vsub.f32 %v2756_v61, %v179_v42  ;;  %v400_v50 = vsub.f32 %v2758_v62, %v179_v42  ;;  %v1417_v58 = vmul.f32 %v2279_v26, %v1317_v44  ;;  %v1617_v63 = vmul.f32 %v2281_v15, %v1517_v46 }
  0xf7   :  { %2288 = vpow2.f32 %v1039_v40  ;;  %v852_v0 = vmul.f32 %v2766_v11, %v701_v41  ;;  %v2885_v1 = vadd.f32 %v1868_v49, %v1668_v37  ;;  %v2121_v3 = vadd.f32 %v2120_v30, %v2016_v28 }
  0xf8   :  { %v1667_v24 = vadd.f32 %v1567_v34, %v1367_v59  ;;  %v1033_v4 = vmul.f32 1.442695, %v845_v45  ;;  %v1867_v6 = vmul.f32 %v2283_v52, %v1767_v53  ;;  %2290 = vpow2.f32 %v1029_v47  ;;  %v1770_v34 = vld [vmem:[#allocation4 + $0x148] sm:$0xff] }
  0xf9   :  { %v853_v55 = vmul.f32 %v2766_v11, %v702_v18  ;;  %v854_v7 = vmul.f32 %v2766_v11, %v703_v51  ;;  %2292 = vpow2.f32 %v1031_v54  ;;  %v548_v8 = vmul.f32 %v398_v56, %v398_v56 }
  0xfa   :  { %v549_v9 = vmul.f32 %v399_v57, %v399_v57  ;;  %v550_v10 = vmul.f32 %v400_v50, %v400_v50  ;;  %v1717_v12 = vadd.f32 %v1617_v63, %v1417_v58  ;;  %v1917_v13 = vmul.f32 %v2283_v52, %v1817_v2  ;;  %v1820_v50 = vld [vmem:[#allocation4 + $0x5f8] sm:$0xff]  ;;  %v1269_v58 = vld [vmem:[#allocation4 + $0x120] sm:$0xff] }
  0xfb   :  { %v1047_v17 = vmul.f32 1.442695, %v852_v0  ;;  %v407_v19 = vsub.f32 %v2754_v60, %v194_v48  ;;  %v1967_v21 = vadd.f32 %v1867_v6, %v1667_v24  ;;  %2294 = vpow2.f32 %v1033_v4  ;;  %v1319_v4 = vld [vmem:[#allocation4 + $0x5d0] sm:$0xff]  ;;  %v1519_v6 = vld [vmem:[#allocation4 + $0x5d8] sm:$0xff] }
  0xfc   :  { %v2285_v20 = vpop.eup %2284  ;;  %v698_v26 = vsub.f32 0.0, %v548_v8  ;;  %v699_v27 = vsub.f32 0.0, %v549_v9  ;;  %v1049_v29 = vmul.f32 1.442695, %v853_v55  ;;  %v1051_v15 = vmul.f32 1.442695, %v854_v7 }
  0xfd   :  { %v2287_v28 = vpop.eup %2286  ;;  %v408_v30 = vsub.f32 %v2756_v61, %v194_v48  ;;  %v557_v31 = vmul.f32 %v407_v19, %v407_v19  ;;  %v700_v32 = vsub.f32 0.0, %v550_v10  ;;  %v409_v16 = vsub.f32 %v2758_v62, %v194_v48  ;;  %v1469_v48 = vld [vmem:[#allocation4 + $0x128] sm:$0xff] }
  0xfe   :  { %v849_v33 = vmul.f32 %v2766_v11, %v698_v26  ;;  %v850_v35 = vmul.f32 %v2766_v11, %v699_v27  ;;  %v1370_v37 = vmul.f32 %v2285_v20, %v1270_v22  ;;  %v1420_v39 = vmul.f32 %v2285_v20, %v1320_v23 }
  0xff   :  { %2296 = vpow2.f32 %v1047_v17  ;;  %v558_v49 = vmul.f32 %v408_v30, %v408_v30  ;;  %v1570_v40 = vmul.f32 %v2287_v28, %v1470_v25  ;;  %v1620_v41 = vmul.f32 %v2287_v28, %v1520_v14  ;;  %v1819_v28 = vld [vmem:[#allocation4 + $0x5e0] sm:$0xff]  ;;  %v1272_v25 = vld [vmem:[#allocation4 + $0x168] sm:$0xff] }
 0x100   :  { %v1041_v42 = vmul.f32 1.442695, %v849_v33  ;;  %v1043_v44 = vmul.f32 1.442695, %v850_v35  ;;  %v2017_v59 = vadd.f32 %v1917_v13, %v1717_v12  ;;  %2298 = vpow2.f32 %v1049_v29  ;;  %v1769_v12 = vld [vmem:[#allocation4 + $0x130] sm:$0xff] }
 0x101   :  { %v2289_v46 = vpop.eup %2288  ;;  %v707_v45 = vsub.f32 0.0, %v557_v31  ;;  %v404_v47 = vsub.f32 %v2754_v60, %v189_v36  ;;  %2300 = vpow2.f32 %v1051_v15  ;;  %v851_v18 = vmul.f32 %v2766_v11, %v700_v32  ;;  %v204_v31 = vpop.permute.xlu1 %203 }
 0x102   :  { %v559_v51 = vmul.f32 %v409_v16, %v409_v16  ;;  %v708_v52 = vsub.f32 0.0, %v558_v49  ;;  %v2291_v53 = vpop.eup %2290  ;;  %v2018_v54 = vadd.f32 %v2876_v43, %v2873_v38  ;;  %v2067_v56 = vadd.f32 %v2879_v5, %v1967_v21 }
 0x103   :  { %v2122_v57 = vadd.f32 %v2121_v3, %v2017_v59  ;;  %2302 = vpow2.f32 %v1041_v42  ;;  %v2293_v63 = vpop.eup %2292  ;;  %v1670_v0 = vadd.f32 %v1570_v40, %v1370_v37  ;;  %v1720_v2 = vadd.f32 %v1620_v41, %v1420_v39  ;;  %v1322_v39 = vld [vmem:[#allocation4 + $0x618] sm:$0xff]  ;;  %v1472_v42 = vld [vmem:[#allocation4 + $0x170] sm:$0xff] }
 0x104   :  { %v1870_v24 = vmul.f32 %v2289_v46, %v1770_v34  ;;  %2304 = vpow2.f32 %v1043_v44  ;;  %v858_v55 = vmul.f32 %v2766_v11, %v707_v45  ;;  %v405_v7 = vsub.f32 %v2756_v61, %v189_v36  ;;  %v1522_v45 = vld [vmem:[#allocation4 + $0x620] sm:$0xff] }
 0x105   :  { %v406_v38 = vsub.f32 %v2758_v62, %v189_v36  ;;  %v554_v43 = vmul.f32 %v404_v47, %v404_v47  ;;  %v2295_v5 = vpop.eup %2294  ;;  %v1920_v3 = vmul.f32 %v2289_v46, %v1820_v50  ;;  %v1045_v8 = vmul.f32 1.442695, %v851_v18  ;;  %v1271_v47 = vld [vmem:[#allocation4 + $0x150] sm:$0xff] }
 0x106   :  { %v709_v9 = vsub.f32 0.0, %v559_v51  ;;  %v859_v10 = vmul.f32 %v2766_v11, %v708_v52  ;;  %v1369_v13 = vmul.f32 %v2291_v53, %v1269_v58  ;;  %v1419_v17 = vmul.f32 %v2291_v53, %v1319_v4 }
 0x107   :  { %v1569_v19 = vmul.f32 %v2293_v63, %v1469_v48  ;;  %v1619_v20 = vmul.f32 %v2293_v63, %v1519_v6  ;;  %v2903_v21 = vadd.f32 %v1870_v24, %v1670_v0  ;;  %v2905_v22 = vadd.f32 %v1920_v3, %v1720_v2  ;;  %v1772_v0 = vld [vmem:[#allocation4 + $0x178] sm:$0xff]  ;;  %v1321_v48 = vld [vmem:[#allocation4 + $0x600] sm:$0xff] }
 0x108   :  { %v2068_v23 = vadd.f32 %v2067_v56, %v2885_v1  ;;  %v2123_v26 = vadd.f32 %v2122_v57, %v2018_v54  ;;  %v1059_v14 = vmul.f32 1.442695, %v858_v55  ;;  %v555_v29 = vmul.f32 %v405_v7, %v405_v7  ;;  %v1471_v56 = vld [vmem:[#allocation4 + $0x158] sm:$0xff] }
 0x109   :  { %v2297_v27 = vpop.eup %2296  ;;  %v556_v15 = vmul.f32 %v406_v38, %v406_v38  ;;  %v704_v30 = vsub.f32 0.0, %v554_v43  ;;  %v1869_v32 = vmul.f32 %v2295_v5, %v1769_v12  ;;  %2306 = vpow2.f32 %v1045_v8  ;;  %v199_v38 = vpop.permute.xlu0 %198  ;;  %v1521_v43 = vld [vmem:[#allocation4 + $0x608] sm:$0xff] }
 0x10a   :  { %v860_v33 = vmul.f32 %v2766_v11, %v709_v9  ;;  %v1061_v35 = vmul.f32 1.442695, %v859_v10  ;;  %v2299_v16 = vpop.eup %2298  ;;  %v1669_v36 = vadd.f32 %v1569_v19, %v1369_v13  ;;  %v1719_v37 = vadd.f32 %v1619_v20, %v1419_v17  ;;  %v1822_v17 = vld [vmem:[#allocation4 + $0x628] sm:$0xff] }
 0x10b   :  { %v705_v49 = vsub.f32 0.0, %v555_v29  ;;  %v855_v1 = vmul.f32 %v2766_v11, %v704_v30  ;;  %v2301_v40 = vpop.eup %2300  ;;  %v1919_v41 = vmul.f32 %v2295_v5, %v1819_v28  ;;  %v1372_v44 = vmul.f32 %v2297_v27, %v1272_v25  ;;  %v1771_v25 = vld [vmem:[#allocation4 + $0x160] sm:$0xff] }
 0x10c   :  { %v413_v46 = vsub.f32 %v2754_v60, %v204_v31  ;;  %v414_v59 = vsub.f32 %v2756_v61, %v204_v31  ;;  %2308 = vpow2.f32 %v1059_v14  ;;  %v706_v18 = vsub.f32 0.0, %v556_v15  ;;  %v1821_v14 = vld [vmem:[#allocation4 + $0x610] sm:$0xff] }
 0x10d   :  { %v2303_v34 = vpop.eup %2302  ;;  %v856_v51 = vmul.f32 %v2766_v11, %v705_v49  ;;  %v415_v52 = vsub.f32 %v2758_v62, %v204_v31  ;;  %v1422_v54 = vmul.f32 %v2297_v27, %v1322_v39  ;;  %2310 = vpow2.f32 %v1061_v35 }
 0x10e   :  { %v2305_v53 = vpop.eup %2304  ;;  %v1063_v57 = vmul.f32 1.442695, %v860_v33  ;;  %v563_v50 = vmul.f32 %v413_v46, %v413_v46  ;;  %v1969_v58 = vadd.f32 %v1869_v32, %v1669_v36  ;;  %v2019_v63 = vadd.f32 %v1919_v41, %v1719_v37  ;;  %v1324_v46 = vld [vmem:[#allocation4 + $0x648] sm:$0xff] }
 0x10f   :  { %v1572_v2 = vmul.f32 %v2299_v16, %v1472_v42  ;;  %v1053_v24 = vmul.f32 1.442695, %v855_v1  ;;  %v1622_v4 = vmul.f32 %v2299_v16, %v1522_v45  ;;  %v1371_v6 = vmul.f32 %v2303_v34, %v1271_v47  ;;  %v1274_v42 = vld [vmem:[#allocation4 + $0x198] sm:$0xff]  ;;  %v1474_v45 = vld [vmem:[#allocation4 + $0x1a0] sm:$0xff]  ;;  %v1524_v47 = vld [vmem:[#allocation4 + $0x650] sm:$0xff] }
 0x110   :  { %v1055_v55 = vmul.f32 1.442695, %v856_v51  ;;  %v564_v7 = vmul.f32 %v414_v59, %v414_v59  ;;  %v1571_v5 = vmul.f32 %v2305_v53, %v1471_v56  ;;  %v857_v3 = vmul.f32 %v2766_v11, %v706_v18 }
 0x111   :  { %v565_v8 = vmul.f32 %v415_v52, %v415_v52  ;;  %v713_v9 = vsub.f32 0.0, %v563_v50  ;;  %v2069_v10 = vadd.f32 %v2068_v23, %v1969_v58  ;;  %v2124_v12 = vadd.f32 %v2123_v26, %v2019_v63 }
 0x112   :  { %v1872_v13 = vmul.f32 %v2301_v40, %v1772_v0  ;;  %2312 = vpow2.f32 %v1063_v57  ;;  %v1421_v19 = vmul.f32 %v2303_v34, %v1321_v48  ;;  %v714_v20 = vsub.f32 0.0, %v564_v7 }
 0x113   :  { %2314 = vpow2.f32 %v1053_v24  ;;  %v410_v27 = vsub.f32 %v2754_v60, %v199_v38  ;;  %v2307_v28 = vpop.eup %2306  ;;  %v1621_v29 = vmul.f32 %v2305_v53, %v1521_v43  ;;  %v715_v15 = vsub.f32 0.0, %v565_v8  ;;  %v1323_v8 = vld [vmem:[#allocation4 + $0x630] sm:$0xff] }
 0x114   :  { %2316 = vpow2.f32 %v1055_v55  ;;  %v864_v30 = vmul.f32 %v2766_v11, %v713_v9  ;;  %v1671_v31 = vadd.f32 %v1571_v5, %v1371_v6  ;;  %v1057_v32 = vmul.f32 1.442695, %v857_v3  ;;  %v1473_v9 = vld [vmem:[#allocation4 + $0x188] sm:$0xff] }
 0x115   :  { %v865_v23 = vmul.f32 %v2766_v11, %v714_v20  ;;  %v411_v26 = vsub.f32 %v2756_v61, %v199_v38  ;;  %v1672_v33 = vadd.f32 %v1572_v2, %v1372_v44  ;;  %v1722_v35 = vadd.f32 %v1622_v4, %v1422_v54  ;;  %v1774_v20 = vld [vmem:[#allocation4 + $0x1a8] sm:$0xff] }
 0x116   :  { %v1922_v16 = vmul.f32 %v2301_v40, %v1822_v17  ;;  %v412_v36 = vsub.f32 %v2758_v62, %v199_v38  ;;  %v2309_v37 = vpop.eup %2308  ;;  %v2070_v39 = vadd.f32 %v2069_v10, %v2903_v21  ;;  %v2125_v49 = vadd.f32 %v2124_v12, %v2905_v22  ;;  %v214_v40 = vpop.permute.xlu1 %213  ;;  %v1273_v38 = vld [vmem:[#allocation4 + $0x180] sm:$0xff]  ;;  %v1523_v10 = vld [vmem:[#allocation4 + $0x638] sm:$0xff] }
 0x117   :  { %v1871_v1 = vmul.f32 %v2307_v28, %v1771_v25  ;;  %v1921_v41 = vmul.f32 %v2307_v28, %v1821_v14  ;;  %v2311_v59 = vpop.eup %2310  ;;  %v1721_v34 = vadd.f32 %v1621_v29, %v1421_v19  ;;  %v866_v18 = vmul.f32 %v2766_v11, %v715_v15 }
 0x118   :  { %v1071_v44 = vmul.f32 1.442695, %v864_v30  ;;  %v560_v51 = vmul.f32 %v410_v27, %v410_v27  ;;  %2318 = vpow2.f32 %v1057_v32  ;;  %v1073_v53 = vmul.f32 1.442695, %v865_v23  ;;  %v1824_v27 = vld [vmem:[#allocation4 + $0x658] sm:$0xff]  ;;  %v209_v30 = vpop.permute.xlu0 %208 }
 0x119   :  { %v1971_v52 = vadd.f32 %v1871_v1, %v1671_v31  ;;  %v561_v54 = vmul.f32 %v411_v26, %v411_v26  ;;  %v1374_v21 = vmul.f32 %v2309_v37, %v1274_v42  ;;  %v1424_v56 = vmul.f32 %v2309_v37, %v1324_v46 }
 0x11a   :  { %v562_v22 = vmul.f32 %v412_v36, %v412_v36  ;;  %v710_v57 = vsub.f32 0.0, %v560_v51  ;;  %v1574_v50 = vmul.f32 %v2311_v59, %v1474_v45  ;;  %v1624_v58 = vmul.f32 %v2311_v59, %v1524_v47 }
 0x11b   :  { %v711_v63 = vsub.f32 0.0, %v561_v54  ;;  %v419_v0 = vsub.f32 %v2754_v60, %v214_v40  ;;  %2320 = vpow2.f32 %v1071_v44  ;;  %v1075_v24 = vmul.f32 1.442695, %v866_v18 }
 0x11c   :  { %v2313_v2 = vpop.eup %2312  ;;  %v861_v4 = vmul.f32 %v2766_v11, %v710_v57  ;;  %v420_v48 = vsub.f32 %v2756_v61, %v214_v40  ;;  %v1972_v55 = vadd.f32 %v1872_v13, %v1672_v33  ;;  %v2021_v7 = vadd.f32 %v1921_v41, %v1721_v34  ;;  %v1476_v57 = vld [vmem:[#allocation4 + $0x1d0] sm:$0xff] }
 0x11d   :  { %v2315_v6 = vpop.eup %2314  ;;  %2322 = vpow2.f32 %v1073_v53  ;;  %v2022_v5 = vadd.f32 %v1922_v16, %v1722_v35  ;;  %v2071_v3 = vadd.f32 %v2070_v39, %v1971_v52  ;;  %v712_v12 = vsub.f32 0.0, %v562_v22  ;;  %v1773_v39 = vld [vmem:[#allocation4 + $0x190] sm:$0xff]  ;;  %v1276_v22 = vld [vmem:[#allocation4 + $0x1c8] sm:$0xff] }
 0x11e   :  { %v2317_v43 = vpop.eup %2316  ;;  %v862_v17 = vmul.f32 %v2766_v11, %v711_v63  ;;  %v2126_v19 = vadd.f32 %v2125_v49, %v2021_v7  ;;  %v1674_v28 = vadd.f32 %v1574_v50, %v1374_v21  ;;  %v1724_v25 = vadd.f32 %v1624_v58, %v1424_v56  ;;  %v1823_v49 = vld [vmem:[#allocation4 + $0x640] sm:$0xff] }
 0x11f   :  { %v569_v14 = vmul.f32 %v419_v0, %v419_v0  ;;  %2324 = vpow2.f32 %v1075_v24  ;;  %v1065_v13 = vmul.f32 1.442695, %v861_v4  ;;  %v421_v29 = vsub.f32 %v2758_v62, %v214_v40  ;;  %v224_v40 = vpop.permute.xlu1 %223 }
 0x120   :  { %v570_v15 = vmul.f32 %v420_v48, %v420_v48  ;;  %v1373_v31 = vmul.f32 %v2315_v6, %v1273_v38  ;;  %v1423_v32 = vmul.f32 %v2315_v6, %v1323_v8  ;;  %v1573_v23 = vmul.f32 %v2317_v43, %v1473_v9 }
 0x121   :  { %v1623_v26 = vmul.f32 %v2317_v43, %v1523_v10  ;;  %v1874_v33 = vmul.f32 %v2313_v2, %v1774_v20  ;;  %v1924_v35 = vmul.f32 %v2313_v2, %v1824_v27  ;;  %v863_v16 = vmul.f32 %v2766_v11, %v712_v12 }
 0x122   :  { %v1067_v36 = vmul.f32 1.442695, %v862_v17  ;;  %v2319_v37 = vpop.eup %2318  ;;  %v719_v1 = vsub.f32 0.0, %v569_v14  ;;  %v416_v41 = vsub.f32 %v2754_v60, %v209_v30  ;;  %v417_v42 = vsub.f32 %v2756_v61, %v209_v30  ;;  %v1776_v17 = vld [vmem:[#allocation4 + $0x1d8] sm:$0xff] }
 0x123   :  { %v418_v46 = vsub.f32 %v2758_v62, %v209_v30  ;;  %v2072_v59 = vadd.f32 %v2071_v3, %v1972_v55  ;;  %2326 = vpow2.f32 %v1065_v13  ;;  %v571_v34 = vmul.f32 %v421_v29, %v421_v29  ;;  %v1526_v3 = vld [vmem:[#allocation4 + $0x680] sm:$0xff]  ;;  %v219_v29 = vpop.permute.xlu0 %218 }
 0x124   :  { %v720_v45 = vsub.f32 0.0, %v570_v15  ;;  %v2932_v47 = vadd.f32 %v1874_v33, %v1674_v28  ;;  %v2127_v18 = vadd.f32 %v2126_v19, %v2022_v5  ;;  %v1673_v44 = vadd.f32 %v1573_v23, %v1373_v31  ;;  %v1326_v5 = vld [vmem:[#allocation4 + $0x678] sm:$0xff]  ;;  %v1275_v33 = vld [vmem:[#allocation4 + $0x1b0] sm:$0xff] }
 0x125   :  { %v1723_v51 = vadd.f32 %v1623_v26, %v1423_v32  ;;  %v2321_v52 = vpop.eup %2320  ;;  %v1873_v53 = vmul.f32 %v2319_v37, %v1773_v39  ;;  %v1923_v54 = vmul.f32 %v2319_v37, %v1823_v49  ;;  %2328 = vpow2.f32 %v1067_v36 }
 0x126   :  { %v1069_v21 = vmul.f32 1.442695, %v863_v16  ;;  %v870_v50 = vmul.f32 %v2766_v11, %v719_v1  ;;  %v566_v58 = vmul.f32 %v416_v41, %v416_v41  ;;  %v567_v63 = vmul.f32 %v417_v42, %v417_v42  ;;  %v1475_v42 = vld [vmem:[#allocation4 + $0x1b8] sm:$0xff] }
 0x127   :  { %v2323_v56 = vpop.eup %2322  ;;  %v568_v0 = vmul.f32 %v418_v46, %v418_v46  ;;  %v2935_v2 = vadd.f32 %v1924_v35, %v1724_v25  ;;  %v721_v24 = vsub.f32 0.0, %v571_v34  ;;  %v871_v4 = vmul.f32 %v2766_v11, %v720_v45  ;;  %v1325_v35 = vld [vmem:[#allocation4 + $0x660] sm:$0xff]  ;;  %v1525_v46 = vld [vmem:[#allocation4 + $0x668] sm:$0xff] }
 0x128   :  { %v425_v48 = vsub.f32 %v2754_v60, %v224_v40  ;;  %v1973_v6 = vadd.f32 %v1873_v53, %v1673_v44  ;;  %v2023_v55 = vadd.f32 %v1923_v54, %v1723_v51  ;;  %v716_v7 = vsub.f32 0.0, %v566_v58 }
 0x129   :  { %v717_v38 = vsub.f32 0.0, %v567_v63  ;;  %v2325_v43 = vpop.eup %2324  ;;  %v1376_v8 = vmul.f32 %v2321_v52, %v1276_v22  ;;  %v1576_v9 = vmul.f32 %v2323_v56, %v1476_v57  ;;  %v718_v10 = vsub.f32 0.0, %v568_v0 }
 0x12a   :  { %v426_v12 = vsub.f32 %v2756_v61, %v224_v40  ;;  %2330 = vpow2.f32 %v1069_v21  ;;  %v1083_v19 = vmul.f32 1.442695, %v870_v50  ;;  %v867_v20 = vmul.f32 %v2766_v11, %v716_v7 }
 0x12b   :  { %v868_v27 = vmul.f32 %v2766_v11, %v717_v38  ;;  %v2073_v28 = vadd.f32 %v2072_v59, %v1973_v6  ;;  %v872_v25 = vmul.f32 %v2766_v11, %v721_v24  ;;  %v1085_v14 = vmul.f32 1.442695, %v871_v4  ;;  %v1775_v4 = vld [vmem:[#allocation4 + $0x1c0] sm:$0xff]  ;;  %v1825_v38 = vld [vmem:[#allocation4 + $0x670] sm:$0xff] }
 0x12c   :  { %v575_v13 = vmul.f32 %v425_v48, %v425_v48  ;;  %v2128_v15 = vadd.f32 %v2127_v18, %v2023_v55  ;;  %v1426_v30 = vmul.f32 %v2321_v52, %v1326_v5  ;;  %v1626_v31 = vmul.f32 %v2323_v56, %v1526_v3  ;;  %v1826_v18 = vld [vmem:[#allocation4 + $0x688] sm:$0xff]  ;;  %v234_v55 = vpop.permute.xlu1 %233 }
 0x12d   :  { %v427_v32 = vsub.f32 %v2758_v62, %v224_v40  ;;  %v2327_v23 = vpop.eup %2326  ;;  %v1876_v26 = vmul.f32 %v2325_v43, %v1776_v17  ;;  %v869_v16 = vmul.f32 %v2766_v11, %v718_v10  ;;  %v1077_v36 = vmul.f32 1.442695, %v867_v20 }
 0x12e   :  { %v576_v37 = vmul.f32 %v426_v12, %v426_v12  ;;  %v1676_v39 = vadd.f32 %v1576_v9, %v1376_v8  ;;  %2332 = vpow2.f32 %v1083_v19  ;;  %v1079_v49 = vmul.f32 1.442695, %v868_v27  ;;  %v1278_v27 = vld [vmem:[#allocation4 + $0x1f8] sm:$0xff] }
 0x12f   :  { %v422_v1 = vsub.f32 %v2754_v60, %v219_v29  ;;  %v2329_v41 = vpop.eup %2328  ;;  %2334 = vpow2.f32 %v1085_v14  ;;  %v1087_v59 = vmul.f32 1.442695, %v872_v25  ;;  %v725_v34 = vsub.f32 0.0, %v575_v13 }
 0x130   :  { %v423_v45 = vsub.f32 %v2756_v61, %v219_v29  ;;  %v1726_v44 = vadd.f32 %v1626_v31, %v1426_v30  ;;  %v1375_v51 = vmul.f32 %v2327_v23, %v1275_v33  ;;  %v1425_v40 = vmul.f32 %v2327_v23, %v1325_v35  ;;  %v1528_v30 = vld [vmem:[#allocation4 + $0x6b0] sm:$0xff] }
 0x131   :  { %v577_v52 = vmul.f32 %v427_v32, %v427_v32  ;;  %2336 = vpow2.f32 %v1077_v36  ;;  %v1081_v53 = vmul.f32 1.442695, %v869_v16  ;;  %v726_v54 = vsub.f32 0.0, %v576_v37 }
 0x132   :  { %v424_v21 = vsub.f32 %v2758_v62, %v219_v29  ;;  %v1575_v56 = vmul.f32 %v2329_v41, %v1475_v42  ;;  %v1625_v22 = vmul.f32 %v2329_v41, %v1525_v46  ;;  %2338 = vpow2.f32 %v1079_v49  ;;  %v1328_v29 = vld [vmem:[#allocation4 + $0x6a8] sm:$0xff] }
 0x133   :  { %v572_v57 = vmul.f32 %v422_v1, %v422_v1  ;;  %v1926_v50 = vmul.f32 %v2325_v43, %v1826_v18  ;;  %2340 = vpow2.f32 %v1087_v59  ;;  %v876_v58 = vmul.f32 %v2766_v11, %v725_v34  ;;  %v1277_v1 = vld [vmem:[#allocation4 + $0x1e0] sm:$0xff]  ;;  %v1477_v18 = vld [vmem:[#allocation4 + $0x1e8] sm:$0xff] }
 0x134   :  { %v573_v63 = vmul.f32 %v423_v45, %v423_v45  ;;  %v2331_v0 = vpop.eup %2330  ;;  %v2949_v24 = vadd.f32 %v1876_v26, %v1676_v39  ;;  %v2074_v48 = vadd.f32 %v2073_v28, %v2932_v47  ;;  %v2953_v6 = vadd.f32 %v2128_v15, %v2935_v2  ;;  %v1478_v15 = vld [vmem:[#allocation4 + $0x200] sm:$0xff]  ;;  %v1327_v45 = vld [vmem:[#allocation4 + $0x690] sm:$0xff] }
 0x135   :  { %v2955_v7 = vadd.f32 %v1926_v50, %v1726_v44  ;;  %v727_v5 = vsub.f32 0.0, %v577_v52  ;;  %v877_v43 = vmul.f32 %v2766_v11, %v726_v54  ;;  %v574_v3 = vmul.f32 %v424_v21, %v424_v21  ;;  %v1527_v44 = vld [vmem:[#allocation4 + $0x698] sm:$0xff]  ;;  %v1778_v52 = vld [vmem:[#allocation4 + $0x208] sm:$0xff] }
 0x136   :  { %v1675_v8 = vadd.f32 %v1575_v56, %v1375_v51  ;;  %v1725_v9 = vadd.f32 %v1625_v22, %v1425_v40  ;;  %2342 = vpow2.f32 %v1081_v53  ;;  %v722_v10 = vsub.f32 0.0, %v572_v57  ;;  %v229_v56 = vpop.permute.xlu0 %228  ;;  %v1828_v57 = vld [vmem:[#allocation4 + $0x6b8] sm:$0xff] }
 0x137   :  { %v1875_v12 = vmul.f32 %v2331_v0, %v1775_v4  ;;  %v1095_v17 = vmul.f32 1.442695, %v876_v58  ;;  %v723_v19 = vsub.f32 0.0, %v573_v63  ;;  %v431_v47 = vsub.f32 %v2754_v60, %v234_v55 }
 0x138   :  { %v2333_v20 = vpop.eup %2332  ;;  %v1925_v2 = vmul.f32 %v2331_v0, %v1825_v38  ;;  %v873_v28 = vmul.f32 %v2766_v11, %v722_v10  ;;  %v432_v25 = vsub.f32 %v2756_v61, %v234_v55  ;;  %v433_v14 = vsub.f32 %v2758_v62, %v234_v55 }
 0x139   :  { %v2335_v13 = vpop.eup %2334  ;;  %v878_v31 = vmul.f32 %v2766_v11, %v727_v5  ;;  %v1097_v32 = vmul.f32 1.442695, %v877_v43  ;;  %v724_v23 = vsub.f32 0.0, %v574_v3  ;;  %v874_v26 = vmul.f32 %v2766_v11, %v723_v19  ;;  %v1777_v43 = vld [vmem:[#allocation4 + $0x1f0] sm:$0xff]  ;;  %v1827_v3 = vld [vmem:[#allocation4 + $0x6a0] sm:$0xff] }
 0x13a   :  { %v1975_v33 = vadd.f32 %v1875_v12, %v1675_v8  ;;  %v1089_v35 = vmul.f32 1.442695, %v873_v28  ;;  %v581_v16 = vmul.f32 %v431_v47, %v431_v47  ;;  %v582_v36 = vmul.f32 %v432_v25, %v432_v25 }
 0x13b   :  { %v2337_v37 = vpop.eup %2336  ;;  %v2025_v39 = vadd.f32 %v1925_v2, %v1725_v9  ;;  %v1378_v49 = vmul.f32 %v2333_v20, %v1278_v27  ;;  %2344 = vpow2.f32 %v1095_v17  ;;  %v1091_v41 = vmul.f32 1.442695, %v874_v26 }
 0x13c   :  { %v2339_v42 = vpop.eup %2338  ;;  %v1428_v46 = vmul.f32 %v2333_v20, %v1328_v29  ;;  %v1578_v59 = vmul.f32 %v2335_v13, %v1478_v15  ;;  %v1628_v34 = vmul.f32 %v2335_v13, %v1528_v30  ;;  %v583_v51 = vmul.f32 %v433_v14, %v433_v14 }
 0x13d   :  { %v2341_v40 = vpop.eup %2340  ;;  %2346 = vpow2.f32 %v1097_v32  ;;  %v875_v53 = vmul.f32 %v2766_v11, %v724_v23  ;;  %v731_v54 = vsub.f32 0.0, %v581_v16  ;;  %v732_v21 = vsub.f32 0.0, %v582_v36 }
 0x13e   :  { %v2075_v22 = vadd.f32 %v2074_v48, %v1975_v33  ;;  %v1377_v50 = vmul.f32 %v2337_v37, %v1277_v1  ;;  %v1099_v58 = vmul.f32 1.442695, %v878_v31  ;;  %2348 = vpow2.f32 %v1089_v35  ;;  %v1280_v31 = vld [vmem:[#allocation4 + $0x228] sm:$0xff] }
 0x13f   :  { %v1427_v63 = vmul.f32 %v2337_v37, %v1327_v45  ;;  %v1577_v0 = vmul.f32 %v2339_v42, %v1477_v18  ;;  %v1627_v4 = vmul.f32 %v2339_v42, %v1527_v44  ;;  %2350 = vpow2.f32 %v1091_v41  ;;  %v1330_v42 = vld [vmem:[#allocation4 + $0x6d8] sm:$0xff]  ;;  %v1530_v45 = vld [vmem:[#allocation4 + $0x6e0] sm:$0xff] }
 0x140   :  { %v2343_v55 = vpop.eup %2342  ;;  %v2130_v38 = vadd.f32 %v2953_v6, %v2025_v39  ;;  %v1878_v5 = vmul.f32 %v2341_v40, %v1778_v52  ;;  %v733_v8 = vsub.f32 0.0, %v583_v51  ;;  %v428_v9 = vsub.f32 %v2754_v60, %v229_v56  ;;  %v244_v6 = vpop.permute.xlu1 %243  ;;  %v1279_v52 = vld [vmem:[#allocation4 + $0x210] sm:$0xff] }
 0x141   :  { %v2967_v10 = vmul.f32 %v2341_v40, %v1828_v57  ;;  %v1093_v48 = vmul.f32 1.442695, %v875_v53  ;;  %v882_v12 = vmul.f32 %v2766_v11, %v731_v54  ;;  %v883_v17 = vmul.f32 %v2766_v11, %v732_v21  ;;  %v1329_v53 = vld [vmem:[#allocation4 + $0x6c0] sm:$0xff]  ;;  %v1479_v54 = vld [vmem:[#allocation4 + $0x218] sm:$0xff] }
 0x142   :  { %v1678_v19 = vadd.f32 %v1578_v59, %v1378_v49  ;;  %v2971_v47 = vadd.f32 %v1628_v34, %v1428_v46  ;;  %2352 = vpow2.f32 %v1099_v58  ;;  %v429_v20 = vsub.f32 %v2756_v61, %v229_v56  ;;  %v1480_v34 = vld [vmem:[#allocation4 + $0x230] sm:$0xff] }
 0x143   :  { %v1677_v2 = vadd.f32 %v1577_v0, %v1377_v50  ;;  %v1727_v27 = vadd.f32 %v1627_v4, %v1427_v63  ;;  %v1877_v28 = vmul.f32 %v2343_v55, %v1777_v43  ;;  %v1927_v25 = vmul.f32 %v2343_v55, %v1827_v3 }
 0x144   :  { %v884_v14 = vmul.f32 %v2766_v11, %v733_v8  ;;  %v430_v13 = vsub.f32 %v2758_v62, %v229_v56  ;;  %v578_v29 = vmul.f32 %v428_v9, %v428_v9  ;;  %v579_v15 = vmul.f32 %v429_v20, %v429_v20 }
 0x145   :  { %v2345_v30 = vpop.eup %2344  ;;  %2354 = vpow2.f32 %v1093_v48  ;;  %v1107_v32 = vmul.f32 1.442695, %v882_v12  ;;  %v1109_v23 = vmul.f32 1.442695, %v883_v17  ;;  %v437_v26 = vsub.f32 %v2754_v60, %v244_v6 }
 0x146   :  { %v580_v33 = vmul.f32 %v430_v13, %v430_v13  ;;  %v728_v35 = vsub.f32 0.0, %v578_v29  ;;  %v729_v16 = vsub.f32 0.0, %v579_v15  ;;  %v438_v36 = vsub.f32 %v2756_v61, %v244_v6  ;;  %v1779_v13 = vld [vmem:[#allocation4 + $0x220] sm:$0xff]  ;;  %v239_v29 = vpop.permute.xlu0 %238 }
 0x147   :  { %v2347_v37 = vpop.eup %2346  ;;  %v1978_v39 = vadd.f32 %v1878_v5, %v1678_v19  ;;  %v2076_v49 = vadd.f32 %v2075_v22, %v2949_v24  ;;  %v2131_v1 = vadd.f32 %v2130_v38, %v2955_v7  ;;  %v1977_v41 = vadd.f32 %v1877_v28, %v1677_v2  ;;  %v1529_v22 = vld [vmem:[#allocation4 + $0x6c8] sm:$0xff]  ;;  %v1780_v38 = vld [vmem:[#allocation4 + $0x238] sm:$0xff] }
 0x148   :  { %v2349_v46 = vpop.eup %2348  ;;  %v2027_v59 = vadd.f32 %v1927_v25, %v1727_v27  ;;  %v1380_v18 = vmul.f32 %v2345_v30, %v1280_v31  ;;  %v879_v44 = vmul.f32 %v2766_v11, %v728_v35  ;;  %v880_v51 = vmul.f32 %v2766_v11, %v729_v16  ;;  %v1830_v5 = vld [vmem:[#allocation4 + $0x6e8] sm:$0xff] }
 0x149   :  { %v2351_v40 = vpop.eup %2350  ;;  %2356 = vpow2.f32 %v1107_v32  ;;  %v730_v21 = vsub.f32 0.0, %v580_v33  ;;  %v439_v24 = vsub.f32 %v2758_v62, %v244_v6  ;;  %v587_v7 = vmul.f32 %v437_v26, %v437_v26 }
 0x14a   :  { %v1430_v56 = vmul.f32 %v2345_v30, %v1330_v42  ;;  %2358 = vpow2.f32 %v1109_v23  ;;  %v1111_v57 = vmul.f32 1.442695, %v884_v14  ;;  %v588_v50 = vmul.f32 %v438_v36, %v438_v36  ;;  %v1829_v30 = vld [vmem:[#allocation4 + $0x6d0] sm:$0xff] }
 0x14b   :  { %v2077_v58 = vadd.f32 %v2076_v49, %v1977_v41  ;;  %v1580_v63 = vmul.f32 %v2347_v37, %v1480_v34  ;;  %v1630_v0 = vmul.f32 %v2347_v37, %v1530_v45  ;;  %v1101_v4 = vmul.f32 1.442695, %v879_v44  ;;  %v1282_v34 = vld [vmem:[#allocation4 + $0x258] sm:$0xff]  ;;  %v1482_v45 = vld [vmem:[#allocation4 + $0x260] sm:$0xff] }
 0x14c   :  { %v2353_v55 = vpop.eup %2352  ;;  %v1379_v43 = vmul.f32 %v2349_v46, %v1279_v52  ;;  %v1429_v3 = vmul.f32 %v2349_v46, %v1329_v53  ;;  %v1579_v8 = vmul.f32 %v2351_v40, %v1479_v54  ;;  %v1103_v9 = vmul.f32 1.442695, %v880_v51 }
 0x14d   :  { %v1629_v48 = vmul.f32 %v2351_v40, %v1529_v22  ;;  %v881_v12 = vmul.f32 %v2766_v11, %v730_v21  ;;  %v589_v17 = vmul.f32 %v439_v24, %v439_v24  ;;  %v737_v19 = vsub.f32 0.0, %v587_v7  ;;  %v1332_v21 = vld [vmem:[#allocation4 + $0x708] sm:$0xff]  ;;  %v1532_v24 = vld [vmem:[#allocation4 + $0x710] sm:$0xff] }
 0x14e   :  { %v2028_v20 = vadd.f32 %v2967_v10, %v2971_v47  ;;  %v2132_v6 = vadd.f32 %v2131_v1, %v2027_v59  ;;  %2360 = vpow2.f32 %v1111_v57  ;;  %v738_v2 = vsub.f32 0.0, %v588_v50  ;;  %v254_v47 = vpop.permute.xlu1 %253 }
 0x14f   :  { %v2355_v27 = vpop.eup %2354  ;;  %v1680_v28 = vadd.f32 %v1580_v63, %v1380_v18  ;;  %v1880_v25 = vmul.f32 %v2353_v55, %v1780_v38  ;;  %v1930_v14 = vmul.f32 %v2353_v55, %v1830_v5  ;;  %2362 = vpow2.f32 %v1101_v4  ;;  %v1782_v4 = vld [vmem:[#allocation4 + $0x268] sm:$0xff] }
 0x150   :  { %v1730_v15 = vadd.f32 %v1630_v0, %v1430_v56  ;;  %v2078_v31 = vadd.f32 %v2077_v58, %v1978_v39  ;;  %v1679_v32 = vadd.f32 %v1579_v8, %v1379_v43  ;;  %2364 = vpow2.f32 %v1103_v9 }
 0x151   :  { %v1729_v23 = vadd.f32 %v1629_v48, %v1429_v3  ;;  %v1105_v26 = vmul.f32 1.442695, %v881_v12  ;;  %v739_v33 = vsub.f32 0.0, %v589_v17  ;;  %v888_v10 = vmul.f32 %v2766_v11, %v737_v19 }
 0x152   :  { %v1879_v35 = vmul.f32 %v2355_v27, %v1779_v13  ;;  %v889_v16 = vmul.f32 %v2766_v11, %v738_v2  ;;  %v434_v36 = vsub.f32 %v2754_v60, %v239_v29  ;;  %v435_v37 = vsub.f32 %v2756_v61, %v239_v29  ;;  %v1481_v2 = vld [vmem:[#allocation4 + $0x248] sm:$0xff]  ;;  %v1331_v13 = vld [vmem:[#allocation4 + $0x6f0] sm:$0xff] }
 0x153   :  { %v2357_v49 = vpop.eup %2356  ;;  %v1980_v1 = vadd.f32 %v1880_v25, %v1680_v28  ;;  %v2133_v41 = vadd.f32 %v2132_v6, %v2028_v20  ;;  %v1929_v42 = vmul.f32 %v2355_v27, %v1829_v30  ;;  %v436_v39 = vsub.f32 %v2758_v62, %v239_v29  ;;  %v1281_v6 = vld [vmem:[#allocation4 + $0x240] sm:$0xff]  ;;  %v1832_v27 = vld [vmem:[#allocation4 + $0x718] sm:$0xff] }
 0x154   :  { %v2359_v46 = vpop.eup %2358  ;;  %v1979_v59 = vadd.f32 %v1879_v35, %v1679_v32  ;;  %v584_v18 = vmul.f32 %v434_v36, %v434_v36  ;;  %v585_v44 = vmul.f32 %v435_v37, %v435_v37  ;;  %v443_v51 = vsub.f32 %v2754_v60, %v254_v47  ;;  %v1531_v29 = vld [vmem:[#allocation4 + $0x6f8] sm:$0xff] }
 0x155   :  { %2366 = vpow2.f32 %v1105_v26  ;;  %v890_v40 = vmul.f32 %v2766_v11, %v739_v33  ;;  %v1119_v52 = vmul.f32 1.442695, %v888_v10  ;;  %v444_v53 = vsub.f32 %v2756_v61, %v254_v47 }
 0x156   :  { %v2029_v54 = vadd.f32 %v1929_v42, %v1729_v23  ;;  %v1121_v7 = vmul.f32 1.442695, %v889_v16  ;;  %v734_v56 = vsub.f32 0.0, %v584_v18  ;;  %v735_v22 = vsub.f32 0.0, %v585_v44  ;;  %v1831_v42 = vld [vmem:[#allocation4 + $0x700] sm:$0xff] }
 0x157   :  { %v1382_v57 = vmul.f32 %v2357_v49, %v1282_v34  ;;  %v1582_v50 = vmul.f32 %v2359_v46, %v1482_v45  ;;  %v586_v58 = vmul.f32 %v436_v39, %v436_v39  ;;  %v445_v63 = vsub.f32 %v2758_v62, %v254_v47  ;;  %v249_v47 = vpop.permute.xlu0 %248 }
 0x158   :  { %v2361_v0 = vpop.eup %2360  ;;  %v885_v55 = vmul.f32 %v2766_v11, %v734_v56  ;;  %v886_v38 = vmul.f32 %v2766_v11, %v735_v22  ;;  %v593_v5 = vmul.f32 %v443_v51, %v443_v51  ;;  %v594_v43 = vmul.f32 %v444_v53, %v444_v53  ;;  %v1284_v56 = vld [vmem:[#allocation4 + $0x288] sm:$0xff] }
 0x159   :  { %v2363_v3 = vpop.eup %2362  ;;  %v1432_v8 = vmul.f32 %v2357_v49, %v1332_v21  ;;  %v1632_v9 = vmul.f32 %v2359_v46, %v1532_v24  ;;  %2368 = vpow2.f32 %v1119_v52  ;;  %v1123_v48 = vmul.f32 1.442695, %v890_v40 }
 0x15a   :  { %v2365_v12 = vpop.eup %2364  ;;  %v2030_v17 = vadd.f32 %v1930_v14, %v1730_v15  ;;  %v2079_v19 = vadd.f32 %v2078_v31, %v1979_v59  ;;  %v2134_v20 = vadd.f32 %v2133_v41, %v2029_v54  ;;  %2370 = vpow2.f32 %v1121_v7  ;;  %v1781_v41 = vld [vmem:[#allocation4 + $0x250] sm:$0xff] }
 0x15b   :  { %v1682_v28 = vadd.f32 %v1582_v50, %v1382_v57  ;;  %v1882_v25 = vmul.f32 %v2361_v0, %v1782_v4  ;;  %v736_v30 = vsub.f32 0.0, %v586_v58  ;;  %v1113_v32 = vmul.f32 1.442695, %v885_v55 }
 0x15c   :  { %v1115_v23 = vmul.f32 1.442695, %v886_v38  ;;  %v595_v26 = vmul.f32 %v445_v63, %v445_v63  ;;  %v743_v33 = vsub.f32 0.0, %v593_v5  ;;  %v744_v10 = vsub.f32 0.0, %v594_v43  ;;  %v1334_v43 = vld [vmem:[#allocation4 + $0x738] sm:$0xff] }
 0x15d   :  { %v1732_v35 = vadd.f32 %v1632_v9, %v1432_v8  ;;  %v1381_v16 = vmul.f32 %v2363_v3, %v1281_v6  ;;  %v1581_v14 = vmul.f32 %v2365_v12, %v1481_v2  ;;  %2372 = vpow2.f32 %v1123_v48 }
 0x15e   :  { %v1932_v15 = vmul.f32 %v2361_v0, %v1832_v27  ;;  %v2997_v31 = vadd.f32 %v2079_v19, %v1980_v1  ;;  %v1431_v36 = vmul.f32 %v2363_v3, %v1331_v13  ;;  %v1631_v37 = vmul.f32 %v2365_v12, %v1531_v29  ;;  %v264_v1 = vpop.permute.xlu1 %263  ;;  %v1484_v0 = vld [vmem:[#allocation4 + $0x290] sm:$0xff]  ;;  %v1534_v19 = vld [vmem:[#allocation4 + $0x740] sm:$0xff]  ;;  %v1784_v27 = vld [vmem:[#allocation4 + $0x298] sm:$0xff] }
 0x15f   :  { %v2367_v49 = vpop.eup %2366  ;;  %v887_v39 = vmul.f32 %v2766_v11, %v736_v30  ;;  %2374 = vpow2.f32 %v1113_v32  ;;  %v440_v46 = vsub.f32 %v2754_v60, %v249_v47  ;;  %v441_v59 = vsub.f32 %v2756_v61, %v249_v47  ;;  %v1834_v29 = vld [vmem:[#allocation4 + $0x748] sm:$0xff] }
 0x160   :  { %2376 = vpow2.f32 %v1115_v23  ;;  %v745_v34 = vsub.f32 0.0, %v595_v26  ;;  %v894_v45 = vmul.f32 %v2766_v11, %v743_v33  ;;  %v895_v18 = vmul.f32 %v2766_v11, %v744_v10 }
 0x161   :  { %v3004_v44 = vadd.f32 %v1882_v25, %v1682_v28  ;;  %v3006_v51 = vadd.f32 %v1932_v15, %v1732_v35  ;;  %v2135_v40 = vadd.f32 %v2134_v20, %v2030_v17  ;;  %v1681_v52 = vadd.f32 %v1581_v14, %v1381_v16  ;;  %v259_v35 = vpop.permute.xlu0 %258 }
 0x162   :  { %v1731_v53 = vadd.f32 %v1631_v37, %v1431_v36  ;;  %v1881_v54 = vmul.f32 %v2367_v49, %v1781_v41  ;;  %v1931_v21 = vmul.f32 %v2367_v49, %v1831_v42  ;;  %v442_v24 = vsub.f32 %v2758_v62, %v249_v47  ;;  %v1283_v37 = vld [vmem:[#allocation4 + $0x270] sm:$0xff]  ;;  %v1483_v49 = vld [vmem:[#allocation4 + $0x278] sm:$0xff] }
 0x163   :  { %v2369_v7 = vpop.eup %2368  ;;  %v1117_v22 = vmul.f32 1.442695, %v887_v39  ;;  %v590_v57 = vmul.f32 %v440_v46, %v440_v46  ;;  %v591_v50 = vmul.f32 %v441_v59, %v441_v59  ;;  %v449_v58 = vsub.f32 %v2754_v60, %v264_v1 }
 0x164   :  { %v2371_v63 = vpop.eup %2370  ;;  %v896_v4 = vmul.f32 %v2766_v11, %v745_v34  ;;  %v1131_v55 = vmul.f32 1.442695, %v894_v45  ;;  %v1133_v38 = vmul.f32 1.442695, %v895_v18  ;;  %v450_v5 = vsub.f32 %v2756_v61, %v264_v1  ;;  %v1333_v34 = vld [vmem:[#allocation4 + $0x720] sm:$0xff]  ;;  %v1533_v45 = vld [vmem:[#allocation4 + $0x728] sm:$0xff] }
 0x165   :  { %v592_v3 = vmul.f32 %v442_v24, %v442_v24  ;;  %v740_v8 = vsub.f32 0.0, %v590_v57  ;;  %v741_v9 = vsub.f32 0.0, %v591_v50  ;;  %v451_v48 = vsub.f32 %v2758_v62, %v264_v1 }
 0x166   :  { %v1981_v12 = vadd.f32 %v1881_v54, %v1681_v52  ;;  %v2031_v17 = vadd.f32 %v1931_v21, %v1731_v53  ;;  %v1384_v20 = vmul.f32 %v2369_v7, %v1284_v56  ;;  %v599_v6 = vmul.f32 %v449_v58, %v449_v58 }
 0x167   :  { %v2373_v2 = vpop.eup %2372  ;;  %v1584_v28 = vmul.f32 %v2371_v63, %v1484_v0  ;;  %2378 = vpow2.f32 %v1117_v22  ;;  %v891_v25 = vmul.f32 %v2766_v11, %v740_v8  ;;  %v600_v13 = vmul.f32 %v450_v5, %v450_v5 }
 0x168   :  { %v1434_v30 = vmul.f32 %v2369_v7, %v1334_v43  ;;  %2380 = vpow2.f32 %v1131_v55  ;;  %v1135_v32 = vmul.f32 1.442695, %v896_v4  ;;  %v892_v23 = vmul.f32 %v2766_v11, %v741_v9  ;;  %v274_v4 = vpop.permute.xlu1 %273  ;;  %v1833_v9 = vld [vmem:[#allocation4 + $0x730] sm:$0xff] }
 0x169   :  { %v2375_v26 = vpop.eup %2374  ;;  %v1634_v33 = vmul.f32 %v2371_v63, %v1534_v19  ;;  %2382 = vpow2.f32 %v1133_v38  ;;  %v742_v10 = vsub.f32 0.0, %v592_v3  ;;  %v601_v47 = vmul.f32 %v451_v48, %v451_v48  ;;  %v1286_v48 = vld [vmem:[#allocation4 + $0x2b8] sm:$0xff] }
 0x16a   :  { %v2377_v16 = vpop.eup %2376  ;;  %v2081_v14 = vadd.f32 %v2997_v31, %v1981_v12  ;;  %v2136_v15 = vadd.f32 %v2135_v40, %v2031_v17  ;;  %v1884_v36 = vmul.f32 %v2373_v2, %v1784_v27  ;;  %v749_v41 = vsub.f32 0.0, %v599_v6  ;;  %v1486_v27 = vld [vmem:[#allocation4 + $0x2c0] sm:$0xff] }
 0x16b   :  { %v1684_v42 = vadd.f32 %v1584_v28, %v1384_v20  ;;  %v3016_v39 = vmul.f32 %v2373_v2, %v1834_v29  ;;  %v1125_v46 = vmul.f32 1.442695, %v891_v25  ;;  %v750_v59 = vsub.f32 0.0, %v600_v13  ;;  %v1336_v2 = vld [vmem:[#allocation4 + $0x768] sm:$0xff] }
 0x16c   :  { %2384 = vpow2.f32 %v1135_v32  ;;  %v1127_v18 = vmul.f32 1.442695, %v892_v23  ;;  %v446_v1 = vsub.f32 %v2754_v60, %v259_v35  ;;  %v447_v52 = vsub.f32 %v2756_v61, %v259_v35 }
 0x16d   :  { %v1383_v53 = vmul.f32 %v2375_v26, %v1283_v37  ;;  %v1583_v31 = vmul.f32 %v2377_v16, %v1483_v49  ;;  %v893_v40 = vmul.f32 %v2766_v11, %v742_v10  ;;  %v751_v54 = vsub.f32 0.0, %v601_v47  ;;  %v1836_v49 = vld [vmem:[#allocation4 + $0x778] sm:$0xff] }
 0x16e   :  { %v3021_v21 = vadd.f32 %v1634_v33, %v1434_v30  ;;  %v3024_v24 = vadd.f32 %v2081_v14, %v3004_v44  ;;  %v900_v7 = vmul.f32 %v2766_v11, %v749_v41  ;;  %v448_v56 = vsub.f32 %v2758_v62, %v259_v35  ;;  %v1783_v44 = vld [vmem:[#allocation4 + $0x280] sm:$0xff]  ;;  %v1536_v30 = vld [vmem:[#allocation4 + $0x770] sm:$0xff]  ;;  %v269_v35 = vpop.permute.xlu0 %268  ;;  %v1786_v14 = vld [vmem:[#allocation4 + $0x2c8] sm:$0xff] }
 0x16f   :  { %v1433_v22 = vmul.f32 %v2375_v26, %v1333_v34  ;;  %v1633_v57 = vmul.f32 %v2377_v16, %v1533_v45  ;;  %2386 = vpow2.f32 %v1125_v46  ;;  %v901_v50 = vmul.f32 %v2766_v11, %v750_v59 }
 0x170   :  { %v3030_v58 = vadd.f32 %v2136_v15, %v3006_v51  ;;  %2388 = vpow2.f32 %v1127_v18  ;;  %v596_v63 = vmul.f32 %v446_v1, %v446_v1  ;;  %v597_v0 = vmul.f32 %v447_v52, %v447_v52 }
 0x171   :  { %v2379_v55 = vpop.eup %2378  ;;  %v3032_v38 = vadd.f32 %v1884_v36, %v1684_v42  ;;  %v1683_v5 = vadd.f32 %v1583_v31, %v1383_v53  ;;  %v1129_v43 = vmul.f32 1.442695, %v893_v40  ;;  %v902_v3 = vmul.f32 %v2766_v11, %v751_v54  ;;  %v1285_v31 = vld [vmem:[#allocation4 + $0x2a0] sm:$0xff] }
 0x172   :  { %v2381_v8 = vpop.eup %2380  ;;  %v1143_v12 = vmul.f32 1.442695, %v900_v7  ;;  %v598_v17 = vmul.f32 %v448_v56, %v448_v56  ;;  %v746_v19 = vsub.f32 0.0, %v596_v63  ;;  %v747_v51 = vsub.f32 0.0, %v597_v0 }
 0x173   :  { %v2383_v20 = vpop.eup %2382  ;;  %v1733_v6 = vadd.f32 %v1633_v57, %v1433_v22  ;;  %v1145_v28 = vmul.f32 1.442695, %v901_v50  ;;  %v455_v25 = vsub.f32 %v2754_v60, %v274_v4  ;;  %v456_v13 = vsub.f32 %v2756_v61, %v274_v4  ;;  %v1485_v50 = vld [vmem:[#allocation4 + $0x2a8] sm:$0xff] }
 0x174   :  { %v1883_v29 = vmul.f32 %v2379_v55, %v1783_v44  ;;  %v897_v32 = vmul.f32 %v2766_v11, %v746_v19  ;;  %v898_v23 = vmul.f32 %v2766_v11, %v747_v51  ;;  %v457_v26 = vsub.f32 %v2758_v62, %v274_v4  ;;  %v1335_v4 = vld [vmem:[#allocation4 + $0x750] sm:$0xff] }
 0x175   :  { %v1933_v33 = vmul.f32 %v2379_v55, %v1833_v9  ;;  %v1386_v10 = vmul.f32 %v2381_v8, %v1286_v48  ;;  %2390 = vpow2.f32 %v1129_v43  ;;  %v605_v47 = vmul.f32 %v455_v25, %v455_v25  ;;  %v1535_v55 = vld [vmem:[#allocation4 + $0x758] sm:$0xff] }
 0x176   :  { %v2385_v16 = vpop.eup %2384  ;;  %v1436_v15 = vmul.f32 %v2381_v8, %v1336_v2  ;;  %v1586_v36 = vmul.f32 %v2383_v20, %v1486_v27  ;;  %2392 = vpow2.f32 %v1143_v12  ;;  %v748_v37 = vsub.f32 0.0, %v598_v17 }
 0x177   :  { %v1636_v41 = vmul.f32 %v2383_v20, %v1536_v30  ;;  %2394 = vpow2.f32 %v1145_v28  ;;  %v1137_v42 = vmul.f32 1.442695, %v897_v32  ;;  %v606_v46 = vmul.f32 %v456_v13, %v456_v13 }
 0x178   :  { %v1983_v59 = vadd.f32 %v1883_v29, %v1683_v5  ;;  %v1139_v34 = vmul.f32 1.442695, %v898_v23  ;;  %v607_v45 = vmul.f32 %v457_v26, %v457_v26  ;;  %v452_v18 = vsub.f32 %v2754_v60, %v269_v35  ;;  %v1785_v29 = vld [vmem:[#allocation4 + $0x2b0] sm:$0xff]  ;;  %v284_v23 = vpop.permute.xlu1 %283 }
 0x179   :  { %v2387_v1 = vpop.eup %2386  ;;  %v2033_v52 = vadd.f32 %v1933_v33, %v1733_v6  ;;  %v1886_v53 = vmul.f32 %v2385_v16, %v1786_v14  ;;  %v755_v40 = vsub.f32 0.0, %v605_v47  ;;  %v453_v54 = vsub.f32 %v2756_v61, %v269_v35  ;;  %v1835_v33 = vld [vmem:[#allocation4 + $0x760] sm:$0xff]  ;;  %v1288_v47 = vld [vmem:[#allocation4 + $0x2e8] sm:$0xff] }
 0x17a   :  { %v2389_v7 = vpop.eup %2388  ;;  %v2083_v56 = vadd.f32 %v3024_v24, %v1983_v59  ;;  %v1686_v22 = vadd.f32 %v1586_v36, %v1386_v10  ;;  %v1936_v57 = vmul.f32 %v2385_v16, %v1836_v49  ;;  %v899_v63 = vmul.f32 %v2766_v11, %v748_v37  ;;  %v1338_v49 = vld [vmem:[#allocation4 + $0x798] sm:$0xff] }
 0x17b   :  { %v1736_v0 = vadd.f32 %v1636_v41, %v1436_v15  ;;  %v1147_v44 = vmul.f32 1.442695, %v902_v3  ;;  %2396 = vpow2.f32 %v1137_v42  ;;  %v756_v5 = vsub.f32 0.0, %v606_v46 }
 0x17c   :  { %v1385_v43 = vmul.f32 %v2387_v1, %v1285_v31  ;;  %2398 = vpow2.f32 %v1139_v34  ;;  %v757_v8 = vsub.f32 0.0, %v607_v45  ;;  %v602_v9 = vmul.f32 %v452_v18, %v452_v18 }
 0x17d   :  { %v1585_v48 = vmul.f32 %v2389_v7, %v1485_v50  ;;  %v906_v12 = vmul.f32 %v2766_v11, %v755_v40  ;;  %v454_v24 = vsub.f32 %v2758_v62, %v269_v35  ;;  %v603_v17 = vmul.f32 %v453_v54, %v453_v54  ;;  %v1487_v50 = vld [vmem:[#allocation4 + $0x2d8] sm:$0xff] }
 0x17e   :  { %v2138_v19 = vadd.f32 %v3030_v58, %v2033_v52  ;;  %v1435_v51 = vmul.f32 %v2387_v1, %v1335_v4  ;;  %v1635_v20 = vmul.f32 %v2389_v7, %v1535_v55  ;;  %v1141_v6 = vmul.f32 1.442695, %v899_v63  ;;  %v1537_v4 = vld [vmem:[#allocation4 + $0x788] sm:$0xff] }
 0x17f   :  { %v2391_v2 = vpop.eup %2390  ;;  %v2034_v3 = vadd.f32 %v3016_v39, %v3021_v21  ;;  %v3049_v27 = vadd.f32 %v1886_v53, %v1686_v22  ;;  %2400 = vpow2.f32 %v1147_v44  ;;  %v907_v28 = vmul.f32 %v2766_v11, %v756_v5  ;;  %v1488_v39 = vld [vmem:[#allocation4 + $0x2f0] sm:$0xff]  ;;  %v279_v5 = vpop.permute.xlu0 %278 }
 0x180   :  { %v2393_v25 = vpop.eup %2392  ;;  %v3052_v13 = vadd.f32 %v1936_v57, %v1736_v0  ;;  %v2084_v30 = vadd.f32 %v2083_v56, %v3032_v38  ;;  %v908_v58 = vmul.f32 %v2766_v11, %v757_v8  ;;  %v752_v32 = vsub.f32 0.0, %v602_v9  ;;  %v1538_v38 = vld [vmem:[#allocation4 + $0x7a0] sm:$0xff]  ;;  %v1287_v53 = vld [vmem:[#allocation4 + $0x2d0] sm:$0xff] }
 0x181   :  { %v2395_v26 = vpop.eup %2394  ;;  %v1685_v10 = vadd.f32 %v1585_v48, %v1385_v43  ;;  %v1155_v21 = vmul.f32 1.442695, %v906_v12  ;;  %v604_v35 = vmul.f32 %v454_v24, %v454_v24  ;;  %v753_v16 = vsub.f32 0.0, %v603_v17  ;;  %v1337_v57 = vld [vmem:[#allocation4 + $0x780] sm:$0xff]  ;;  %v1788_v12 = vld [vmem:[#allocation4 + $0x2f8] sm:$0xff]  ;;  %v1838_v24 = vld [vmem:[#allocation4 + $0x7a8] sm:$0xff] }
 0x182   :  { %v2139_v14 = vadd.f32 %v2138_v19, %v2034_v3  ;;  %v1735_v15 = vadd.f32 %v1635_v20, %v1435_v51  ;;  %2402 = vpow2.f32 %v1141_v6  ;;  %v903_v36 = vmul.f32 %v2766_v11, %v752_v32 }
 0x183   :  { %v1885_v37 = vmul.f32 %v2391_v2, %v1785_v29  ;;  %v1157_v41 = vmul.f32 1.442695, %v907_v28  ;;  %v904_v42 = vmul.f32 %v2766_v11, %v753_v16  ;;  %v461_v46 = vsub.f32 %v2754_v60, %v284_v23 }
 0x184   :  { %v1935_v59 = vmul.f32 %v2391_v2, %v1835_v33  ;;  %v1388_v34 = vmul.f32 %v2393_v25, %v1288_v47  ;;  %v1588_v45 = vmul.f32 %v2395_v26, %v1488_v39  ;;  %v1159_v18 = vmul.f32 1.442695, %v908_v58  ;;  %v1787_v33 = vld [vmem:[#allocation4 + $0x2e0] sm:$0xff] }
 0x185   :  { %v2397_v1 = vpop.eup %2396  ;;  %v1985_v52 = vadd.f32 %v1885_v37, %v1685_v10  ;;  %2404 = vpow2.f32 %v1155_v21  ;;  %v754_v31 = vsub.f32 0.0, %v604_v35  ;;  %v462_v40 = vsub.f32 %v2756_v61, %v284_v23  ;;  %v1837_v10 = vld [vmem:[#allocation4 + $0x790] sm:$0xff]  ;;  %v294_v37 = vpop.permute.xlu1 %293 }
 0x186   :  { %v2399_v54 = vpop.eup %2398  ;;  %v2035_v7 = vadd.f32 %v1935_v59, %v1735_v15  ;;  %v1438_v56 = vmul.f32 %v2393_v25, %v1338_v49  ;;  %v1638_v22 = vmul.f32 %v2395_v26, %v1538_v38  ;;  %v1149_v63 = vmul.f32 1.442695, %v903_v36 }
 0x187   :  { %v2085_v0 = vadd.f32 %v2084_v30, %v1985_v52  ;;  %2406 = vpow2.f32 %v1157_v41  ;;  %v1151_v55 = vmul.f32 1.442695, %v904_v42  ;;  %v611_v44 = vmul.f32 %v461_v46, %v461_v46  ;;  %v1290_v41 = vld [vmem:[#allocation4 + $0x318] sm:$0xff] }
 0x188   :  { %v2140_v43 = vadd.f32 %v2139_v14, %v2035_v7  ;;  %v1688_v8 = vadd.f32 %v1588_v45, %v1388_v34  ;;  %v1387_v9 = vmul.f32 %v2397_v1, %v1287_v53  ;;  %2408 = vpow2.f32 %v1159_v18 }
 0x189   :  { %v2401_v48 = vpop.eup %2400  ;;  %v1437_v17 = vmul.f32 %v2397_v1, %v1337_v57  ;;  %v1587_v19 = vmul.f32 %v2399_v54, %v1487_v50  ;;  %v905_v51 = vmul.f32 %v2766_v11, %v754_v31  ;;  %v612_v20 = vmul.f32 %v462_v40, %v462_v40  ;;  %v1490_v1 = vld [vmem:[#allocation4 + $0x320] sm:$0xff]  ;;  %v1540_v57 = vld [vmem:[#allocation4 + $0x7d0] sm:$0xff]  ;;  %v1790_v50 = vld [vmem:[#allocation4 + $0x328] sm:$0xff] }
 0x18a   :  { %v1637_v6 = vmul.f32 %v2399_v54, %v1537_v4  ;;  %2410 = vpow2.f32 %v1149_v63  ;;  %v458_v2 = vsub.f32 %v2754_v60, %v279_v5  ;;  %v459_v3 = vsub.f32 %v2756_v61, %v279_v5 }
 0x18b   :  { %v1738_v28 = vadd.f32 %v1638_v22, %v1438_v56  ;;  %2412 = vpow2.f32 %v1151_v55  ;;  %v463_v25 = vsub.f32 %v2758_v62, %v284_v23  ;;  %v761_v29 = vsub.f32 0.0, %v611_v44 }
 0x18c   :  { %v2403_v30 = vpop.eup %2402  ;;  %v1888_v58 = vmul.f32 %v2401_v48, %v1788_v12  ;;  %v1938_v32 = vmul.f32 %v2401_v48, %v1838_v24  ;;  %v2086_v26 = vadd.f32 %v2085_v0, %v3049_v27  ;;  %v2141_v47 = vadd.f32 %v2140_v43, %v3052_v13  ;;  %v1340_v27 = vld [vmem:[#allocation4 + $0x7c8] sm:$0xff]  ;;  %v1289_v12 = vld [vmem:[#allocation4 + $0x300] sm:$0xff] }
 0x18d   :  { %v1687_v39 = vadd.f32 %v1587_v19, %v1387_v9  ;;  %v1153_v21 = vmul.f32 1.442695, %v905_v51  ;;  %v762_v35 = vsub.f32 0.0, %v612_v20  ;;  %v1737_v16 = vadd.f32 %v1637_v6, %v1437_v17  ;;  %v1489_v24 = vld [vmem:[#allocation4 + $0x308] sm:$0xff]  ;;  %v289_v6 = vpop.permute.xlu0 %288 }
 0x18e   :  { %v460_v14 = vsub.f32 %v2758_v62, %v279_v5  ;;  %v608_v15 = vmul.f32 %v458_v2, %v458_v2  ;;  %v609_v36 = vmul.f32 %v459_v3, %v459_v3  ;;  %v3067_v49 = vadd.f32 %v1888_v58, %v1688_v8  ;;  %v1840_v2 = vld [vmem:[#allocation4 + $0x7d8] sm:$0xff] }
 0x18f   :  { %v2405_v23 = vpop.eup %2404  ;;  %v3069_v38 = vadd.f32 %v1938_v32, %v1738_v28  ;;  %v613_v42 = vmul.f32 %v463_v25, %v463_v25  ;;  %v912_v46 = vmul.f32 %v2766_v11, %v761_v29  ;;  %v1887_v13 = vmul.f32 %v2403_v30, %v1787_v33  ;;  %v1339_v25 = vld [vmem:[#allocation4 + $0x7b0] sm:$0xff]  ;;  %v1539_v58 = vld [vmem:[#allocation4 + $0x7b8] sm:$0xff] }
 0x190   :  { %v1937_v59 = vmul.f32 %v2403_v30, %v1837_v10  ;;  %v758_v34 = vsub.f32 0.0, %v608_v15  ;;  %v759_v45 = vsub.f32 0.0, %v609_v36  ;;  %2414 = vpow2.f32 %v1153_v21 }
 0x191   :  { %v2407_v18 = vpop.eup %2406  ;;  %v913_v52 = vmul.f32 %v2766_v11, %v762_v35  ;;  %v610_v53 = vmul.f32 %v460_v14, %v460_v14  ;;  %v467_v31 = vsub.f32 %v2754_v60, %v294_v37  ;;  %v1987_v54 = vadd.f32 %v1887_v13, %v1687_v39 }
 0x192   :  { %v2409_v40 = vpop.eup %2408  ;;  %v2037_v7 = vadd.f32 %v1937_v59, %v1737_v16  ;;  %v1390_v56 = vmul.f32 %v2405_v23, %v1290_v41  ;;  %v1440_v22 = vmul.f32 %v2405_v23, %v1340_v27  ;;  %v763_v63 = vsub.f32 0.0, %v613_v42  ;;  %v1789_v41 = vld [vmem:[#allocation4 + $0x310] sm:$0xff] }
 0x193   :  { %v1167_v0 = vmul.f32 1.442695, %v912_v46  ;;  %v909_v4 = vmul.f32 %v2766_v11, %v758_v34  ;;  %v910_v55 = vmul.f32 %v2766_v11, %v759_v45  ;;  %v2087_v5 = vadd.f32 %v2086_v26, %v1987_v54 }
 0x194   :  { %v2411_v44 = vpop.eup %2410  ;;  %v2142_v43 = vadd.f32 %v2141_v47, %v2037_v7  ;;  %v1590_v8 = vmul.f32 %v2407_v18, %v1490_v1  ;;  %v468_v9 = vsub.f32 %v2756_v61, %v294_v37  ;;  %v1169_v17 = vmul.f32 1.442695, %v913_v52  ;;  %v1839_v52 = vld [vmem:[#allocation4 + $0x7c0] sm:$0xff] }
 0x195   :  { %v2413_v48 = vpop.eup %2412  ;;  %v760_v19 = vsub.f32 0.0, %v610_v53  ;;  %v469_v51 = vsub.f32 %v2758_v62, %v294_v37  ;;  %v617_v20 = vmul.f32 %v467_v31, %v467_v31  ;;  %v1640_v3 = vmul.f32 %v2407_v18, %v1540_v57 }
 0x196   :  { %v1890_v28 = vmul.f32 %v2409_v40, %v1790_v50  ;;  %v1161_v29 = vmul.f32 1.442695, %v909_v4  ;;  %v618_v30 = vmul.f32 %v468_v9, %v468_v9  ;;  %v914_v32 = vmul.f32 %v2766_v11, %v763_v63  ;;  %v304_v50 = vpop.permute.xlu1 %303 }
 0x197   :  { %2416 = vpow2.f32 %v1167_v0  ;;  %v1163_v26 = vmul.f32 1.442695, %v910_v55  ;;  %v619_v33 = vmul.f32 %v469_v51, %v469_v51  ;;  %v1389_v10 = vmul.f32 %v2411_v44, %v1289_v12 }
 0x198   :  { %v1589_v47 = vmul.f32 %v2413_v48, %v1489_v24  ;;  %v767_v39 = vsub.f32 0.0, %v617_v20  ;;  %v464_v21 = vsub.f32 %v2754_v60, %v289_v6  ;;  %v1940_v35 = vmul.f32 %v2409_v40, %v1840_v2  ;;  %v1342_v20 = vld [vmem:[#allocation4 + $0x7f8] sm:$0xff]  ;;  %v1542_v2 = vld [vmem:[#allocation4 + $0x800] sm:$0xff] }
 0x199   :  { %v1439_v16 = vmul.f32 %v2411_v44, %v1339_v25  ;;  %2418 = vpow2.f32 %v1169_v17  ;;  %v911_v14 = vmul.f32 %v2766_v11, %v760_v19  ;;  %v1639_v15 = vmul.f32 %v2413_v48, %v1539_v58  ;;  %v1292_v48 = vld [vmem:[#allocation4 + $0x348] sm:$0xff]  ;;  %v1291_v58 = vld [vmem:[#allocation4 + $0x330] sm:$0xff] }
 0x19a   :  { %2420 = vpow2.f32 %v1161_v29  ;;  %v768_v36 = vsub.f32 0.0, %v618_v30  ;;  %v465_v37 = vsub.f32 %v2756_v61, %v289_v6  ;;  %v2415_v23 = vpop.eup %2414  ;;  %v1171_v27 = vmul.f32 1.442695, %v914_v32  ;;  %v1341_v32 = vld [vmem:[#allocation4 + $0x7e0] sm:$0xff] }
 0x19b   :  { %2422 = vpow2.f32 %v1163_v26  ;;  %v769_v42 = vsub.f32 0.0, %v619_v33  ;;  %v466_v46 = vsub.f32 %v2758_v62, %v289_v6  ;;  %v2088_v13 = vadd.f32 %v2087_v5, %v3067_v49  ;;  %v1492_v6 = vld [vmem:[#allocation4 + $0x350] sm:$0xff] }
 0x19c   :  { %v1689_v59 = vadd.f32 %v1589_v47, %v1389_v10  ;;  %v918_v34 = vmul.f32 %v2766_v11, %v767_v39  ;;  %v614_v45 = vmul.f32 %v464_v21, %v464_v21  ;;  %v1690_v18 = vadd.f32 %v1590_v8, %v1390_v56  ;;  %v1491_v47 = vld [vmem:[#allocation4 + $0x338] sm:$0xff]  ;;  %v1541_v39 = vld [vmem:[#allocation4 + $0x7e8] sm:$0xff] }
 0x19d   :  { %v1740_v1 = vadd.f32 %v1640_v3, %v1440_v22  ;;  %v2143_v53 = vadd.f32 %v2142_v43, %v3069_v38  ;;  %v1165_v31 = vmul.f32 1.442695, %v911_v14  ;;  %v1739_v40 = vadd.f32 %v1639_v15, %v1439_v16 }
 0x19e   :  { %v1889_v54 = vmul.f32 %v2415_v23, %v1789_v41  ;;  %v919_v7 = vmul.f32 %v2766_v11, %v768_v36  ;;  %v615_v57 = vmul.f32 %v465_v37, %v465_v37  ;;  %2424 = vpow2.f32 %v1171_v27  ;;  %v299_v37 = vpop.permute.xlu0 %298 }
 0x19f   :  { %v920_v63 = vmul.f32 %v2766_v11, %v769_v42  ;;  %v616_v49 = vmul.f32 %v466_v46, %v466_v46  ;;  %v764_v0 = vsub.f32 0.0, %v614_v45  ;;  %v1939_v4 = vmul.f32 %v2415_v23, %v1839_v52 }
 0x1a0   :  { %v1989_v55 = vadd.f32 %v1889_v54, %v1689_v59  ;;  %v1179_v44 = vmul.f32 1.442695, %v918_v34  ;;  %v765_v56 = vsub.f32 0.0, %v615_v57  ;;  %2426 = vpow2.f32 %v1165_v31  ;;  %v1842_v31 = vld [vmem:[#allocation4 + $0x808] sm:$0xff]  ;;  %v1841_v57 = vld [vmem:[#allocation4 + $0x7f0] sm:$0xff] }
 0x1a1   :  { %v2417_v22 = vpop.eup %2416  ;;  %v766_v5 = vsub.f32 0.0, %v616_v49  ;;  %v915_v38 = vmul.f32 %v2766_v11, %v764_v0  ;;  %v473_v43 = vsub.f32 %v2754_v60, %v304_v50  ;;  %v1990_v8 = vadd.f32 %v1890_v28, %v1690_v18 }
 0x1a2   :  { %v2039_v9 = vadd.f32 %v1939_v4, %v1739_v40  ;;  %v1181_v12 = vmul.f32 1.442695, %v919_v7  ;;  %v916_v24 = vmul.f32 %v2766_v11, %v765_v56  ;;  %v2040_v19 = vadd.f32 %v1940_v35, %v1740_v1  ;;  %v1792_v1 = vld [vmem:[#allocation4 + $0x358] sm:$0xff]  ;;  %v1791_v7 = vld [vmem:[#allocation4 + $0x340] sm:$0xff] }
 0x1a3   :  { %v2419_v17 = vpop.eup %2418  ;;  %v2089_v51 = vadd.f32 %v2088_v13, %v1989_v55  ;;  %v1183_v3 = vmul.f32 1.442695, %v920_v63  ;;  %v474_v25 = vsub.f32 %v2756_v61, %v304_v50  ;;  %2428 = vpow2.f32 %v1179_v44 }
 0x1a4   :  { %v2421_v29 = vpop.eup %2420  ;;  %v2144_v30 = vadd.f32 %v2143_v53, %v2039_v9  ;;  %v917_v28 = vmul.f32 %v2766_v11, %v766_v5  ;;  %v1173_v26 = vmul.f32 1.442695, %v915_v38  ;;  %v1392_v10 = vmul.f32 %v2417_v22, %v1292_v48  ;;  %v1294_v9 = vld [vmem:[#allocation4 + $0x378] sm:$0xff]  ;;  %v1344_v48 = vld [vmem:[#allocation4 + $0x828] sm:$0xff] }
 0x1a5   :  { %v2423_v33 = vpop.eup %2422  ;;  %v1175_v21 = vmul.f32 1.442695, %v916_v24  ;;  %v475_v35 = vsub.f32 %v2758_v62, %v304_v50  ;;  %v623_v16 = vmul.f32 %v473_v43, %v473_v43  ;;  %v1442_v14 = vmul.f32 %v2417_v22, %v1342_v20  ;;  %v314_v20 = vpop.permute.xlu1 %313 }
 0x1a6   :  { %v1592_v15 = vmul.f32 %v2419_v17, %v1492_v6  ;;  %v1642_v36 = vmul.f32 %v2419_v17, %v1542_v2  ;;  %2430 = vpow2.f32 %v1181_v12  ;;  %v1391_v23 = vmul.f32 %v2421_v29, %v1291_v58  ;;  %v1494_v58 = vld [vmem:[#allocation4 + $0x380] sm:$0xff] }
 0x1a7   :  { %v1441_v41 = vmul.f32 %v2421_v29, %v1341_v32  ;;  %2432 = vpow2.f32 %v1183_v3  ;;  %v624_v27 = vmul.f32 %v474_v25, %v474_v25  ;;  %v1591_v42 = vmul.f32 %v2423_v33, %v1491_v47  ;;  %v1544_v32 = vld [vmem:[#allocation4 + $0x830] sm:$0xff] }
 0x1a8   :  { %v1641_v46 = vmul.f32 %v2423_v33, %v1541_v39  ;;  %2434 = vpow2.f32 %v1173_v26  ;;  %v1177_v13 = vmul.f32 1.442695, %v917_v28  ;;  %v2425_v59 = vpop.eup %2424  ;;  %v625_v34 = vmul.f32 %v475_v35, %v475_v35  ;;  %v1794_v28 = vld [vmem:[#allocation4 + $0x388] sm:$0xff] }
 0x1a9   :  { %2436 = vpow2.f32 %v1175_v21  ;;  %v773_v45 = vsub.f32 0.0, %v623_v16  ;;  %v470_v18 = vsub.f32 %v2754_v60, %v299_v37  ;;  %v2090_v52 = vadd.f32 %v2089_v51, %v1990_v8  ;;  %v1293_v16 = vld [vmem:[#allocation4 + $0x360] sm:$0xff] }
 0x1aa   :  { %v2427_v53 = vpop.eup %2426  ;;  %v1692_v40 = vadd.f32 %v1592_v15, %v1392_v10  ;;  %v1742_v54 = vadd.f32 %v1642_v36, %v1442_v14  ;;  %v2145_v50 = vadd.f32 %v2144_v30, %v2040_v19  ;;  %v774_v63 = vsub.f32 0.0, %v624_v27  ;;  %v1343_v14 = vld [vmem:[#allocation4 + $0x810] sm:$0xff] }
 0x1ab   :  { %v1691_v49 = vadd.f32 %v1591_v42, %v1391_v23  ;;  %v1741_v0 = vadd.f32 %v1641_v46, %v1441_v41  ;;  %2438 = vpow2.f32 %v1177_v13  ;;  %v471_v4 = vsub.f32 %v2756_v61, %v299_v37  ;;  %v1493_v23 = vld [vmem:[#allocation4 + $0x368] sm:$0xff]  ;;  %v1543_v41 = vld [vmem:[#allocation4 + $0x818] sm:$0xff] }
 0x1ac   :  { %v1892_v55 = vmul.f32 %v2425_v59, %v1792_v1  ;;  %v775_v44 = vsub.f32 0.0, %v625_v34  ;;  %v924_v56 = vmul.f32 %v2766_v11, %v773_v45  ;;  %v620_v22 = vmul.f32 %v470_v18, %v470_v18  ;;  %v1844_v1 = vld [vmem:[#allocation4 + $0x838] sm:$0xff] }
 0x1ad   :  { %v2429_v5 = vpop.eup %2428  ;;  %v1942_v38 = vmul.f32 %v2425_v59, %v1842_v31  ;;  %v1891_v43 = vmul.f32 %v2427_v53, %v1791_v7  ;;  %v1941_v8 = vmul.f32 %v2427_v53, %v1841_v57  ;;  %v621_v12 = vmul.f32 %v471_v4, %v471_v4 }
 0x1ae   :  { %v1992_v24 = vadd.f32 %v1892_v55, %v1692_v40  ;;  %v925_v17 = vmul.f32 %v2766_v11, %v774_v63  ;;  %v472_v19 = vsub.f32 %v2758_v62, %v299_v37  ;;  %v770_v51 = vsub.f32 0.0, %v620_v22 }
 0x1af   :  { %v2042_v2 = vadd.f32 %v1942_v38, %v1742_v54  ;;  %v1991_v3 = vadd.f32 %v1891_v43, %v1691_v49  ;;  %v2041_v25 = vadd.f32 %v1941_v8, %v1741_v0  ;;  %v771_v29 = vsub.f32 0.0, %v621_v12  ;;  %v1793_v54 = vld [vmem:[#allocation4 + $0x370] sm:$0xff] }
 0x1b0   :  { %v2431_v6 = vpop.eup %2430  ;;  %v1394_v26 = vmul.f32 %v2429_v5, %v1294_v9  ;;  %v1444_v33 = vmul.f32 %v2429_v5, %v1344_v48  ;;  %v926_v10 = vmul.f32 %v2766_v11, %v775_v44  ;;  %v1191_v47 = vmul.f32 1.442695, %v924_v56  ;;  %v309_v5 = vpop.permute.xlu0 %308  ;;  %v1843_v48 = vld [vmem:[#allocation4 + $0x820] sm:$0xff] }
 0x1b1   :  { %v2433_v30 = vpop.eup %2432  ;;  %v2091_v21 = vadd.f32 %v2090_v52, %v1991_v3  ;;  %v2146_v35 = vadd.f32 %v2145_v50, %v2041_v25  ;;  %v921_v15 = vmul.f32 %v2766_v11, %v770_v51  ;;  %v479_v36 = vsub.f32 %v2754_v60, %v314_v20  ;;  %v324_v9 = vpop.permute.xlu1 %323 }
 0x1b2   :  { %v2435_v39 = vpop.eup %2434  ;;  %v1193_v27 = vmul.f32 1.442695, %v925_v17  ;;  %v622_v42 = vmul.f32 %v472_v19, %v472_v19  ;;  %v922_v46 = vmul.f32 %v2766_v11, %v771_v29  ;;  %v480_v13 = vsub.f32 %v2756_v61, %v314_v20 }
 0x1b3   :  { %v2437_v37 = vpop.eup %2436  ;;  %v1594_v59 = vmul.f32 %v2431_v6, %v1494_v58  ;;  %v1644_v34 = vmul.f32 %v2431_v6, %v1544_v32  ;;  %v1894_v45 = vmul.f32 %v2433_v30, %v1794_v28  ;;  %v481_v18 = vsub.f32 %v2758_v62, %v314_v20 }
 0x1b4   :  { %v1393_v52 = vmul.f32 %v2435_v39, %v1293_v16  ;;  %v1443_v53 = vmul.f32 %v2435_v39, %v1343_v14  ;;  %2440 = vpow2.f32 %v1191_v47  ;;  %v1195_v31 = vmul.f32 1.442695, %v926_v10 }
 0x1b5   :  { %v2439_v40 = vpop.eup %2438  ;;  %v1593_v7 = vmul.f32 %v2437_v37, %v1493_v23  ;;  %v1643_v57 = vmul.f32 %v2437_v37, %v1543_v41  ;;  %v1185_v50 = vmul.f32 1.442695, %v921_v15  ;;  %v629_v63 = vmul.f32 %v479_v36, %v479_v36  ;;  %v1296_v15 = vld [vmem:[#allocation4 + $0x3a8] sm:$0xff] }
 0x1b6   :  { %2442 = vpow2.f32 %v1193_v27  ;;  %v772_v49 = vsub.f32 0.0, %v622_v42  ;;  %v1187_v0 = vmul.f32 1.442695, %v922_v46  ;;  %v630_v4 = vmul.f32 %v480_v13, %v480_v13  ;;  %v1346_v46 = vld [vmem:[#allocation4 + $0x858] sm:$0xff]  ;;  %v1496_v13 = vld [vmem:[#allocation4 + $0x3b0] sm:$0xff] }
 0x1b7   :  { %v1694_v55 = vadd.f32 %v1594_v59, %v1394_v26  ;;  %v1744_v44 = vadd.f32 %v1644_v34, %v1444_v33  ;;  %v1944_v56 = vmul.f32 %v2433_v30, %v1844_v1  ;;  %v631_v22 = vmul.f32 %v481_v18, %v481_v18  ;;  %v1546_v18 = vld [vmem:[#allocation4 + $0x860] sm:$0xff] }
 0x1b8   :  { %v2092_v38 = vadd.f32 %v2091_v21, %v1992_v24  ;;  %v2147_v43 = vadd.f32 %v2146_v35, %v2042_v2  ;;  %v1893_v8 = vmul.f32 %v2439_v40, %v1793_v54  ;;  %2444 = vpow2.f32 %v1195_v31 }
 0x1b9   :  { %v1693_v12 = vadd.f32 %v1593_v7, %v1393_v52  ;;  %v1743_v17 = vadd.f32 %v1643_v57, %v1443_v53  ;;  %2446 = vpow2.f32 %v1185_v50  ;;  %v779_v19 = vsub.f32 0.0, %v629_v63 }
 0x1ba   :  { %v923_v51 = vmul.f32 %v2766_v11, %v772_v49  ;;  %2448 = vpow2.f32 %v1187_v0  ;;  %v780_v20 = vsub.f32 0.0, %v630_v4  ;;  %v476_v6 = vsub.f32 %v2754_v60, %v309_v5  ;;  %v319_v4 = vpop.permute.xlu0 %318 }
 0x1bb   :  { %v781_v3 = vsub.f32 0.0, %v631_v22  ;;  %v477_v25 = vsub.f32 %v2756_v61, %v309_v5  ;;  %v478_v24 = vsub.f32 %v2758_v62, %v309_v5  ;;  %v485_v2 = vsub.f32 %v2754_v60, %v324_v9  ;;  %v1495_v22 = vld [vmem:[#allocation4 + $0x398] sm:$0xff] }
 0x1bc   :  { %v1994_v29 = vadd.f32 %v1894_v45, %v1694_v55  ;;  %v1943_v30 = vmul.f32 %v2439_v40, %v1843_v48  ;;  %v626_v58 = vmul.f32 %v476_v6, %v476_v6  ;;  %v486_v32 = vsub.f32 %v2756_v61, %v324_v9 }
 0x1bd   :  { %v1993_v28 = vadd.f32 %v1893_v8, %v1693_v12  ;;  %v930_v26 = vmul.f32 %v2766_v11, %v779_v19  ;;  %v627_v33 = vmul.f32 %v477_v25, %v477_v25  ;;  %v628_v10 = vmul.f32 %v478_v24, %v478_v24  ;;  %v1796_v8 = vld [vmem:[#allocation4 + $0x3b8] sm:$0xff]  ;;  %v1545_v19 = vld [vmem:[#allocation4 + $0x848] sm:$0xff] }
 0x1be   :  { %v2441_v47 = vpop.eup %2440  ;;  %v1189_v39 = vmul.f32 1.442695, %v923_v51  ;;  %v931_v21 = vmul.f32 %v2766_v11, %v780_v20  ;;  %v776_v35 = vsub.f32 0.0, %v626_v58  ;;  %v635_v16 = vmul.f32 %v485_v2, %v485_v2  ;;  %v334_v58 = vpop.permute.xlu1 %333 }
 0x1bf   :  { %v2043_v14 = vadd.f32 %v1943_v30, %v1743_v17  ;;  %v932_v36 = vmul.f32 %v2766_v11, %v781_v3  ;;  %v777_v37 = vsub.f32 0.0, %v627_v33  ;;  %v636_v23 = vmul.f32 %v486_v32, %v486_v32  ;;  %v1345_v17 = vld [vmem:[#allocation4 + $0x840] sm:$0xff] }
 0x1c0   :  { %v2443_v41 = vpop.eup %2442  ;;  %v2044_v27 = vadd.f32 %v1944_v56, %v1744_v44  ;;  %v2093_v42 = vadd.f32 %v2092_v38, %v1993_v28  ;;  %v927_v59 = vmul.f32 %v2766_v11, %v776_v35  ;;  %v487_v34 = vsub.f32 %v2758_v62, %v324_v9  ;;  %v1295_v56 = vld [vmem:[#allocation4 + $0x390] sm:$0xff] }
 0x1c1   :  { %v2148_v45 = vadd.f32 %v2147_v43, %v2043_v14  ;;  %v1203_v1 = vmul.f32 1.442695, %v930_v26  ;;  %v778_v52 = vsub.f32 0.0, %v628_v10  ;;  %v928_v53 = vmul.f32 %v2766_v11, %v777_v37  ;;  %v1795_v37 = vld [vmem:[#allocation4 + $0x3a0] sm:$0xff] }
 0x1c2   :  { %v2445_v31 = vpop.eup %2444  ;;  %v1396_v40 = vmul.f32 %v2441_v47, %v1296_v15  ;;  %2450 = vpow2.f32 %v1189_v39  ;;  %v1205_v54 = vmul.f32 1.442695, %v931_v21  ;;  %v785_v7 = vsub.f32 0.0, %v635_v16  ;;  %v1846_v21 = vld [vmem:[#allocation4 + $0x868] sm:$0xff] }
 0x1c3   :  { %v2447_v57 = vpop.eup %2446  ;;  %v1446_v50 = vmul.f32 %v2441_v47, %v1346_v46  ;;  %v1596_v63 = vmul.f32 %v2443_v41, %v1496_v13  ;;  %v1207_v49 = vmul.f32 1.442695, %v932_v36  ;;  %v786_v0 = vsub.f32 0.0, %v636_v23  ;;  %v1845_v23 = vld [vmem:[#allocation4 + $0x850] sm:$0xff] }
 0x1c4   :  { %v2449_v55 = vpop.eup %2448  ;;  %v1646_v44 = vmul.f32 %v2443_v41, %v1546_v18  ;;  %v3117_v5 = vadd.f32 %v2093_v42, %v1994_v29  ;;  %v1197_v38 = vmul.f32 1.442695, %v927_v59  ;;  %v637_v43 = vmul.f32 %v487_v34, %v487_v34 }
 0x1c5   :  { %v3119_v9 = vadd.f32 %v2148_v45, %v2044_v27  ;;  %2452 = vpow2.f32 %v1203_v1  ;;  %v929_v48 = vmul.f32 %v2766_v11, %v778_v52  ;;  %v1199_v12 = vmul.f32 1.442695, %v928_v53 }
 0x1c6   :  { %2454 = vpow2.f32 %v1205_v54  ;;  %v936_v51 = vmul.f32 %v2766_v11, %v785_v7  ;;  %v482_v20 = vsub.f32 %v2754_v60, %v319_v4  ;;  %v483_v6 = vsub.f32 %v2756_v61, %v319_v4  ;;  %v1298_v54 = vld [vmem:[#allocation4 + $0x3d8] sm:$0xff]  ;;  %v1348_v7 = vld [vmem:[#allocation4 + $0x888] sm:$0xff] }
 0x1c7   :  { %v1395_v3 = vmul.f32 %v2447_v57, %v1295_v56  ;;  %v1595_v25 = vmul.f32 %v2449_v55, %v1495_v22  ;;  %2456 = vpow2.f32 %v1207_v49  ;;  %v937_v24 = vmul.f32 %v2766_v11, %v786_v0  ;;  %v1498_v0 = vld [vmem:[#allocation4 + $0x3e0] sm:$0xff] }
 0x1c8   :  { %v1696_v2 = vadd.f32 %v1596_v63, %v1396_v40  ;;  %v1896_v29 = vmul.f32 %v2445_v31, %v1796_v8  ;;  %2458 = vpow2.f32 %v1197_v38  ;;  %v787_v30 = vsub.f32 0.0, %v637_v43 }
 0x1c9   :  { %v1445_v32 = vmul.f32 %v2447_v57, %v1345_v17  ;;  %v1645_v28 = vmul.f32 %v2449_v55, %v1545_v19  ;;  %2460 = vpow2.f32 %v1199_v12  ;;  %v1201_v26 = vmul.f32 1.442695, %v929_v48  ;;  %v1297_v17 = vld [vmem:[#allocation4 + $0x3c0] sm:$0xff]  ;;  %v1347_v19 = vld [vmem:[#allocation4 + $0x870] sm:$0xff] }
 0x1ca   :  { %v1215_v33 = vmul.f32 1.442695, %v936_v51  ;;  %v484_v10 = vsub.f32 %v2758_v62, %v319_v4  ;;  %v632_v47 = vmul.f32 %v482_v20, %v482_v20  ;;  %v633_v39 = vmul.f32 %v483_v6, %v483_v6 }
 0x1cb   :  { %v1746_v35 = vadd.f32 %v1646_v44, %v1446_v50  ;;  %v1695_v16 = vadd.f32 %v1595_v25, %v1395_v3  ;;  %v1217_v14 = vmul.f32 1.442695, %v937_v24  ;;  %v491_v15 = vsub.f32 %v2754_v60, %v334_v58  ;;  %v329_v50 = vpop.permute.xlu0 %328  ;;  %v1497_v24 = vld [vmem:[#allocation4 + $0x3c8] sm:$0xff] }
 0x1cc   :  { %v2451_v36 = vpop.eup %2450  ;;  %v938_v41 = vmul.f32 %v2766_v11, %v787_v30  ;;  %v634_v27 = vmul.f32 %v484_v10, %v484_v10  ;;  %v782_v42 = vsub.f32 0.0, %v632_v47  ;;  %v492_v46 = vsub.f32 %v2756_v61, %v334_v58 }
 0x1cd   :  { %v1745_v13 = vadd.f32 %v1645_v28, %v1445_v32  ;;  %2462 = vpow2.f32 %v1201_v26  ;;  %v783_v59 = vsub.f32 0.0, %v633_v39  ;;  %v493_v34 = vsub.f32 %v2758_v62, %v334_v58  ;;  %v1548_v32 = vld [vmem:[#allocation4 + $0x890] sm:$0xff]  ;;  %v1798_v28 = vld [vmem:[#allocation4 + $0x3e8] sm:$0xff] }
 0x1ce   :  { %v1946_v45 = vmul.f32 %v2445_v31, %v1846_v21  ;;  %v1996_v18 = vadd.f32 %v1896_v29, %v1696_v2  ;;  %2464 = vpow2.f32 %v1215_v33  ;;  %v784_v1 = vsub.f32 0.0, %v634_v27  ;;  %v1547_v2 = vld [vmem:[#allocation4 + $0x878] sm:$0xff] }
 0x1cf   :  { %v2453_v52 = vpop.eup %2452  ;;  %v1895_v53 = vmul.f32 %v2451_v36, %v1795_v37  ;;  %v1945_v40 = vmul.f32 %v2451_v36, %v1845_v23  ;;  %2466 = vpow2.f32 %v1217_v14  ;;  %v641_v57 = vmul.f32 %v491_v15, %v491_v15 }
 0x1d0   :  { %v2455_v63 = vpop.eup %2454  ;;  %v2046_v49 = vadd.f32 %v1946_v45, %v1746_v35  ;;  %v1219_v4 = vmul.f32 1.442695, %v938_v41  ;;  %v933_v55 = vmul.f32 %v2766_v11, %v782_v42  ;;  %v642_v44 = vmul.f32 %v492_v46, %v492_v46  ;;  %v1797_v42 = vld [vmem:[#allocation4 + $0x3d0] sm:$0xff]  ;;  %v1847_v46 = vld [vmem:[#allocation4 + $0x880] sm:$0xff] }
 0x1d1   :  { %v3132_v56 = vpop.eup %2456  ;;  %v1995_v31 = vadd.f32 %v1895_v53, %v1695_v16  ;;  %v2045_v22 = vadd.f32 %v1945_v40, %v1745_v13  ;;  %v934_v38 = vmul.f32 %v2766_v11, %v783_v59  ;;  %v643_v43 = vmul.f32 %v493_v34, %v493_v34  ;;  %v1300_v34 = vld [vmem:[#allocation4 + $0x408] sm:$0xff]  ;;  %v1550_v53 = vld [vmem:[#allocation4 + $0x8c0] sm:$0xff] }
 0x1d2   :  { %v2459_v8 = vpop.eup %2458  ;;  %v1398_v48 = vmul.f32 %v2453_v52, %v1298_v54  ;;  %v1448_v12 = vmul.f32 %v2453_v52, %v1348_v7  ;;  %v935_v51 = vmul.f32 %v2766_v11, %v784_v1  ;;  %v488_v20 = vsub.f32 %v2754_v60, %v329_v50  ;;  %v1350_v1 = vld [vmem:[#allocation4 + $0x8b8] sm:$0xff]  ;;  %v1500_v52 = vld [vmem:[#allocation4 + $0x410] sm:$0xff] }
 0x1d3   :  { %v2461_v6 = vpop.eup %2460  ;;  %v2095_v3 = vadd.f32 %v3117_v5, %v1995_v31  ;;  %v1598_v25 = vmul.f32 %v2455_v63, %v1498_v0  ;;  %v791_v29 = vsub.f32 0.0, %v641_v57  ;;  %v489_v30 = vsub.f32 %v2756_v61, %v329_v50  ;;  %v1848_v57 = vld [vmem:[#allocation4 + $0x898] sm:$0xff]  ;;  %v344_v31 = vpop.permute.xlu1 %343 }
 0x1d4   :  { %v2150_v58 = vadd.f32 %v3119_v9, %v2045_v22  ;;  %2468 = vpow2.f32 %v1219_v4  ;;  %v1209_v26 = vmul.f32 1.442695, %v933_v55  ;;  %v792_v33 = vsub.f32 0.0, %v642_v44 }
 0x1d5   :  { %v1397_v10 = vmul.f32 %v2459_v8, %v1297_v17  ;;  %v1447_v47 = vmul.f32 %v2459_v8, %v1347_v19  ;;  %v1211_v39 = vmul.f32 1.442695, %v934_v38  ;;  %v793_v21 = vsub.f32 0.0, %v643_v43 }
 0x1d6   :  { %v1597_v35 = vmul.f32 %v2461_v6, %v1497_v24  ;;  %v1647_v16 = vmul.f32 %v2461_v6, %v1547_v2  ;;  %v1213_v5 = vmul.f32 1.442695, %v935_v51  ;;  %v638_v14 = vmul.f32 %v488_v20, %v488_v20  ;;  %v1800_v2 = vld [vmem:[#allocation4 + $0x418] sm:$0xff] }
 0x1d7   :  { %v2463_v15 = vpop.eup %2462  ;;  %v1648_v36 = vmul.f32 %v2455_v63, %v1548_v32  ;;  %v1898_v37 = vmul.f32 %v3132_v56, %v1798_v28  ;;  %v942_v23 = vmul.f32 %v2766_v11, %v791_v29  ;;  %v639_v9 = vmul.f32 %v489_v30, %v489_v30  ;;  %v1850_v29 = vld [vmem:[#allocation4 + $0x8c8] sm:$0xff] }
 0x1d8   :  { %v2465_v41 = vpop.eup %2464  ;;  %v1698_v27 = vadd.f32 %v1598_v25, %v1398_v48  ;;  %v2096_v13 = vadd.f32 %v2095_v3, %v1996_v18  ;;  %v2151_v59 = vadd.f32 %v2150_v58, %v2046_v49  ;;  %2470 = vpow2.f32 %v1209_v26 }
 0x1d9   :  { %v2467_v45 = vpop.eup %2466  ;;  %2472 = vpow2.f32 %v1211_v39  ;;  %v943_v40 = vmul.f32 %v2766_v11, %v792_v33  ;;  %v944_v54 = vmul.f32 %v2766_v11, %v793_v21  ;;  %v490_v7 = vsub.f32 %v2758_v62, %v329_v50 }
 0x1da   :  { %v1697_v63 = vadd.f32 %v1597_v35, %v1397_v10  ;;  %v1747_v0 = vadd.f32 %v1647_v16, %v1447_v47  ;;  %2474 = vpow2.f32 %v1213_v5  ;;  %v788_v4 = vsub.f32 0.0, %v638_v14  ;;  %v1299_v35 = vld [vmem:[#allocation4 + $0x3f0] sm:$0xff] }
 0x1db   :  { %v1897_v18 = vmul.f32 %v2463_v15, %v1797_v42  ;;  %v1947_v49 = vmul.f32 %v2463_v15, %v1847_v46  ;;  %v1227_v55 = vmul.f32 1.442695, %v942_v23  ;;  %v789_v44 = vsub.f32 0.0, %v639_v9  ;;  %v1349_v15 = vld [vmem:[#allocation4 + $0x8a0] sm:$0xff] }
 0x1dc   :  { %v1400_v22 = vmul.f32 %v2465_v41, %v1300_v34  ;;  %v1450_v38 = vmul.f32 %v2465_v41, %v1350_v1  ;;  %v1600_v43 = vmul.f32 %v2467_v45, %v1500_v52  ;;  %v1650_v8 = vmul.f32 %v2467_v45, %v1550_v53  ;;  %v1799_v42 = vld [vmem:[#allocation4 + $0x400] sm:$0xff]  ;;  %v1849_v34 = vld [vmem:[#allocation4 + $0x8b0] sm:$0xff] }
 0x1dd   :  { %v1748_v48 = vadd.f32 %v1648_v36, %v1448_v12  ;;  %v1948_v17 = vmul.f32 %v3132_v56, %v1848_v57  ;;  %v1229_v19 = vmul.f32 1.442695, %v943_v40  ;;  %v640_v51 = vmul.f32 %v490_v7, %v490_v7  ;;  %v1499_v36 = vld [vmem:[#allocation4 + $0x3f8] sm:$0xff]  ;;  %v354_v40 = vpop.permute.xlu1 %353 }
 0x1de   :  { %v2469_v50 = vpop.eup %2468  ;;  %v1997_v20 = vadd.f32 %v1897_v18, %v1697_v63  ;;  %v2047_v6 = vadd.f32 %v1947_v49, %v1747_v0  ;;  %v939_v3 = vmul.f32 %v2766_v11, %v788_v4  ;;  %v497_v25 = vsub.f32 %v2754_v60, %v344_v31 }
 0x1df   :  { %v1998_v24 = vadd.f32 %v1898_v37, %v1698_v27  ;;  %2476 = vpow2.f32 %v1227_v55  ;;  %v1231_v30 = vmul.f32 1.442695, %v944_v54  ;;  %v940_v58 = vmul.f32 %v2766_v11, %v789_v44  ;;  %v1549_v27 = vld [vmem:[#allocation4 + $0x8a8] sm:$0xff] }
 0x1e0   :  { %v2097_v32 = vadd.f32 %v2096_v13, %v1997_v20  ;;  %v2152_v12 = vadd.f32 %v2151_v59, %v2047_v6  ;;  %v1700_v28 = vadd.f32 %v1600_v43, %v1400_v22  ;;  %v1750_v56 = vadd.f32 %v1650_v8, %v1450_v38  ;;  %v339_v59 = vpop.permute.xlu0 %338 }
 0x1e1   :  { %v2048_v26 = vadd.f32 %v1948_v17, %v1748_v48  ;;  %2478 = vpow2.f32 %v1229_v19  ;;  %v790_v33 = vsub.f32 0.0, %v640_v51  ;;  %v498_v10 = vsub.f32 %v2756_v61, %v344_v31  ;;  %v1302_v48 = vld [vmem:[#allocation4 + $0x438] sm:$0xff] }
 0x1e2   :  { %v2471_v47 = vpop.eup %2470  ;;  %v1900_v39 = vmul.f32 %v2469_v50, %v1800_v2  ;;  %v1950_v21 = vmul.f32 %v2469_v50, %v1850_v29  ;;  %v1221_v16 = vmul.f32 1.442695, %v939_v3  ;;  %v647_v5 = vmul.f32 %v497_v25, %v497_v25  ;;  %v1352_v2 = vld [vmem:[#allocation4 + $0x8e8] sm:$0xff]  ;;  %v1502_v29 = vld [vmem:[#allocation4 + $0x440] sm:$0xff] }
 0x1e3   :  { %v2473_v14 = vpop.eup %2472  ;;  %2480 = vpow2.f32 %v1231_v30  ;;  %v1223_v37 = vmul.f32 1.442695, %v940_v58  ;;  %v3154_v46 = vadd.f32 %v2097_v32, %v1998_v24  ;;  %v3156_v13 = vadd.f32 %v2152_v12, %v2048_v26 }
 0x1e4   :  { %v2475_v23 = vpop.eup %2474  ;;  %v3150_v9 = vadd.f32 %v1900_v39, %v1700_v28  ;;  %v3152_v41 = vadd.f32 %v1950_v21, %v1750_v56  ;;  %v1399_v45 = vmul.f32 %v2471_v47, %v1299_v35  ;;  %v941_v1 = vmul.f32 %v2766_v11, %v790_v33 }
 0x1e5   :  { %v499_v52 = vsub.f32 %v2758_v62, %v344_v31  ;;  %v648_v53 = vmul.f32 %v498_v10, %v498_v10  ;;  %v1449_v54 = vmul.f32 %v2471_v47, %v1349_v15  ;;  %v1599_v7 = vmul.f32 %v2473_v14, %v1499_v36  ;;  %v1552_v10 = vld [vmem:[#allocation4 + $0x8f0] sm:$0xff] }
 0x1e6   :  { %2482 = vpow2.f32 %v1221_v16  ;;  %v797_v57 = vsub.f32 0.0, %v647_v5  ;;  %v1649_v63 = vmul.f32 %v2473_v14, %v1549_v27  ;;  %v1899_v0 = vmul.f32 %v2475_v23, %v1799_v42 }
 0x1e7   :  { %2484 = vpow2.f32 %v1223_v37  ;;  %v494_v4 = vsub.f32 %v2754_v60, %v339_v59  ;;  %v1949_v18 = vmul.f32 %v2475_v23, %v1849_v34  ;;  %v495_v49 = vsub.f32 %v2756_v61, %v339_v59 }
 0x1e8   :  { %v496_v55 = vsub.f32 %v2758_v62, %v339_v59  ;;  %v503_v44 = vsub.f32 %v2754_v60, %v354_v40  ;;  %v1225_v31 = vmul.f32 1.442695, %v941_v1  ;;  %v798_v38 = vsub.f32 0.0, %v648_v53  ;;  %v1501_v1 = vld [vmem:[#allocation4 + $0x428] sm:$0xff] }
 0x1e9   :  { %v2477_v22 = vpop.eup %2476  ;;  %v644_v43 = vmul.f32 %v494_v4, %v494_v4  ;;  %v504_v8 = vsub.f32 %v2756_v61, %v354_v40  ;;  %v649_v17 = vmul.f32 %v499_v52, %v499_v52  ;;  %v948_v19 = vmul.f32 %v2766_v11, %v797_v57 }
 0x1ea   :  { %v645_v51 = vmul.f32 %v495_v49, %v495_v49  ;;  %v646_v50 = vmul.f32 %v496_v55, %v496_v55  ;;  %v1699_v6 = vadd.f32 %v1599_v7, %v1399_v45  ;;  %v653_v25 = vmul.f32 %v503_v44, %v503_v44  ;;  %v1301_v45 = vld [vmem:[#allocation4 + $0x420] sm:$0xff]  ;;  %v1551_v7 = vld [vmem:[#allocation4 + $0x8d8] sm:$0xff] }
 0x1eb   :  { %v2479_v20 = vpop.eup %2478  ;;  %v794_v3 = vsub.f32 0.0, %v644_v43  ;;  %v1749_v24 = vadd.f32 %v1649_v63, %v1449_v54  ;;  %v654_v32 = vmul.f32 %v504_v8, %v504_v8  ;;  %v2564_v12 = vmov 0.0  }
 0x1ec   :  { %v795_v30 = vsub.f32 0.0, %v645_v51  ;;  %v796_v58 = vsub.f32 0.0, %v646_v50  ;;  %34 = vst [vmem:[#allocation2] sm:$0x3] %v2564_v12  ;;  %v1402_v56 = vmul.f32 %v2477_v22, %v1302_v48  ;;  %2486 = vpow2.f32 %v1225_v31 }
 0x1ed   :  { %v2481_v28 = vpop.eup %2480  ;;  %v949_v26 = vmul.f32 %v2766_v11, %v798_v38  ;;  %v945_v33 = vmul.f32 %v2766_v11, %v794_v3  ;;  %v799_v47 = vsub.f32 0.0, %v649_v17  ;;  %v1239_v39 = vmul.f32 1.442695, %v948_v19  ;;  %v1852_v38 = vld [vmem:[#allocation4 + $0x8f8] sm:$0xff] }
 0x1ee   :  { %v946_v21 = vmul.f32 %v2766_v11, %v795_v30  ;;  %v505_v35 = vsub.f32 %v2758_v62, %v354_v40  ;;  %v1452_v16 = vmul.f32 %v2477_v22, %v1352_v2  ;;  %v1602_v5 = vmul.f32 %v2479_v20, %v1502_v29  ;;  %v1351_v40 = vld [vmem:[#allocation4 + $0x8d0] sm:$0xff] }
 0x1ef   :  { %v1233_v14 = vmul.f32 1.442695, %v945_v33  ;;  %v803_v15 = vsub.f32 0.0, %v653_v25  ;;  %v1999_v37 = vadd.f32 %v1899_v0, %v1699_v6  ;;  %v2049_v23 = vadd.f32 %v1949_v18, %v1749_v24  ;;  %v349_v0 = vpop.permute.xlu0 %348  ;;  %v1802_v18 = vld [vmem:[#allocation4 + $0x448] sm:$0xff]  ;;  %v1851_v6 = vld [vmem:[#allocation4 + $0x8e0] sm:$0xff] }
 0x1f0   :  { %v2483_v36 = vpop.eup %2482  ;;  %v947_v27 = vmul.f32 %v2766_v11, %v796_v58  ;;  %v804_v42 = vsub.f32 0.0, %v654_v32  ;;  %v1652_v34 = vmul.f32 %v2479_v20, %v1552_v10  ;;  %v1241_v52 = vmul.f32 1.442695, %v949_v26  ;;  %v1801_v20 = vld [vmem:[#allocation4 + $0x430] sm:$0xff] }
 0x1f1   :  { %v2485_v59 = vpop.eup %2484  ;;  %2488 = vpow2.f32 %v1233_v14  ;;  %v1235_v53 = vmul.f32 1.442695, %v946_v21  ;;  %v2099_v54 = vadd.f32 %v3154_v46, %v1999_v37  ;;  %v950_v57 = vmul.f32 %v2766_v11, %v799_v47  ;;  %v1353_v21 = vld [vmem:[#allocation4 + $0x900] sm:$0xff] }
 0x1f2   :  { %2490 = vpow2.f32 %v1239_v39  ;;  %v655_v63 = vmul.f32 %v505_v35, %v505_v35  ;;  %v2154_v4 = vadd.f32 %v3156_v13, %v2049_v23  ;;  %v3174_v49 = vadd.f32 %v1602_v5, %v1402_v56  ;;  %v1303_v39 = vld [vmem:[#allocation4 + $0x450] sm:$0xff] }
 0x1f3   :  { %2492 = vpow2.f32 %v1235_v53  ;;  %v954_v55 = vmul.f32 %v2766_v11, %v803_v15  ;;  %v1401_v44 = vmul.f32 %v2483_v36, %v1301_v45  ;;  %v1601_v22 = vmul.f32 %v2485_v59, %v1501_v1 }
 0x1f4   :  { %v1237_v31 = vmul.f32 1.442695, %v947_v27  ;;  %v955_v46 = vmul.f32 %v2766_v11, %v804_v42  ;;  %v1451_v43 = vmul.f32 %v2483_v36, %v1351_v40  ;;  %v1651_v8 = vmul.f32 %v2485_v59, %v1551_v7  ;;  %v1553_v36 = vld [vmem:[#allocation4 + $0x908] sm:$0xff]  ;;  %v1354_v7 = vld [vmem:[#allocation4 + $0x918] sm:$0xff] }
 0x1f5   :  { %2494 = vpow2.f32 %v1241_v52  ;;  %v500_v48 = vsub.f32 %v2754_v60, %v349_v0  ;;  %v1752_v17 = vadd.f32 %v1652_v34, %v1452_v16  ;;  %v1902_v19 = vmul.f32 %v2481_v28, %v1802_v18  ;;  %v1304_v34 = vld [vmem:[#allocation4 + $0x468] sm:$0xff] }
 0x1f6   :  { %v1243_v13 = vmul.f32 1.442695, %v950_v57  ;;  %v805_v51 = vsub.f32 0.0, %v655_v63  ;;  %v2487_v50 = vpop.eup %2486  ;;  %v1251_v3 = vmul.f32 1.442695, %v954_v55  ;;  %v501_v25 = vsub.f32 %v2756_v61, %v349_v0  ;;  %v1503_v61 = vld [vmem:[#allocation4 + $0x458] sm:$0xff] }
 0x1f7   :  { %v502_v24 = vsub.f32 %v2758_v62, %v349_v0  ;;  %v650_v2 = vmul.f32 %v500_v48, %v500_v48  ;;  %v1952_v29 = vmul.f32 %v2481_v28, %v1852_v38  ;;  %v1701_v30 = vadd.f32 %v1601_v22, %v1401_v44  ;;  %v1554_v0 = vld [vmem:[#allocation4 + $0x920] sm:$0xff]  ;;  %v1853_v38 = vld [vmem:[#allocation4 + $0x910] sm:$0xff] }
 0x1f8   :  { %2496 = vpow2.f32 %v1237_v31  ;;  %v1253_v58 = vmul.f32 1.442695, %v955_v46  ;;  %v1751_v32 = vadd.f32 %v1651_v8, %v1451_v43  ;;  %v651_v12 = vmul.f32 %v501_v25, %v501_v25  ;;  %v1803_v46 = vld [vmem:[#allocation4 + $0x460] sm:$0xff]  ;;  %v1356_v25 = vld [vmem:[#allocation4 + $0x948] sm:$0xff] }
 0x1f9   :  { %v652_v60 = vmul.f32 %v502_v24, %v502_v24  ;;  %v800_v56 = vsub.f32 0.0, %v650_v2  ;;  %v1901_v26 = vmul.f32 %v2487_v50, %v1801_v20  ;;  %v1951_v33 = vmul.f32 %v2487_v50, %v1851_v6  ;;  %v1506_v2 = vld [vmem:[#allocation4 + $0x4a0] sm:$0xff] }
 0x1fa   :  { %2498 = vpow2.f32 %v1243_v13  ;;  %v956_v10 = vmul.f32 %v2766_v11, %v805_v51  ;;  %v801_v62 = vsub.f32 0.0, %v651_v12  ;;  %v2100_v5 = vadd.f32 %v2099_v54, %v3150_v9  ;;  %v1504_v9 = vld [vmem:[#allocation4 + $0x470] sm:$0xff]  ;;  %v1804_v51 = vld [vmem:[#allocation4 + $0x478] sm:$0xff] }
 0x1fb   :  { %v2489_v47 = vpop.eup %2488  ;;  %2500 = vpow2.f32 %v1251_v3  ;;  %v802_v35 = vsub.f32 0.0, %v652_v60  ;;  %v951_v28 = vmul.f32 %v2766_v11, %v800_v56  ;;  %v2155_v14 = vadd.f32 %v2154_v4, %v3152_v41  ;;  %v1306_v3 = vld [vmem:[#allocation4 + $0x498] sm:$0xff]  ;;  %v1305_v60 = vld [vmem:[#allocation4 + $0x480] sm:$0xff]  ;;  %v1355_v56 = vld [vmem:[#allocation4 + $0x930] sm:$0xff] }
 0x1fc   :  { %v2491_v16 = vpop.eup %2490  ;;  %v2001_v15 = vadd.f32 %v1901_v26, %v1701_v30  ;;  %2502 = vpow2.f32 %v1253_v58  ;;  %v2051_v23 = vadd.f32 %v1951_v33, %v1751_v32  ;;  %v952_v27 = vmul.f32 %v2766_v11, %v801_v62 }
 0x1fd   :  { %v2493_v37 = vpop.eup %2492  ;;  %v953_v42 = vmul.f32 %v2766_v11, %v802_v35  ;;  %v1245_v59 = vmul.f32 1.442695, %v951_v28  ;;  %v1403_v45 = vmul.f32 %v2489_v47, %v1303_v39  ;;  %v1453_v1 = vmul.f32 %v2489_v47, %v1353_v21  ;;  %v1505_v28 = vld [vmem:[#allocation4 + $0x488] sm:$0xff] }
 0x1fe   :  { %v1603_v52 = vmul.f32 %v2493_v37, %v1503_v61  ;;  %v1255_v53 = vmul.f32 1.442695, %v956_v10  ;;  %v1653_v54 = vmul.f32 %v2493_v37, %v1553_v36  ;;  %v1247_v41 = vmul.f32 1.442695, %v952_v27  ;;  %v1855_v27 = vld [vmem:[#allocation4 + $0x940] sm:$0xff] }
 0x1ff   :  { %v2495_v40 = vpop.eup %2494  ;;  %2504 = vpow2.f32 %v1245_v59  ;;  %v1249_v57 = vmul.f32 1.442695, %v953_v42  ;;  %v2002_v63 = vadd.f32 %v1902_v19, %v3174_v49  ;;  %v2052_v4 = vadd.f32 %v1952_v29, %v1752_v17  ;;  %v1854_v49 = vld [vmem:[#allocation4 + $0x928] sm:$0xff]  ;;  %v1556_v29 = vld [vmem:[#allocation4 + $0x950] sm:$0xff] }
 0x200   :  { %v2101_v18 = vadd.f32 %v2100_v5, %v2001_v15  ;;  %v2156_v55 = vadd.f32 %v2155_v14, %v2051_v23  ;;  %2506 = vpow2.f32 %v1247_v41  ;;  %v1404_v44 = vmul.f32 %v2491_v16, %v1304_v34  ;;  %v1805_v23 = vld [vmem:[#allocation4 + $0x490] sm:$0xff] }
 0x201   :  { %v1454_v22 = vmul.f32 %v2491_v16, %v1354_v7  ;;  %v1604_v31 = vmul.f32 %v2495_v40, %v1504_v9  ;;  %2508 = vpow2.f32 %v1255_v53  ;;  %v1654_v43 = vmul.f32 %v2495_v40, %v1554_v0  ;;  %v1555_v16 = vld [vmem:[#allocation4 + $0x938] sm:$0xff] }
 0x202   :  { %v2497_v11 = vpop.eup %2496  ;;  %v1703_v8 = vadd.f32 %v1603_v52, %v1403_v45  ;;  %v1753_v48 = vadd.f32 %v1653_v54, %v1453_v1  ;;  %2510 = vpow2.f32 %v1249_v57  ;;  %v2102_v19 = vadd.f32 %v2101_v18, %v2002_v63  ;;  %v1806_v1 = vld [vmem:[#allocation4 + $0x4a8] sm:$0xff]  ;;  %v1856_v52 = vld [vmem:[#allocation4 + $0x958] sm:$0xff] }
 0x203   :  { %v2157_v17 = vadd.f32 %v2156_v55, %v2052_v4  ;;  %v1903_v20 = vmul.f32 %v2497_v11, %v1803_v46  ;;  %v1953_v6 = vmul.f32 %v2497_v11, %v1853_v38  ;;  %v1704_v30 = vadd.f32 %v1604_v31, %v1404_v44 }
 0x204   :  { %v2499_v13 = vpop.eup %2498  ;;  %v1754_v58 = vadd.f32 %v1654_v43, %v1454_v22 }
 0x205   :  { %v2501_v50 = vpop.eup %2500  ;;  %v2003_v32 = vadd.f32 %v1903_v20, %v1703_v8  ;;  %v2053_v12 = vadd.f32 %v1953_v6, %v1753_v48  ;;  %v1904_v26 = vmul.f32 %v2499_v13, %v1804_v51  ;;  %v1954_v33 = vmul.f32 %v2499_v13, %v1854_v49  ;;  %v2057_v6 = vld [vmem:[#allocation2] sm:$0x3] }
 0x206   :  { %v2503_v24 = vpop.eup %2502  ;;  %v1406_v10 = vmul.f32 %v2501_v50, %v1306_v3  ;;  %v1456_v47 = vmul.f32 %v2501_v50, %v1356_v25 }
 0x207   :  { %v2103_v21 = vadd.f32 %v2102_v19, %v2003_v32  ;;  %v2158_v61 = vadd.f32 %v2157_v17, %v2053_v12  ;;  %v1606_v62 = vmul.f32 %v2503_v24, %v1506_v2  ;;  %v1656_v35 = vmul.f32 %v2503_v24, %v1556_v29 }
 0x208   :  { %v2004_v36 = vadd.f32 %v1904_v26, %v1704_v30  ;;  %v2054_v37 = vadd.f32 %v1954_v33, %v1754_v58 }
 0x209   :  { %v2505_v39 = vpop.eup %2504  ;;  %v1706_v53 = vadd.f32 %v1606_v62, %v1406_v10  ;;  %v1756_v40 = vadd.f32 %v1656_v35, %v1456_v47 }
 0x20a   :  { %v1405_v5 = vmul.f32 %v2505_v39, %v1305_v60  ;;  %v1455_v14 = vmul.f32 %v2505_v39, %v1355_v56  ;;  %v2507_v15 = vpop.eup %2506  ;;  %v2104_v7 = vadd.f32 %v2103_v21, %v2004_v36  ;;  %v2159_v9 = vadd.f32 %v2158_v61, %v2054_v37 }
 0x20b   :  { %v2509_v42 = vpop.eup %2508  ;;  %v1605_v59 = vmul.f32 %v2507_v15, %v1505_v28  ;;  %v1655_v34 = vmul.f32 %v2507_v15, %v1555_v16 }
 0x20c   :  { %v2511_v45 = vpop.eup %2510  ;;  %v1906_v0 = vmul.f32 %v2509_v42, %v1806_v1  ;;  %v1956_v4 = vmul.f32 %v2509_v42, %v1856_v52 }
 0x20d   :  { %v1705_v54 = vadd.f32 %v1605_v59, %v1405_v5  ;;  %v1755_v41 = vadd.f32 %v1655_v34, %v1455_v14  ;;  %v1905_v57 = vmul.f32 %v2511_v45, %v1805_v23  ;;  %v1955_v63 = vmul.f32 %v2511_v45, %v1855_v27 }
 0x20e   :  { %v2006_v11 = vadd.f32 %v1906_v0, %v1706_v53  ;;  %v2056_v44 = vadd.f32 %v1956_v4, %v1756_v40 }
 0x20f   :  { %v2005_v18 = vadd.f32 %v1905_v57, %v1705_v54  ;;  %v2055_v55 = vadd.f32 %v1955_v63, %v1755_v41 }
 0x211   :  { %v2105_v22 = vadd.f32 %v2104_v7, %v2005_v18  ;;  %v2160_v31 = vadd.f32 %v2159_v9, %v2055_v55 }
 0x213   :  { %v2106_v46 = vadd.f32 %v2105_v22, %v2006_v11  ;;  %v2161_v38 = vadd.f32 %v2160_v31, %v2056_v44 }
 0x215   :  { %v2107_v43 = vrot.slane %v2106_v46, 4  ;;  %v2162_v8 = vrot.slane %v2161_v38, 4 }
 0x217   :  { %v2108_v48 = vadd.f32 %v2107_v43, %v2106_v46  ;;  %v2163_v13 = vadd.f32 %v2162_v8, %v2161_v38 }
 0x219   :  { %v2109_v51 = vrot.slane %v2108_v48, 2  ;;  %v2164_v50 = vrot.slane %v2163_v13, 2 }
 0x21b   :  { %v2110_v49 = vadd.f32 %v2109_v51, %v2108_v48  ;;  %v2165_v19 = vadd.f32 %v2164_v50, %v2163_v13 }
 0x21d   :  { %v2111_v17 = vrot.slane %v2110_v49, 1  ;;  %v2166_v20 = vrot.slane %v2165_v19, 1 }
 0x21f   :  { %v2112_v3 = vadd.f32 %v2111_v17, %v2110_v49  ;;  %v2167_v25 = vadd.f32 %v2166_v20, %v2165_v19 }
 0x221   :  { %v2171_v24 = vsel %vm2170_vm0, %v2167_v25, %v2112_v3 }
 0x222   :  { %v2173_v2 = vadd.f32 %v2171_v24, %v2057_v6 }
 0x224   :  { %2174 = vst [vmem:[#allocation2] sm:$0x3] %v2173_v2 }
 0x22b   :  { %v2178_v29 = vld [vmem:[#allocation2] sm:$0x3] }
 0x22c   :  { %v2180_v30 = vsel %vm2179_vm1, %v2178_v29, 0.0 }
 0x22d   :  { %2181 = vadd.xlane.f32.xlu0 %v2180_v30 }
 0x2ba   :  { %v2182_v58 = vpop.xlane.xlu0 %2181 }
 0x2bb   :  { %v2183_v32 = vmul.f32 0.0026041667, %v2182_v58 }
 0x2bd   :  { %2184 = vst [vmem:[#allocation7] sm:$0x3] %v2183_v32 }
 0x2be   :  { %2545 = shalt.err (!%p2542_p12)
}
 0x2bf   :  { %s2546_s21 = scalar_lea.hbm %s3203_s3, 32 }
 0x2c0   :  { %p2547_p13 = scmp.ne.s32.totalorder %s3203_s3, %s2546_s21  ;;  %p2550_p0 = scmp.lt.u32.totalorder %s2546_s21, %s3203_s3 }
 0x2c2   :  { %p2552_p1 = pnand %p2550_p0, %p2547_p13 }
 0x2c4   :  { %2555 = shalt.err (!%p2552_p1)
}
 0x2c5   :  { %2194 = dma.vmem_to_hbm [thread:$0]  %s2192_s17, 32, %s3203_s3, [#allocation6]  }
 0x2c6   :  { %2558 = dma.done.wait [#allocation6], 32  }
 0x2c7   :  { %2559 = vsyncadd [#allocation6], 4294967264 }
 0x2c8   :  { %2198 = vsyncpa [#allocation5], 1 }
 0x2c9   :  { %2199 = vsyncpa [#allocation6], 1 }

</bundles_post_ra>
